<compile_context>
chip_gen: v5e
topology: v5e:2x2
jax: 0.10.0
libtpu: 0.0.40
codegen_flags: <defaults>
</compile_context>

<pallas_src>
import math

import jax
import jax.numpy as jnp
from jax import lax
from jax.experimental import pallas as pl
from jax.experimental.pallas import tpu as pltpu

LN_EPS = 1e-5
NEG_INF = -1e30  # finite masked_fill value (avoids inf-inf NaN traps; no row is fully masked)


def _gelu_tanh(x):
    # TODO(synk): PyTorch nn.GELU() default is the exact erf form; the tanh
    # approximation is used here (and in the JAX reference) since erf has no
    # guaranteed Mosaic lowering.
    c = math.sqrt(2.0 / math.pi)
    return 0.5 * x * (1.0 + jnp.tanh(c * (x + 0.044715 * x * x * x)))


def _layer_norm(x, g_ref, b_ref):
    mu = jnp.mean(x, axis=-1, keepdims=True)
    var = jnp.mean((x - mu) * (x - mu), axis=-1, keepdims=True)
    return (x - mu) * lax.rsqrt(var + LN_EPS) * g_ref[...] + b_ref[...]


def _mha(q_in, kv_in, mask, wq_ref, wk_ref, wv_ref, wo_ref, bo_ref):
    """Multi-head attention on 2-D (seq, embed) slabs.

    wq/wk/wv: (H, E, d) stacked per-head input projections (math layout: x @ w).
    wo:       (H, d, E) stacked row-blocks of the output projection, so that
              concat_h(ctx_h) @ Wo == sum_h ctx_h @ wo[h]  (no lane concat needed).
    """
    num_heads, _, head_dim = wq_ref.shape
    scale = 1.0 / math.sqrt(head_dim)
    # Additive mask bias computed once (hoisted out of the head loop).
    mask_bias = jnp.where(mask > 0.0, 0.0, NEG_INF)                          # (Sq, Sk)
    out = None
    for h in range(num_heads):                                               # static, small
        qh = jnp.dot(q_in, wq_ref[h], preferred_element_type=jnp.float32) * scale  # (Sq, d)
        kh = jnp.dot(kv_in, wk_ref[h], preferred_element_type=jnp.float32)  # (Sk, d)
        vh = jnp.dot(kv_in, wv_ref[h], preferred_element_type=jnp.float32)  # (Sk, d)
        # scores = (qh / sqrt(d)) @ kh^T + mask_bias
        scores = lax.dot_general(qh, kh, (((1,), (1,)), ((), ())),
                                 preferred_element_type=jnp.float32) + mask_bias
        m = jnp.max(scores, axis=-1, keepdims=True)
        e = jnp.exp(scores - m)
        w = e * pl.reciprocal(jnp.sum(e, axis=-1, keepdims=True), approx=True)
        # TODO(synk): attention-weight dropout is identity (eval mode).
        ctx = jnp.dot(w, vh, preferred_element_type=jnp.float32)            # (Sq, d)
        part = jnp.dot(ctx, wo_ref[h], preferred_element_type=jnp.float32)  # (Sq, E)
        out = part if out is None else out + part
    return out + bo_ref[...]


def _decoder_block_kernel(
        x_ref, dmask_ref, enc_ref, emask_ref,
        ln1_g_ref, ln1_b_ref, ln2_g_ref, ln2_b_ref, ln3_g_ref, ln3_b_ref,
        wq_s_ref, wk_s_ref, wv_s_ref, wo_s_ref, bo_s_ref,
        wq_c_ref, wk_c_ref, wv_c_ref, wo_c_ref, bo_c_ref,
        w1_ref, b1_ref, w2_ref, b2_ref,
        out_ref):
    x = x_ref[0]          # (Sd, E)
    enc = enc_ref[0]      # (Se, E)
    dmask = dmask_ref[0]  # (Sd, Sd)
    emask = emask_ref[0]  # (Sd, Se)

    # 1) self-attention sub-block (pre-LN) + residual
    n1 = _layer_norm(x, ln1_g_ref, ln1_b_ref)
    x1 = x + _mha(n1, n1, dmask, wq_s_ref, wk_s_ref, wv_s_ref, wo_s_ref, bo_s_ref)

    # 2) cross-attention sub-block + residual
    n2 = _layer_norm(x1, ln2_g_ref, ln2_b_ref)
    x2 = x1 + _mha(n2, enc, emask, wq_c_ref, wk_c_ref, wv_c_ref, wo_c_ref, bo_c_ref)

    # 3) feed-forward sub-block + residual
    n3 = _layer_norm(x2, ln3_g_ref, ln3_b_ref)
    h = jnp.dot(n3, w1_ref[...], preferred_element_type=jnp.float32) + b1_ref[...]
    h = _gelu_tanh(h)
    ff = jnp.dot(h, w2_ref[...], preferred_element_type=jnp.float32) + b2_ref[...]
    # TODO(synk): FFN output dropout is identity (eval mode); training mode
    # would thread a seed in and use pltpu.prng_seed/prng_random_bits.
    out_ref[0] = (x2 + ff).astype(out_ref.dtype)


def decoder_block_forward(embedding, decoder_mask, encoder_output, encoder_mask, params):
    """embedding: (B, Sd, E), decoder_mask: (B, Sd, Sd),
    encoder_output: (B, Se, E), encoder_mask: (B, Sd, Se)."""
    B, Sd, E = embedding.shape
    Se = encoder_output.shape[1]
    H, _, d = params["wq_self"].shape
    F = params["w1"].shape[1]

    def batch3(s1, s2):
        return pl.BlockSpec((1, s1, s2), lambda b: (b, 0, 0))

    def full2(s1, s2):
        return pl.BlockSpec((s1, s2), lambda b: (0, 0))

    def full3(s1, s2, s3):
        return pl.BlockSpec((s1, s2, s3), lambda b: (0, 0, 0))

    in_specs = [
        batch3(Sd, E),                 # embedding (one batch row per grid step)
        batch3(Sd, Sd),                # decoder (self-attention) mask
        batch3(Se, E),                 # encoder output
        batch3(Sd, Se),                # encoder (cross-attention) mask
        full2(1, E), full2(1, E),      # layer_norm_1 gamma / beta
        full2(1, E), full2(1, E),      # layer_norm_2 gamma / beta
        full2(1, E), full2(1, E),      # layer_norm_3 gamma / beta
        full3(H, E, d), full3(H, E, d), full3(H, E, d), full3(H, d, E), full2(1, E),  # self-attn
        full3(H, E, d), full3(H, E, d), full3(H, E, d), full3(H, d, E), full2(1, E),  # cross-attn
        full2(E, F), full2(1, F), full2(F, E), full2(1, E),                           # feed-forward
    ]

    grid_spec = pltpu.PrefetchScalarGridSpec(
        num_scalar_prefetch=0,
        grid=(B,),
        in_specs=in_specs,
        out_specs=pl.BlockSpec((1, Sd, E), lambda b: (b, 0, 0)),
    )

    return pl.pallas_call(
        _decoder_block_kernel,
        out_shape=jax.ShapeDtypeStruct((B, Sd, E), jnp.float32),
        grid_spec=grid_spec,
        compiler_params=pltpu.CompilerParams(
            # Batch rows are independent -> shard across the 2 TCs on v7x.
            dimension_semantics=("parallel",),
        ),
    )(
        embedding, decoder_mask, encoder_output, encoder_mask,
        params["ln1_g"], params["ln1_b"],
        params["ln2_g"], params["ln2_b"],
        params["ln3_g"], params["ln3_b"],
        params["wq_self"], params["wk_self"], params["wv_self"],
        params["wo_self"], params["bo_self"],
        params["wq_cross"], params["wk_cross"], params["wv_cross"],
        params["wo_cross"], params["bo_cross"],
        params["w1"], params["b1"], params["w2"], params["b2"],
    )


def decoder_block_reference(embedding, decoder_mask, encoder_output, encoder_mask, params):
    """Pure-JAX reference matching the PyTorch DecoderBlock forward (eval mode)."""
    prec = lax.Precision.HIGHEST

    def ln(v, g, b):
        mu = jnp.mean(v, axis=-1, keepdims=True)
        var = jnp.mean((v - mu) ** 2, axis=-1, keepdims=True)
        return (v - mu) / jnp.sqrt(var + LN_EPS) * g + b

    def mha(q_in, kv_in, mask, wq, wk, wv, wo, bo):
        H, E, d = wq.shape
        B, Sq, _ = q_in.shape
        q = jnp.einsum("bse,hed->bhsd", q_in, wq, precision=prec)
        k = jnp.einsum("bse,hed->bhsd", kv_in, wk, precision=prec)
        v = jnp.einsum("bse,hed->bhsd", kv_in, wv, precision=prec)
        scores = jnp.einsum("bhqd,bhkd->bhqk", q, k, precision=prec) / math.sqrt(d)
        scores = jnp.where(mask[:, None, :, :] > 0.0, scores, NEG_INF)
        w = jax.nn.softmax(scores, axis=-1)
        ctx = jnp.einsum("bhqk,bhkd->bhqd", w, v, precision=prec)
        ctx = ctx.transpose(0, 2, 1, 3).reshape(B, Sq, H * d)   # torch.cat(heads, dim=-1)
        wo_full = wo.reshape(H * d, E)
        return jnp.einsum("bse,ef->bsf", ctx, wo_full, precision=prec) + bo[0]

    x = embedding
    n1 = ln(x, params["ln1_g"][0], params["ln1_b"][0])
    x1 = x + mha(n1, n1, decoder_mask,
                 params["wq_self"], params["wk_self"], params["wv_self"],
                 params["wo_self"], params["bo_self"])
    n2 = ln(x1, params["ln2_g"][0], params["ln2_b"][0])
    x2 = x1 + mha(n2, encoder_output, encoder_mask,
                  params["wq_cross"], params["wk_cross"], params["wv_cross"],
                  params["wo_cross"], params["bo_cross"])
    n3 = ln(x2, params["ln3_g"][0], params["ln3_b"][0])
    h = jnp.einsum("bse,ef->bsf", n3, params["w1"], precision=prec) + params["b1"][0]
    h = _gelu_tanh(h)
    ff = jnp.einsum("bsf,fe->bse", h, params["w2"], precision=prec) + params["b2"][0]
    return x2 + ff


if __name__ == "__main__":
    # config-equivalent: embed_size=128, num_attention_heads=4,
    # ff_intermediate_size=256, dropout_prob=0.1 (eval mode), edu=False
    B, S_DEC, S_ENC, E, H, FF = 2, 8, 16, 128, 4, 256
    d = E // H

    keys = iter(jax.random.split(jax.random.PRNGKey(0), 24))
    nk = lambda: next(keys)

    embedding = jax.random.normal(nk(), (B, S_DEC, E), dtype=jnp.float32)
    encoder_output = jax.random.normal(nk(), (B, S_ENC, E), dtype=jnp.float32)

    # Causal self-attention mask (B, Sd, Sd).
    causal = jnp.tril(jnp.ones((S_DEC, S_DEC), dtype=jnp.float32))
    decoder_mask = jnp.broadcast_to(causal, (B, S_DEC, S_DEC))
    # Encoder padding mask (B, Sd, Se): batch row 1 has 4 padded positions.
    enc_lens = jnp.array([S_ENC, S_ENC - 4], dtype=jnp.int32)
    enc_valid = (jnp.arange(S_ENC)[None, :] < enc_lens[:, None]).astype(jnp.float32)
    encoder_mask = jnp.broadcast_to(enc_valid[:, None, :], (B, S_DEC, S_ENC))

    def linear_w(fan_in, shape):
        return jax.random.uniform(nk(), shape, jnp.float32, -1.0, 1.0) / math.sqrt(fan_in)

    params = {
        "ln1_g": 1.0 + 0.1 * jax.random.normal(nk(), (1, E), jnp.float32),
        "ln1_b": 0.1 * jax.random.normal(nk(), (1, E), jnp.float32),
        "ln2_g": 1.0 + 0.1 * jax.random.normal(nk(), (1, E), jnp.float32),
        "ln2_b": 0.1 * jax.random.normal(nk(), (1, E), jnp.float32),
        "ln3_g": 1.0 + 0.1 * jax.random.normal(nk(), (1, E), jnp.float32),
        "ln3_b": 0.1 * jax.random.normal(nk(), (1, E), jnp.float32),
        # Self-attention: per-head Wq/Wk/Wv stacked (H, E, d); Wo stacked (H, d, E).
        "wq_self": linear_w(E, (H, E, d)),
        "wk_self": linear_w(E, (H, E, d)),
        "wv_self": linear_w(E, (H, E, d)),
        "wo_self": linear_w(E, (E, E)).reshape(H, d, E),
        "bo_self": linear_w(E, (1, E)),
        # Cross-attention.
        "wq_cross": linear_w(E, (H, E, d)),
        "wk_cross": linear_w(E, (H, E, d)),
        "wv_cross": linear_w(E, (H, E, d)),
        "wo_cross": linear_w(E, (E, E)).reshape(H, d, E),
        "bo_cross": linear_w(E, (1, E)),
        # Feed-forward.
        "w1": linear_w(E, (E, FF)),
        "b1": linear_w(E, (1, FF)),
        "w2": linear_w(FF, (FF, E)),
        "b2": linear_w(FF, (1, E)),
    }

    out = decoder_block_forward(embedding, decoder_mask, encoder_output, encoder_mask, params)
    out = jax.block_until_ready(out)

    ref = decoder_block_reference(embedding, decoder_mask, encoder_output, encoder_mask, params)
    assert out.shape == (B, S_DEC, E)
    # Tolerance sized for f32 MXU pass-ordering differences and the approx
    # reciprocal in the softmax vs the XLA HIGHEST-precision reference.
    assert jnp.allclose(out, ref, atol=2e-2, rtol=2e-2), "mismatch vs JAX reference"

    print("KERNEL_OK")
</pallas_src>

<mosaic_0001>
module attributes {stable_mosaic.version = 11 : i64} {
  func.func @_decoder_block_kernel(%arg0: i32, %arg1: memref<1x8x128xf32, #tpu.memory_space<vmem>>, %arg2: memref<1x8x8xf32, #tpu.memory_space<vmem>>, %arg3: memref<1x16x128xf32, #tpu.memory_space<vmem>>, %arg4: memref<1x8x16xf32, #tpu.memory_space<vmem>>, %arg5: memref<1x128xf32, #tpu.memory_space<vmem>>, %arg6: memref<1x128xf32, #tpu.memory_space<vmem>>, %arg7: memref<1x128xf32, #tpu.memory_space<vmem>>, %arg8: memref<1x128xf32, #tpu.memory_space<vmem>>, %arg9: memref<1x128xf32, #tpu.memory_space<vmem>>, %arg10: memref<1x128xf32, #tpu.memory_space<vmem>>, %arg11: memref<4x128x32xf32, #tpu.memory_space<vmem>>, %arg12: memref<4x128x32xf32, #tpu.memory_space<vmem>>, %arg13: memref<4x128x32xf32, #tpu.memory_space<vmem>>, %arg14: memref<4x32x128xf32, #tpu.memory_space<vmem>>, %arg15: memref<1x128xf32, #tpu.memory_space<vmem>>, %arg16: memref<4x128x32xf32, #tpu.memory_space<vmem>>, %arg17: memref<4x128x32xf32, #tpu.memory_space<vmem>>, %arg18: memref<4x128x32xf32, #tpu.memory_space<vmem>>, %arg19: memref<4x32x128xf32, #tpu.memory_space<vmem>>, %arg20: memref<1x128xf32, #tpu.memory_space<vmem>>, %arg21: memref<128x256xf32, #tpu.memory_space<vmem>>, %arg22: memref<1x256xf32, #tpu.memory_space<vmem>>, %arg23: memref<256x128xf32, #tpu.memory_space<vmem>>, %arg24: memref<1x128xf32, #tpu.memory_space<vmem>>, %arg25: memref<1x8x128xf32, #tpu.memory_space<vmem>>) attributes {dimension_semantics = [#tpu.dimension_semantics<parallel>], iteration_bounds = array<i64: 2>, scalar_prefetch = 0 : i64, scratch_operands = 0 : i64, tpu.core_type = #tpu.core_type<tc>, window_params = [{transform_indices = @transform_0, window_bounds = array<i64: 1, 8, 128>}, {transform_indices = @transform_1, window_bounds = array<i64: 1, 8, 8>}, {transform_indices = @transform_2, window_bounds = array<i64: 1, 16, 128>}, {transform_indices = @transform_3, window_bounds = array<i64: 1, 8, 16>}, {pipeline_mode = #tpu.pipeline_mode<synchronous>, transform_indices = @transform_4, window_bounds = array<i64: 1, 128>}, {pipeline_mode = #tpu.pipeline_mode<synchronous>, transform_indices = @transform_5, window_bounds = array<i64: 1, 128>}, {pipeline_mode = #tpu.pipeline_mode<synchronous>, transform_indices = @transform_6, window_bounds = array<i64: 1, 128>}, {pipeline_mode = #tpu.pipeline_mode<synchronous>, transform_indices = @transform_7, window_bounds = array<i64: 1, 128>}, {pipeline_mode = #tpu.pipeline_mode<synchronous>, transform_indices = @transform_8, window_bounds = array<i64: 1, 128>}, {pipeline_mode = #tpu.pipeline_mode<synchronous>, transform_indices = @transform_9, window_bounds = array<i64: 1, 128>}, {pipeline_mode = #tpu.pipeline_mode<synchronous>, transform_indices = @transform_10, window_bounds = array<i64: 4, 128, 32>}, {pipeline_mode = #tpu.pipeline_mode<synchronous>, transform_indices = @transform_11, window_bounds = array<i64: 4, 128, 32>}, {pipeline_mode = #tpu.pipeline_mode<synchronous>, transform_indices = @transform_12, window_bounds = array<i64: 4, 128, 32>}, {pipeline_mode = #tpu.pipeline_mode<synchronous>, transform_indices = @transform_13, window_bounds = array<i64: 4, 32, 128>}, {pipeline_mode = #tpu.pipeline_mode<synchronous>, transform_indices = @transform_14, window_bounds = array<i64: 1, 128>}, {pipeline_mode = #tpu.pipeline_mode<synchronous>, transform_indices = @transform_15, window_bounds = array<i64: 4, 128, 32>}, {pipeline_mode = #tpu.pipeline_mode<synchronous>, transform_indices = @transform_16, window_bounds = array<i64: 4, 128, 32>}, {pipeline_mode = #tpu.pipeline_mode<synchronous>, transform_indices = @transform_17, window_bounds = array<i64: 4, 128, 32>}, {pipeline_mode = #tpu.pipeline_mode<synchronous>, transform_indices = @transform_18, window_bounds = array<i64: 4, 32, 128>}, {pipeline_mode = #tpu.pipeline_mode<synchronous>, transform_indices = @transform_19, window_bounds = array<i64: 1, 128>}, {pipeline_mode = #tpu.pipeline_mode<synchronous>, transform_indices = @transform_20, window_bounds = array<i64: 128, 256>}, {pipeline_mode = #tpu.pipeline_mode<synchronous>, transform_indices = @transform_21, window_bounds = array<i64: 1, 256>}, {pipeline_mode = #tpu.pipeline_mode<synchronous>, transform_indices = @transform_22, window_bounds = array<i64: 256, 128>}, {pipeline_mode = #tpu.pipeline_mode<synchronous>, transform_indices = @transform_23, window_bounds = array<i64: 1, 128>}, {transform_indices = @transform_24, window_bounds = array<i64: 1, 8, 128>}]} {
    %c0 = arith.constant 0 : index
    %c0_0 = arith.constant 0 : index
    %c0_1 = arith.constant 0 : index
    %0 = vector.load %arg1[%c0, %c0_0, %c0_1] : memref<1x8x128xf32, #tpu.memory_space<vmem>>, vector<1x8x128xf32>
    %1 = vector.shape_cast %0 : vector<1x8x128xf32> to vector<8x128xf32>
    %c0_2 = arith.constant 0 : index
    %c0_3 = arith.constant 0 : index
    %c0_4 = arith.constant 0 : index
    %2 = vector.load %arg3[%c0_2, %c0_3, %c0_4] : memref<1x16x128xf32, #tpu.memory_space<vmem>>, vector<1x16x128xf32>
    %3 = vector.shape_cast %2 : vector<1x16x128xf32> to vector<16x128xf32>
    %c0_5 = arith.constant 0 : index
    %c0_6 = arith.constant 0 : index
    %c0_7 = arith.constant 0 : index
    %4 = vector.load %arg2[%c0_5, %c0_6, %c0_7] : memref<1x8x8xf32, #tpu.memory_space<vmem>>, vector<1x8x8xf32>
    %5 = vector.shape_cast %4 : vector<1x8x8xf32> to vector<8x8xf32>
    %c0_8 = arith.constant 0 : index
    %c0_9 = arith.constant 0 : index
    %c0_10 = arith.constant 0 : index
    %6 = vector.load %arg4[%c0_8, %c0_9, %c0_10] : memref<1x8x16xf32, #tpu.memory_space<vmem>>, vector<1x8x16xf32>
    %7 = vector.shape_cast %6 : vector<1x8x16xf32> to vector<8x16xf32>
    %cst = arith.constant dense<0.000000e+00> : vector<8xf32>
    %8 = vector.multi_reduction <add>, %1, %cst [1] : vector<8x128xf32> to vector<8xf32>
    %9 = vector.shape_cast %8 : vector<8xf32> to vector<8x1xf32>
    %cst_11 = arith.constant 1.280000e+02 : f32
    %10 = vector.broadcast %cst_11 : f32 to vector<8x1xf32>
    %11 = arith.divf %9, %10 : vector<8x1xf32>
    %12 = vector.broadcast %11 : vector<8x1xf32> to vector<8x128xf32>
    %13 = arith.subf %1, %12 : vector<8x128xf32>
    %14 = vector.broadcast %11 : vector<8x1xf32> to vector<8x128xf32>
    %15 = arith.subf %1, %14 : vector<8x128xf32>
    %16 = arith.mulf %13, %15 : vector<8x128xf32>
    %cst_12 = arith.constant dense<0.000000e+00> : vector<8xf32>
    %17 = vector.multi_reduction <add>, %16, %cst_12 [1] : vector<8x128xf32> to vector<8xf32>
    %18 = vector.shape_cast %17 : vector<8xf32> to vector<8x1xf32>
    %cst_13 = arith.constant 1.280000e+02 : f32
    %19 = vector.broadcast %cst_13 : f32 to vector<8x1xf32>
    %20 = arith.divf %18, %19 : vector<8x1xf32>
    %21 = vector.broadcast %11 : vector<8x1xf32> to vector<8x128xf32>
    %22 = arith.subf %1, %21 : vector<8x128xf32>
    %cst_14 = arith.constant 9.99999974E-6 : f32
    %23 = vector.broadcast %cst_14 : f32 to vector<8x1xf32>
    %24 = arith.addf %20, %23 : vector<8x1xf32>
    %25 = math.rsqrt %24 : vector<8x1xf32>
    %26 = vector.broadcast %25 : vector<8x1xf32> to vector<8x128xf32>
    %27 = arith.mulf %22, %26 : vector<8x128xf32>
    %c0_15 = arith.constant 0 : index
    %c0_16 = arith.constant 0 : index
    %28 = vector.load %arg5[%c0_15, %c0_16] : memref<1x128xf32, #tpu.memory_space<vmem>>, vector<1x128xf32>
    %29 = vector.broadcast %28 : vector<1x128xf32> to vector<8x128xf32>
    %30 = arith.mulf %27, %29 : vector<8x128xf32>
    %c0_17 = arith.constant 0 : index
    %c0_18 = arith.constant 0 : index
    %31 = vector.load %arg6[%c0_17, %c0_18] : memref<1x128xf32, #tpu.memory_space<vmem>>, vector<1x128xf32>
    %32 = vector.broadcast %31 : vector<1x128xf32> to vector<8x128xf32>
    %33 = arith.addf %30, %32 : vector<8x128xf32>
    %cst_19 = arith.constant 0.000000e+00 : f32
    %34 = vector.broadcast %cst_19 : f32 to vector<8x8xf32>
    %35 = arith.cmpf ogt, %5, %34 : vector<8x8xf32>
    %cst_20 = arith.constant 0.000000e+00 : f32
    %cst_21 = arith.constant -1.000000e+30 : f32
    %36 = vector.broadcast %cst_20 : f32 to vector<8x8xf32>
    %37 = vector.broadcast %cst_21 : f32 to vector<8x8xf32>
    %38 = arith.select %35, %36, %37 : vector<8x8xi1>, vector<8x8xf32>
    %c0_22 = arith.constant 0 : index
    %c0_23 = arith.constant 0 : index
    %c0_24 = arith.constant 0 : index
    %39 = vector.load %arg11[%c0_22, %c0_23, %c0_24] : memref<4x128x32xf32, #tpu.memory_space<vmem>>, vector<1x128x32xf32>
    %40 = vector.shape_cast %39 : vector<1x128x32xf32> to vector<128x32xf32>
    %cst_25 = arith.constant dense<0.000000e+00> : vector<8x32xf32>
    %41 = tpu.matmul %33, %40, %cst_25 {dimension_numbers = #tpu.dot_dimension_numbers<[1], [0], [0], [1], [0, 0, 1, 1], [], []>} : vector<8x128xf32>, vector<128x32xf32>, vector<8x32xf32> -> vector<8x32xf32>
    %cst_26 = arith.constant 0.176776692 : f32
    %42 = vector.broadcast %cst_26 : f32 to vector<8x32xf32>
    %43 = arith.mulf %41, %42 : vector<8x32xf32>
    %c0_27 = arith.constant 0 : index
    %c0_28 = arith.constant 0 : index
    %c0_29 = arith.constant 0 : index
    %44 = vector.load %arg12[%c0_27, %c0_28, %c0_29] : memref<4x128x32xf32, #tpu.memory_space<vmem>>, vector<1x128x32xf32>
    %45 = vector.shape_cast %44 : vector<1x128x32xf32> to vector<128x32xf32>
    %cst_30 = arith.constant dense<0.000000e+00> : vector<8x32xf32>
    %46 = tpu.matmul %33, %45, %cst_30 {dimension_numbers = #tpu.dot_dimension_numbers<[1], [0], [0], [1], [0, 0, 1, 1], [], []>} : vector<8x128xf32>, vector<128x32xf32>, vector<8x32xf32> -> vector<8x32xf32>
    %c0_31 = arith.constant 0 : index
    %c0_32 = arith.constant 0 : index
    %c0_33 = arith.constant 0 : index
    %47 = vector.load %arg13[%c0_31, %c0_32, %c0_33] : memref<4x128x32xf32, #tpu.memory_space<vmem>>, vector<1x128x32xf32>
    %48 = vector.shape_cast %47 : vector<1x128x32xf32> to vector<128x32xf32>
    %cst_34 = arith.constant dense<0.000000e+00> : vector<8x32xf32>
    %49 = tpu.matmul %33, %48, %cst_34 {dimension_numbers = #tpu.dot_dimension_numbers<[1], [0], [0], [1], [0, 0, 1, 1], [], []>} : vector<8x128xf32>, vector<128x32xf32>, vector<8x32xf32> -> vector<8x32xf32>
    %cst_35 = arith.constant dense<0.000000e+00> : vector<8x8xf32>
    %50 = tpu.matmul %43, %46, %cst_35 {dimension_numbers = #tpu.dot_dimension_numbers<[1], [1], [0], [0], [0, 0, 1, 0], [], []>} : vector<8x32xf32>, vector<8x32xf32>, vector<8x8xf32> -> vector<8x8xf32>
    %51 = arith.addf %50, %38 : vector<8x8xf32>
    %cst_36 = arith.constant dense<0xFF800000> : vector<8xf32>
    %52 = vector.multi_reduction <maximumf>, %51, %cst_36 [1] : vector<8x8xf32> to vector<8xf32>
    %53 = vector.shape_cast %52 : vector<8xf32> to vector<8x1xf32>
    %54 = vector.broadcast %53 : vector<8x1xf32> to vector<8x8xf32>
    %55 = arith.subf %51, %54 : vector<8x8xf32>
    %56 = math.exp %55 : vector<8x8xf32>
    %cst_37 = arith.constant dense<0.000000e+00> : vector<8xf32>
    %57 = vector.multi_reduction <add>, %56, %cst_37 [1] : vector<8x8xf32> to vector<8xf32>
    %58 = vector.shape_cast %57 : vector<8xf32> to vector<8x1xf32>
    %59 = tpu.reciprocal %58 {approx = true} : vector<8x1xf32> -> vector<8x1xf32>
    %60 = vector.broadcast %59 : vector<8x1xf32> to vector<8x8xf32>
    %61 = arith.mulf %56, %60 : vector<8x8xf32>
    %cst_38 = arith.constant dense<0.000000e+00> : vector<8x32xf32>
    %62 = tpu.matmul %61, %49, %cst_38 {dimension_numbers = #tpu.dot_dimension_numbers<[1], [0], [0], [1], [0, 0, 1, 1], [], []>} : vector<8x8xf32>, vector<8x32xf32>, vector<8x32xf32> -> vector<8x32xf32>
    %c0_39 = arith.constant 0 : index
    %c0_40 = arith.constant 0 : index
    %c0_41 = arith.constant 0 : index
    %63 = vector.load %arg14[%c0_39, %c0_40, %c0_41] : memref<4x32x128xf32, #tpu.memory_space<vmem>>, vector<1x32x128xf32>
    %64 = vector.shape_cast %63 : vector<1x32x128xf32> to vector<32x128xf32>
    %cst_42 = arith.constant dense<0.000000e+00> : vector<8x128xf32>
    %65 = tpu.matmul %62, %64, %cst_42 {dimension_numbers = #tpu.dot_dimension_numbers<[1], [0], [0], [1], [0, 0, 1, 1], [], []>} : vector<8x32xf32>, vector<32x128xf32>, vector<8x128xf32> -> vector<8x128xf32>
    %c1 = arith.constant 1 : index
    %c0_43 = arith.constant 0 : index
    %c0_44 = arith.constant 0 : index
    %66 = vector.load %arg11[%c1, %c0_43, %c0_44] : memref<4x128x32xf32, #tpu.memory_space<vmem>>, vector<1x128x32xf32>
    %67 = vector.shape_cast %66 : vector<1x128x32xf32> to vector<128x32xf32>
    %cst_45 = arith.constant dense<0.000000e+00> : vector<8x32xf32>
    %68 = tpu.matmul %33, %67, %cst_45 {dimension_numbers = #tpu.dot_dimension_numbers<[1], [0], [0], [1], [0, 0, 1, 1], [], []>} : vector<8x128xf32>, vector<128x32xf32>, vector<8x32xf32> -> vector<8x32xf32>
    %cst_46 = arith.constant 0.176776692 : f32
    %69 = vector.broadcast %cst_46 : f32 to vector<8x32xf32>
    %70 = arith.mulf %68, %69 : vector<8x32xf32>
    %c1_47 = arith.constant 1 : index
    %c0_48 = arith.constant 0 : index
    %c0_49 = arith.constant 0 : index
    %71 = vector.load %arg12[%c1_47, %c0_48, %c0_49] : memref<4x128x32xf32, #tpu.memory_space<vmem>>, vector<1x128x32xf32>
    %72 = vector.shape_cast %71 : vector<1x128x32xf32> to vector<128x32xf32>
    %cst_50 = arith.constant dense<0.000000e+00> : vector<8x32xf32>
    %73 = tpu.matmul %33, %72, %cst_50 {dimension_numbers = #tpu.dot_dimension_numbers<[1], [0], [0], [1], [0, 0, 1, 1], [], []>} : vector<8x128xf32>, vector<128x32xf32>, vector<8x32xf32> -> vector<8x32xf32>
    %c1_51 = arith.constant 1 : index
    %c0_52 = arith.constant 0 : index
    %c0_53 = arith.constant 0 : index
    %74 = vector.load %arg13[%c1_51, %c0_52, %c0_53] : memref<4x128x32xf32, #tpu.memory_space<vmem>>, vector<1x128x32xf32>
    %75 = vector.shape_cast %74 : vector<1x128x32xf32> to vector<128x32xf32>
    %cst_54 = arith.constant dense<0.000000e+00> : vector<8x32xf32>
    %76 = tpu.matmul %33, %75, %cst_54 {dimension_numbers = #tpu.dot_dimension_numbers<[1], [0], [0], [1], [0, 0, 1, 1], [], []>} : vector<8x128xf32>, vector<128x32xf32>, vector<8x32xf32> -> vector<8x32xf32>
    %cst_55 = arith.constant dense<0.000000e+00> : vector<8x8xf32>
    %77 = tpu.matmul %70, %73, %cst_55 {dimension_numbers = #tpu.dot_dimension_numbers<[1], [1], [0], [0], [0, 0, 1, 0], [], []>} : vector<8x32xf32>, vector<8x32xf32>, vector<8x8xf32> -> vector<8x8xf32>
    %78 = arith.addf %77, %38 : vector<8x8xf32>
    %cst_56 = arith.constant dense<0xFF800000> : vector<8xf32>
    %79 = vector.multi_reduction <maximumf>, %78, %cst_56 [1] : vector<8x8xf32> to vector<8xf32>
    %80 = vector.shape_cast %79 : vector<8xf32> to vector<8x1xf32>
    %81 = vector.broadcast %80 : vector<8x1xf32> to vector<8x8xf32>
    %82 = arith.subf %78, %81 : vector<8x8xf32>
    %83 = math.exp %82 : vector<8x8xf32>
    %cst_57 = arith.constant dense<0.000000e+00> : vector<8xf32>
    %84 = vector.multi_reduction <add>, %83, %cst_57 [1] : vector<8x8xf32> to vector<8xf32>
    %85 = vector.shape_cast %84 : vector<8xf32> to vector<8x1xf32>
    %86 = tpu.reciprocal %85 {approx = true} : vector<8x1xf32> -> vector<8x1xf32>
    %87 = vector.broadcast %86 : vector<8x1xf32> to vector<8x8xf32>
    %88 = arith.mulf %83, %87 : vector<8x8xf32>
    %cst_58 = arith.constant dense<0.000000e+00> : vector<8x32xf32>
    %89 = tpu.matmul %88, %76, %cst_58 {dimension_numbers = #tpu.dot_dimension_numbers<[1], [0], [0], [1], [0, 0, 1, 1], [], []>} : vector<8x8xf32>, vector<8x32xf32>, vector<8x32xf32> -> vector<8x32xf32>
    %c1_59 = arith.constant 1 : index
    %c0_60 = arith.constant 0 : index
    %c0_61 = arith.constant 0 : index
    %90 = vector.load %arg14[%c1_59, %c0_60, %c0_61] : memref<4x32x128xf32, #tpu.memory_space<vmem>>, vector<1x32x128xf32>
    %91 = vector.shape_cast %90 : vector<1x32x128xf32> to vector<32x128xf32>
    %cst_62 = arith.constant dense<0.000000e+00> : vector<8x128xf32>
    %92 = tpu.matmul %89, %91, %cst_62 {dimension_numbers = #tpu.dot_dimension_numbers<[1], [0], [0], [1], [0, 0, 1, 1], [], []>} : vector<8x32xf32>, vector<32x128xf32>, vector<8x128xf32> -> vector<8x128xf32>
    %93 = arith.addf %65, %92 : vector<8x128xf32>
    %c2 = arith.constant 2 : index
    %c0_63 = arith.constant 0 : index
    %c0_64 = arith.constant 0 : index
    %94 = vector.load %arg11[%c2, %c0_63, %c0_64] : memref<4x128x32xf32, #tpu.memory_space<vmem>>, vector<1x128x32xf32>
    %95 = vector.shape_cast %94 : vector<1x128x32xf32> to vector<128x32xf32>
    %cst_65 = arith.constant dense<0.000000e+00> : vector<8x32xf32>
    %96 = tpu.matmul %33, %95, %cst_65 {dimension_numbers = #tpu.dot_dimension_numbers<[1], [0], [0], [1], [0, 0, 1, 1], [], []>} : vector<8x128xf32>, vector<128x32xf32>, vector<8x32xf32> -> vector<8x32xf32>
    %cst_66 = arith.constant 0.176776692 : f32
    %97 = vector.broadcast %cst_66 : f32 to vector<8x32xf32>
    %98 = arith.mulf %96, %97 : vector<8x32xf32>
    %c2_67 = arith.constant 2 : index
    %c0_68 = arith.constant 0 : index
    %c0_69 = arith.constant 0 : index
    %99 = vector.load %arg12[%c2_67, %c0_68, %c0_69] : memref<4x128x32xf32, #tpu.memory_space<vmem>>, vector<1x128x32xf32>
    %100 = vector.shape_cast %99 : vector<1x128x32xf32> to vector<128x32xf32>
    %cst_70 = arith.constant dense<0.000000e+00> : vector<8x32xf32>
    %101 = tpu.matmul %33, %100, %cst_70 {dimension_numbers = #tpu.dot_dimension_numbers<[1], [0], [0], [1], [0, 0, 1, 1], [], []>} : vector<8x128xf32>, vector<128x32xf32>, vector<8x32xf32> -> vector<8x32xf32>
    %c2_71 = arith.constant 2 : index
    %c0_72 = arith.constant 0 : index
    %c0_73 = arith.constant 0 : index
    %102 = vector.load %arg13[%c2_71, %c0_72, %c0_73] : memref<4x128x32xf32, #tpu.memory_space<vmem>>, vector<1x128x32xf32>
    %103 = vector.shape_cast %102 : vector<1x128x32xf32> to vector<128x32xf32>
    %cst_74 = arith.constant dense<0.000000e+00> : vector<8x32xf32>
    %104 = tpu.matmul %33, %103, %cst_74 {dimension_numbers = #tpu.dot_dimension_numbers<[1], [0], [0], [1], [0, 0, 1, 1], [], []>} : vector<8x128xf32>, vector<128x32xf32>, vector<8x32xf32> -> vector<8x32xf32>
    %cst_75 = arith.constant dense<0.000000e+00> : vector<8x8xf32>
    %105 = tpu.matmul %98, %101, %cst_75 {dimension_numbers = #tpu.dot_dimension_numbers<[1], [1], [0], [0], [0, 0, 1, 0], [], []>} : vector<8x32xf32>, vector<8x32xf32>, vector<8x8xf32> -> vector<8x8xf32>
    %106 = arith.addf %105, %38 : vector<8x8xf32>
    %cst_76 = arith.constant dense<0xFF800000> : vector<8xf32>
    %107 = vector.multi_reduction <maximumf>, %106, %cst_76 [1] : vector<8x8xf32> to vector<8xf32>
    %108 = vector.shape_cast %107 : vector<8xf32> to vector<8x1xf32>
    %109 = vector.broadcast %108 : vector<8x1xf32> to vector<8x8xf32>
    %110 = arith.subf %106, %109 : vector<8x8xf32>
    %111 = math.exp %110 : vector<8x8xf32>
    %cst_77 = arith.constant dense<0.000000e+00> : vector<8xf32>
    %112 = vector.multi_reduction <add>, %111, %cst_77 [1] : vector<8x8xf32> to vector<8xf32>
    %113 = vector.shape_cast %112 : vector<8xf32> to vector<8x1xf32>
    %114 = tpu.reciprocal %113 {approx = true} : vector<8x1xf32> -> vector<8x1xf32>
    %115 = vector.broadcast %114 : vector<8x1xf32> to vector<8x8xf32>
    %116 = arith.mulf %111, %115 : vector<8x8xf32>
    %cst_78 = arith.constant dense<0.000000e+00> : vector<8x32xf32>
    %117 = tpu.matmul %116, %104, %cst_78 {dimension_numbers = #tpu.dot_dimension_numbers<[1], [0], [0], [1], [0, 0, 1, 1], [], []>} : vector<8x8xf32>, vector<8x32xf32>, vector<8x32xf32> -> vector<8x32xf32>
    %c2_79 = arith.constant 2 : index
    %c0_80 = arith.constant 0 : index
    %c0_81 = arith.constant 0 : index
    %118 = vector.load %arg14[%c2_79, %c0_80, %c0_81] : memref<4x32x128xf32, #tpu.memory_space<vmem>>, vector<1x32x128xf32>
    %119 = vector.shape_cast %118 : vector<1x32x128xf32> to vector<32x128xf32>
    %cst_82 = arith.constant dense<0.000000e+00> : vector<8x128xf32>
    %120 = tpu.matmul %117, %119, %cst_82 {dimension_numbers = #tpu.dot_dimension_numbers<[1], [0], [0], [1], [0, 0, 1, 1], [], []>} : vector<8x32xf32>, vector<32x128xf32>, vector<8x128xf32> -> vector<8x128xf32>
    %121 = arith.addf %93, %120 : vector<8x128xf32>
    %c3 = arith.constant 3 : index
    %c0_83 = arith.constant 0 : index
    %c0_84 = arith.constant 0 : index
    %122 = vector.load %arg11[%c3, %c0_83, %c0_84] : memref<4x128x32xf32, #tpu.memory_space<vmem>>, vector<1x128x32xf32>
    %123 = vector.shape_cast %122 : vector<1x128x32xf32> to vector<128x32xf32>
    %cst_85 = arith.constant dense<0.000000e+00> : vector<8x32xf32>
    %124 = tpu.matmul %33, %123, %cst_85 {dimension_numbers = #tpu.dot_dimension_numbers<[1], [0], [0], [1], [0, 0, 1, 1], [], []>} : vector<8x128xf32>, vector<128x32xf32>, vector<8x32xf32> -> vector<8x32xf32>
    %cst_86 = arith.constant 0.176776692 : f32
    %125 = vector.broadcast %cst_86 : f32 to vector<8x32xf32>
    %126 = arith.mulf %124, %125 : vector<8x32xf32>
    %c3_87 = arith.constant 3 : index
    %c0_88 = arith.constant 0 : index
    %c0_89 = arith.constant 0 : index
    %127 = vector.load %arg12[%c3_87, %c0_88, %c0_89] : memref<4x128x32xf32, #tpu.memory_space<vmem>>, vector<1x128x32xf32>
    %128 = vector.shape_cast %127 : vector<1x128x32xf32> to vector<128x32xf32>
    %cst_90 = arith.constant dense<0.000000e+00> : vector<8x32xf32>
    %129 = tpu.matmul %33, %128, %cst_90 {dimension_numbers = #tpu.dot_dimension_numbers<[1], [0], [0], [1], [0, 0, 1, 1], [], []>} : vector<8x128xf32>, vector<128x32xf32>, vector<8x32xf32> -> vector<8x32xf32>
    %c3_91 = arith.constant 3 : index
    %c0_92 = arith.constant 0 : index
    %c0_93 = arith.constant 0 : index
    %130 = vector.load %arg13[%c3_91, %c0_92, %c0_93] : memref<4x128x32xf32, #tpu.memory_space<vmem>>, vector<1x128x32xf32>
    %131 = vector.shape_cast %130 : vector<1x128x32xf32> to vector<128x32xf32>
    %cst_94 = arith.constant dense<0.000000e+00> : vector<8x32xf32>
    %132 = tpu.matmul %33, %131, %cst_94 {dimension_numbers = #tpu.dot_dimension_numbers<[1], [0], [0], [1], [0, 0, 1, 1], [], []>} : vector<8x128xf32>, vector<128x32xf32>, vector<8x32xf32> -> vector<8x32xf32>
    %cst_95 = arith.constant dense<0.000000e+00> : vector<8x8xf32>
    %133 = tpu.matmul %126, %129, %cst_95 {dimension_numbers = #tpu.dot_dimension_numbers<[1], [1], [0], [0], [0, 0, 1, 0], [], []>} : vector<8x32xf32>, vector<8x32xf32>, vector<8x8xf32> -> vector<8x8xf32>
    %134 = arith.addf %133, %38 : vector<8x8xf32>
    %cst_96 = arith.constant dense<0xFF800000> : vector<8xf32>
    %135 = vector.multi_reduction <maximumf>, %134, %cst_96 [1] : vector<8x8xf32> to vector<8xf32>
    %136 = vector.shape_cast %135 : vector<8xf32> to vector<8x1xf32>
    %137 = vector.broadcast %136 : vector<8x1xf32> to vector<8x8xf32>
    %138 = arith.subf %134, %137 : vector<8x8xf32>
    %139 = math.exp %138 : vector<8x8xf32>
    %cst_97 = arith.constant dense<0.000000e+00> : vector<8xf32>
    %140 = vector.multi_reduction <add>, %139, %cst_97 [1] : vector<8x8xf32> to vector<8xf32>
    %141 = vector.shape_cast %140 : vector<8xf32> to vector<8x1xf32>
    %142 = tpu.reciprocal %141 {approx = true} : vector<8x1xf32> -> vector<8x1xf32>
    %143 = vector.broadcast %142 : vector<8x1xf32> to vector<8x8xf32>
    %144 = arith.mulf %139, %143 : vector<8x8xf32>
    %cst_98 = arith.constant dense<0.000000e+00> : vector<8x32xf32>
    %145 = tpu.matmul %144, %132, %cst_98 {dimension_numbers = #tpu.dot_dimension_numbers<[1], [0], [0], [1], [0, 0, 1, 1], [], []>} : vector<8x8xf32>, vector<8x32xf32>, vector<8x32xf32> -> vector<8x32xf32>
    %c3_99 = arith.constant 3 : index
    %c0_100 = arith.constant 0 : index
    %c0_101 = arith.constant 0 : index
    %146 = vector.load %arg14[%c3_99, %c0_100, %c0_101] : memref<4x32x128xf32, #tpu.memory_space<vmem>>, vector<1x32x128xf32>
    %147 = vector.shape_cast %146 : vector<1x32x128xf32> to vector<32x128xf32>
    %cst_102 = arith.constant dense<0.000000e+00> : vector<8x128xf32>
    %148 = tpu.matmul %145, %147, %cst_102 {dimension_numbers = #tpu.dot_dimension_numbers<[1], [0], [0], [1], [0, 0, 1, 1], [], []>} : vector<8x32xf32>, vector<32x128xf32>, vector<8x128xf32> -> vector<8x128xf32>
    %149 = arith.addf %121, %148 : vector<8x128xf32>
    %c0_103 = arith.constant 0 : index
    %c0_104 = arith.constant 0 : index
    %150 = vector.load %arg15[%c0_103, %c0_104] : memref<1x128xf32, #tpu.memory_space<vmem>>, vector<1x128xf32>
    %151 = vector.broadcast %150 : vector<1x128xf32> to vector<8x128xf32>
    %152 = arith.addf %149, %151 : vector<8x128xf32>
    %153 = arith.addf %1, %152 : vector<8x128xf32>
    %cst_105 = arith.constant dense<0.000000e+00> : vector<8xf32>
    %154 = vector.multi_reduction <add>, %153, %cst_105 [1] : vector<8x128xf32> to vector<8xf32>
    %155 = vector.shape_cast %154 : vector<8xf32> to vector<8x1xf32>
    %cst_106 = arith.constant 1.280000e+02 : f32
    %156 = vector.broadcast %cst_106 : f32 to vector<8x1xf32>
    %157 = arith.divf %155, %156 : vector<8x1xf32>
    %158 = vector.broadcast %157 : vector<8x1xf32> to vector<8x128xf32>
    %159 = arith.subf %153, %158 : vector<8x128xf32>
    %160 = vector.broadcast %157 : vector<8x1xf32> to vector<8x128xf32>
    %161 = arith.subf %153, %160 : vector<8x128xf32>
    %162 = arith.mulf %159, %161 : vector<8x128xf32>
    %cst_107 = arith.constant dense<0.000000e+00> : vector<8xf32>
    %163 = vector.multi_reduction <add>, %162, %cst_107 [1] : vector<8x128xf32> to vector<8xf32>
    %164 = vector.shape_cast %163 : vector<8xf32> to vector<8x1xf32>
    %cst_108 = arith.constant 1.280000e+02 : f32
    %165 = vector.broadcast %cst_108 : f32 to vector<8x1xf32>
    %166 = arith.divf %164, %165 : vector<8x1xf32>
    %167 = vector.broadcast %157 : vector<8x1xf32> to vector<8x128xf32>
    %168 = arith.subf %153, %167 : vector<8x128xf32>
    %cst_109 = arith.constant 9.99999974E-6 : f32
    %169 = vector.broadcast %cst_109 : f32 to vector<8x1xf32>
    %170 = arith.addf %166, %169 : vector<8x1xf32>
    %171 = math.rsqrt %170 : vector<8x1xf32>
    %172 = vector.broadcast %171 : vector<8x1xf32> to vector<8x128xf32>
    %173 = arith.mulf %168, %172 : vector<8x128xf32>
    %c0_110 = arith.constant 0 : index
    %c0_111 = arith.constant 0 : index
    %174 = vector.load %arg7[%c0_110, %c0_111] : memref<1x128xf32, #tpu.memory_space<vmem>>, vector<1x128xf32>
    %175 = vector.broadcast %174 : vector<1x128xf32> to vector<8x128xf32>
    %176 = arith.mulf %173, %175 : vector<8x128xf32>
    %c0_112 = arith.constant 0 : index
    %c0_113 = arith.constant 0 : index
    %177 = vector.load %arg8[%c0_112, %c0_113] : memref<1x128xf32, #tpu.memory_space<vmem>>, vector<1x128xf32>
    %178 = vector.broadcast %177 : vector<1x128xf32> to vector<8x128xf32>
    %179 = arith.addf %176, %178 : vector<8x128xf32>
    %cst_114 = arith.constant 0.000000e+00 : f32
    %180 = vector.broadcast %cst_114 : f32 to vector<8x16xf32>
    %181 = arith.cmpf ogt, %7, %180 : vector<8x16xf32>
    %cst_115 = arith.constant 0.000000e+00 : f32
    %cst_116 = arith.constant -1.000000e+30 : f32
    %182 = vector.broadcast %cst_115 : f32 to vector<8x16xf32>
    %183 = vector.broadcast %cst_116 : f32 to vector<8x16xf32>
    %184 = arith.select %181, %182, %183 : vector<8x16xi1>, vector<8x16xf32>
    %c0_117 = arith.constant 0 : index
    %c0_118 = arith.constant 0 : index
    %c0_119 = arith.constant 0 : index
    %185 = vector.load %arg16[%c0_117, %c0_118, %c0_119] : memref<4x128x32xf32, #tpu.memory_space<vmem>>, vector<1x128x32xf32>
    %186 = vector.shape_cast %185 : vector<1x128x32xf32> to vector<128x32xf32>
    %cst_120 = arith.constant dense<0.000000e+00> : vector<8x32xf32>
    %187 = tpu.matmul %179, %186, %cst_120 {dimension_numbers = #tpu.dot_dimension_numbers<[1], [0], [0], [1], [0, 0, 1, 1], [], []>} : vector<8x128xf32>, vector<128x32xf32>, vector<8x32xf32> -> vector<8x32xf32>
    %cst_121 = arith.constant 0.176776692 : f32
    %188 = vector.broadcast %cst_121 : f32 to vector<8x32xf32>
    %189 = arith.mulf %187, %188 : vector<8x32xf32>
    %c0_122 = arith.constant 0 : index
    %c0_123 = arith.constant 0 : index
    %c0_124 = arith.constant 0 : index
    %190 = vector.load %arg17[%c0_122, %c0_123, %c0_124] : memref<4x128x32xf32, #tpu.memory_space<vmem>>, vector<1x128x32xf32>
    %191 = vector.shape_cast %190 : vector<1x128x32xf32> to vector<128x32xf32>
    %cst_125 = arith.constant dense<0.000000e+00> : vector<16x32xf32>
    %192 = tpu.matmul %3, %191, %cst_125 {dimension_numbers = #tpu.dot_dimension_numbers<[1], [0], [0], [1], [0, 0, 1, 1], [], []>} : vector<16x128xf32>, vector<128x32xf32>, vector<16x32xf32> -> vector<16x32xf32>
    %c0_126 = arith.constant 0 : index
    %c0_127 = arith.constant 0 : index
    %c0_128 = arith.constant 0 : index
    %193 = vector.load %arg18[%c0_126, %c0_127, %c0_128] : memref<4x128x32xf32, #tpu.memory_space<vmem>>, vector<1x128x32xf32>
    %194 = vector.shape_cast %193 : vector<1x128x32xf32> to vector<128x32xf32>
    %cst_129 = arith.constant dense<0.000000e+00> : vector<16x32xf32>
    %195 = tpu.matmul %3, %194, %cst_129 {dimension_numbers = #tpu.dot_dimension_numbers<[1], [0], [0], [1], [0, 0, 1, 1], [], []>} : vector<16x128xf32>, vector<128x32xf32>, vector<16x32xf32> -> vector<16x32xf32>
    %cst_130 = arith.constant dense<0.000000e+00> : vector<8x16xf32>
    %196 = tpu.matmul %189, %192, %cst_130 {dimension_numbers = #tpu.dot_dimension_numbers<[1], [1], [0], [0], [0, 0, 1, 0], [], []>} : vector<8x32xf32>, vector<16x32xf32>, vector<8x16xf32> -> vector<8x16xf32>
    %197 = arith.addf %196, %184 : vector<8x16xf32>
    %cst_131 = arith.constant dense<0xFF800000> : vector<8xf32>
    %198 = vector.multi_reduction <maximumf>, %197, %cst_131 [1] : vector<8x16xf32> to vector<8xf32>
    %199 = vector.shape_cast %198 : vector<8xf32> to vector<8x1xf32>
    %200 = vector.broadcast %199 : vector<8x1xf32> to vector<8x16xf32>
    %201 = arith.subf %197, %200 : vector<8x16xf32>
    %202 = math.exp %201 : vector<8x16xf32>
    %cst_132 = arith.constant dense<0.000000e+00> : vector<8xf32>
    %203 = vector.multi_reduction <add>, %202, %cst_132 [1] : vector<8x16xf32> to vector<8xf32>
    %204 = vector.shape_cast %203 : vector<8xf32> to vector<8x1xf32>
    %205 = tpu.reciprocal %204 {approx = true} : vector<8x1xf32> -> vector<8x1xf32>
    %206 = vector.broadcast %205 : vector<8x1xf32> to vector<8x16xf32>
    %207 = arith.mulf %202, %206 : vector<8x16xf32>
    %cst_133 = arith.constant dense<0.000000e+00> : vector<8x32xf32>
    %208 = tpu.matmul %207, %195, %cst_133 {dimension_numbers = #tpu.dot_dimension_numbers<[1], [0], [0], [1], [0, 0, 1, 1], [], []>} : vector<8x16xf32>, vector<16x32xf32>, vector<8x32xf32> -> vector<8x32xf32>
    %c0_134 = arith.constant 0 : index
    %c0_135 = arith.constant 0 : index
    %c0_136 = arith.constant 0 : index
    %209 = vector.load %arg19[%c0_134, %c0_135, %c0_136] : memref<4x32x128xf32, #tpu.memory_space<vmem>>, vector<1x32x128xf32>
    %210 = vector.shape_cast %209 : vector<1x32x128xf32> to vector<32x128xf32>
    %cst_137 = arith.constant dense<0.000000e+00> : vector<8x128xf32>
    %211 = tpu.matmul %208, %210, %cst_137 {dimension_numbers = #tpu.dot_dimension_numbers<[1], [0], [0], [1], [0, 0, 1, 1], [], []>} : vector<8x32xf32>, vector<32x128xf32>, vector<8x128xf32> -> vector<8x128xf32>
    %c1_138 = arith.constant 1 : index
    %c0_139 = arith.constant 0 : index
    %c0_140 = arith.constant 0 : index
    %212 = vector.load %arg16[%c1_138, %c0_139, %c0_140] : memref<4x128x32xf32, #tpu.memory_space<vmem>>, vector<1x128x32xf32>
    %213 = vector.shape_cast %212 : vector<1x128x32xf32> to vector<128x32xf32>
    %cst_141 = arith.constant dense<0.000000e+00> : vector<8x32xf32>
    %214 = tpu.matmul %179, %213, %cst_141 {dimension_numbers = #tpu.dot_dimension_numbers<[1], [0], [0], [1], [0, 0, 1, 1], [], []>} : vector<8x128xf32>, vector<128x32xf32>, vector<8x32xf32> -> vector<8x32xf32>
    %cst_142 = arith.constant 0.176776692 : f32
    %215 = vector.broadcast %cst_142 : f32 to vector<8x32xf32>
    %216 = arith.mulf %214, %215 : vector<8x32xf32>
    %c1_143 = arith.constant 1 : index
    %c0_144 = arith.constant 0 : index
    %c0_145 = arith.constant 0 : index
    %217 = vector.load %arg17[%c1_143, %c0_144, %c0_145] : memref<4x128x32xf32, #tpu.memory_space<vmem>>, vector<1x128x32xf32>
    %218 = vector.shape_cast %217 : vector<1x128x32xf32> to vector<128x32xf32>
    %cst_146 = arith.constant dense<0.000000e+00> : vector<16x32xf32>
    %219 = tpu.matmul %3, %218, %cst_146 {dimension_numbers = #tpu.dot_dimension_numbers<[1], [0], [0], [1], [0, 0, 1, 1], [], []>} : vector<16x128xf32>, vector<128x32xf32>, vector<16x32xf32> -> vector<16x32xf32>
    %c1_147 = arith.constant 1 : index
    %c0_148 = arith.constant 0 : index
    %c0_149 = arith.constant 0 : index
    %220 = vector.load %arg18[%c1_147, %c0_148, %c0_149] : memref<4x128x32xf32, #tpu.memory_space<vmem>>, vector<1x128x32xf32>
    %221 = vector.shape_cast %220 : vector<1x128x32xf32> to vector<128x32xf32>
    %cst_150 = arith.constant dense<0.000000e+00> : vector<16x32xf32>
    %222 = tpu.matmul %3, %221, %cst_150 {dimension_numbers = #tpu.dot_dimension_numbers<[1], [0], [0], [1], [0, 0, 1, 1], [], []>} : vector<16x128xf32>, vector<128x32xf32>, vector<16x32xf32> -> vector<16x32xf32>
    %cst_151 = arith.constant dense<0.000000e+00> : vector<8x16xf32>
    %223 = tpu.matmul %216, %219, %cst_151 {dimension_numbers = #tpu.dot_dimension_numbers<[1], [1], [0], [0], [0, 0, 1, 0], [], []>} : vector<8x32xf32>, vector<16x32xf32>, vector<8x16xf32> -> vector<8x16xf32>
    %224 = arith.addf %223, %184 : vector<8x16xf32>
    %cst_152 = arith.constant dense<0xFF800000> : vector<8xf32>
    %225 = vector.multi_reduction <maximumf>, %224, %cst_152 [1] : vector<8x16xf32> to vector<8xf32>
    %226 = vector.shape_cast %225 : vector<8xf32> to vector<8x1xf32>
    %227 = vector.broadcast %226 : vector<8x1xf32> to vector<8x16xf32>
    %228 = arith.subf %224, %227 : vector<8x16xf32>
    %229 = math.exp %228 : vector<8x16xf32>
    %cst_153 = arith.constant dense<0.000000e+00> : vector<8xf32>
    %230 = vector.multi_reduction <add>, %229, %cst_153 [1] : vector<8x16xf32> to vector<8xf32>
    %231 = vector.shape_cast %230 : vector<8xf32> to vector<8x1xf32>
    %232 = tpu.reciprocal %231 {approx = true} : vector<8x1xf32> -> vector<8x1xf32>
    %233 = vector.broadcast %232 : vector<8x1xf32> to vector<8x16xf32>
    %234 = arith.mulf %229, %233 : vector<8x16xf32>
    %cst_154 = arith.constant dense<0.000000e+00> : vector<8x32xf32>
    %235 = tpu.matmul %234, %222, %cst_154 {dimension_numbers = #tpu.dot_dimension_numbers<[1], [0], [0], [1], [0, 0, 1, 1], [], []>} : vector<8x16xf32>, vector<16x32xf32>, vector<8x32xf32> -> vector<8x32xf32>
    %c1_155 = arith.constant 1 : index
    %c0_156 = arith.constant 0 : index
    %c0_157 = arith.constant 0 : index
    %236 = vector.load %arg19[%c1_155, %c0_156, %c0_157] : memref<4x32x128xf32, #tpu.memory_space<vmem>>, vector<1x32x128xf32>
    %237 = vector.shape_cast %236 : vector<1x32x128xf32> to vector<32x128xf32>
    %cst_158 = arith.constant dense<0.000000e+00> : vector<8x128xf32>
    %238 = tpu.matmul %235, %237, %cst_158 {dimension_numbers = #tpu.dot_dimension_numbers<[1], [0], [0], [1], [0, 0, 1, 1], [], []>} : vector<8x32xf32>, vector<32x128xf32>, vector<8x128xf32> -> vector<8x128xf32>
    %239 = arith.addf %211, %238 : vector<8x128xf32>
    %c2_159 = arith.constant 2 : index
    %c0_160 = arith.constant 0 : index
    %c0_161 = arith.constant 0 : index
    %240 = vector.load %arg16[%c2_159, %c0_160, %c0_161] : memref<4x128x32xf32, #tpu.memory_space<vmem>>, vector<1x128x32xf32>
    %241 = vector.shape_cast %240 : vector<1x128x32xf32> to vector<128x32xf32>
    %cst_162 = arith.constant dense<0.000000e+00> : vector<8x32xf32>
    %242 = tpu.matmul %179, %241, %cst_162 {dimension_numbers = #tpu.dot_dimension_numbers<[1], [0], [0], [1], [0, 0, 1, 1], [], []>} : vector<8x128xf32>, vector<128x32xf32>, vector<8x32xf32> -> vector<8x32xf32>
    %cst_163 = arith.constant 0.176776692 : f32
    %243 = vector.broadcast %cst_163 : f32 to vector<8x32xf32>
    %244 = arith.mulf %242, %243 : vector<8x32xf32>
    %c2_164 = arith.constant 2 : index
    %c0_165 = arith.constant 0 : index
    %c0_166 = arith.constant 0 : index
    %245 = vector.load %arg17[%c2_164, %c0_165, %c0_166] : memref<4x128x32xf32, #tpu.memory_space<vmem>>, vector<1x128x32xf32>
    %246 = vector.shape_cast %245 : vector<1x128x32xf32> to vector<128x32xf32>
    %cst_167 = arith.constant dense<0.000000e+00> : vector<16x32xf32>
    %247 = tpu.matmul %3, %246, %cst_167 {dimension_numbers = #tpu.dot_dimension_numbers<[1], [0], [0], [1], [0, 0, 1, 1], [], []>} : vector<16x128xf32>, vector<128x32xf32>, vector<16x32xf32> -> vector<16x32xf32>
    %c2_168 = arith.constant 2 : index
    %c0_169 = arith.constant 0 : index
    %c0_170 = arith.constant 0 : index
    %248 = vector.load %arg18[%c2_168, %c0_169, %c0_170] : memref<4x128x32xf32, #tpu.memory_space<vmem>>, vector<1x128x32xf32>
    %249 = vector.shape_cast %248 : vector<1x128x32xf32> to vector<128x32xf32>
    %cst_171 = arith.constant dense<0.000000e+00> : vector<16x32xf32>
    %250 = tpu.matmul %3, %249, %cst_171 {dimension_numbers = #tpu.dot_dimension_numbers<[1], [0], [0], [1], [0, 0, 1, 1], [], []>} : vector<16x128xf32>, vector<128x32xf32>, vector<16x32xf32> -> vector<16x32xf32>
    %cst_172 = arith.constant dense<0.000000e+00> : vector<8x16xf32>
    %251 = tpu.matmul %244, %247, %cst_172 {dimension_numbers = #tpu.dot_dimension_numbers<[1], [1], [0], [0], [0, 0, 1, 0], [], []>} : vector<8x32xf32>, vector<16x32xf32>, vector<8x16xf32> -> vector<8x16xf32>
    %252 = arith.addf %251, %184 : vector<8x16xf32>
    %cst_173 = arith.constant dense<0xFF800000> : vector<8xf32>
    %253 = vector.multi_reduction <maximumf>, %252, %cst_173 [1] : vector<8x16xf32> to vector<8xf32>
    %254 = vector.shape_cast %253 : vector<8xf32> to vector<8x1xf32>
    %255 = vector.broadcast %254 : vector<8x1xf32> to vector<8x16xf32>
    %256 = arith.subf %252, %255 : vector<8x16xf32>
    %257 = math.exp %256 : vector<8x16xf32>
    %cst_174 = arith.constant dense<0.000000e+00> : vector<8xf32>
    %258 = vector.multi_reduction <add>, %257, %cst_174 [1] : vector<8x16xf32> to vector<8xf32>
    %259 = vector.shape_cast %258 : vector<8xf32> to vector<8x1xf32>
    %260 = tpu.reciprocal %259 {approx = true} : vector<8x1xf32> -> vector<8x1xf32>
    %261 = vector.broadcast %260 : vector<8x1xf32> to vector<8x16xf32>
    %262 = arith.mulf %257, %261 : vector<8x16xf32>
    %cst_175 = arith.constant dense<0.000000e+00> : vector<8x32xf32>
    %263 = tpu.matmul %262, %250, %cst_175 {dimension_numbers = #tpu.dot_dimension_numbers<[1], [0], [0], [1], [0, 0, 1, 1], [], []>} : vector<8x16xf32>, vector<16x32xf32>, vector<8x32xf32> -> vector<8x32xf32>
    %c2_176 = arith.constant 2 : index
    %c0_177 = arith.constant 0 : index
    %c0_178 = arith.constant 0 : index
    %264 = vector.load %arg19[%c2_176, %c0_177, %c0_178] : memref<4x32x128xf32, #tpu.memory_space<vmem>>, vector<1x32x128xf32>
    %265 = vector.shape_cast %264 : vector<1x32x128xf32> to vector<32x128xf32>
    %cst_179 = arith.constant dense<0.000000e+00> : vector<8x128xf32>
    %266 = tpu.matmul %263, %265, %cst_179 {dimension_numbers = #tpu.dot_dimension_numbers<[1], [0], [0], [1], [0, 0, 1, 1], [], []>} : vector<8x32xf32>, vector<32x128xf32>, vector<8x128xf32> -> vector<8x128xf32>
    %267 = arith.addf %239, %266 : vector<8x128xf32>
    %c3_180 = arith.constant 3 : index
    %c0_181 = arith.constant 0 : index
    %c0_182 = arith.constant 0 : index
    %268 = vector.load %arg16[%c3_180, %c0_181, %c0_182] : memref<4x128x32xf32, #tpu.memory_space<vmem>>, vector<1x128x32xf32>
    %269 = vector.shape_cast %268 : vector<1x128x32xf32> to vector<128x32xf32>
    %cst_183 = arith.constant dense<0.000000e+00> : vector<8x32xf32>
    %270 = tpu.matmul %179, %269, %cst_183 {dimension_numbers = #tpu.dot_dimension_numbers<[1], [0], [0], [1], [0, 0, 1, 1], [], []>} : vector<8x128xf32>, vector<128x32xf32>, vector<8x32xf32> -> vector<8x32xf32>
    %cst_184 = arith.constant 0.176776692 : f32
    %271 = vector.broadcast %cst_184 : f32 to vector<8x32xf32>
    %272 = arith.mulf %270, %271 : vector<8x32xf32>
    %c3_185 = arith.constant 3 : index
    %c0_186 = arith.constant 0 : index
    %c0_187 = arith.constant 0 : index
    %273 = vector.load %arg17[%c3_185, %c0_186, %c0_187] : memref<4x128x32xf32, #tpu.memory_space<vmem>>, vector<1x128x32xf32>
    %274 = vector.shape_cast %273 : vector<1x128x32xf32> to vector<128x32xf32>
    %cst_188 = arith.constant dense<0.000000e+00> : vector<16x32xf32>
    %275 = tpu.matmul %3, %274, %cst_188 {dimension_numbers = #tpu.dot_dimension_numbers<[1], [0], [0], [1], [0, 0, 1, 1], [], []>} : vector<16x128xf32>, vector<128x32xf32>, vector<16x32xf32> -> vector<16x32xf32>
    %c3_189 = arith.constant 3 : index
    %c0_190 = arith.constant 0 : index
    %c0_191 = arith.constant 0 : index
    %276 = vector.load %arg18[%c3_189, %c0_190, %c0_191] : memref<4x128x32xf32, #tpu.memory_space<vmem>>, vector<1x128x32xf32>
    %277 = vector.shape_cast %276 : vector<1x128x32xf32> to vector<128x32xf32>
    %cst_192 = arith.constant dense<0.000000e+00> : vector<16x32xf32>
    %278 = tpu.matmul %3, %277, %cst_192 {dimension_numbers = #tpu.dot_dimension_numbers<[1], [0], [0], [1], [0, 0, 1, 1], [], []>} : vector<16x128xf32>, vector<128x32xf32>, vector<16x32xf32> -> vector<16x32xf32>
    %cst_193 = arith.constant dense<0.000000e+00> : vector<8x16xf32>
    %279 = tpu.matmul %272, %275, %cst_193 {dimension_numbers = #tpu.dot_dimension_numbers<[1], [1], [0], [0], [0, 0, 1, 0], [], []>} : vector<8x32xf32>, vector<16x32xf32>, vector<8x16xf32> -> vector<8x16xf32>
    %280 = arith.addf %279, %184 : vector<8x16xf32>
    %cst_194 = arith.constant dense<0xFF800000> : vector<8xf32>
    %281 = vector.multi_reduction <maximumf>, %280, %cst_194 [1] : vector<8x16xf32> to vector<8xf32>
    %282 = vector.shape_cast %281 : vector<8xf32> to vector<8x1xf32>
    %283 = vector.broadcast %282 : vector<8x1xf32> to vector<8x16xf32>
    %284 = arith.subf %280, %283 : vector<8x16xf32>
    %285 = math.exp %284 : vector<8x16xf32>
    %cst_195 = arith.constant dense<0.000000e+00> : vector<8xf32>
    %286 = vector.multi_reduction <add>, %285, %cst_195 [1] : vector<8x16xf32> to vector<8xf32>
    %287 = vector.shape_cast %286 : vector<8xf32> to vector<8x1xf32>
    %288 = tpu.reciprocal %287 {approx = true} : vector<8x1xf32> -> vector<8x1xf32>
    %289 = vector.broadcast %288 : vector<8x1xf32> to vector<8x16xf32>
    %290 = arith.mulf %285, %289 : vector<8x16xf32>
    %cst_196 = arith.constant dense<0.000000e+00> : vector<8x32xf32>
    %291 = tpu.matmul %290, %278, %cst_196 {dimension_numbers = #tpu.dot_dimension_numbers<[1], [0], [0], [1], [0, 0, 1, 1], [], []>} : vector<8x16xf32>, vector<16x32xf32>, vector<8x32xf32> -> vector<8x32xf32>
    %c3_197 = arith.constant 3 : index
    %c0_198 = arith.constant 0 : index
    %c0_199 = arith.constant 0 : index
    %292 = vector.load %arg19[%c3_197, %c0_198, %c0_199] : memref<4x32x128xf32, #tpu.memory_space<vmem>>, vector<1x32x128xf32>
    %293 = vector.shape_cast %292 : vector<1x32x128xf32> to vector<32x128xf32>
    %cst_200 = arith.constant dense<0.000000e+00> : vector<8x128xf32>
    %294 = tpu.matmul %291, %293, %cst_200 {dimension_numbers = #tpu.dot_dimension_numbers<[1], [0], [0], [1], [0, 0, 1, 1], [], []>} : vector<8x32xf32>, vector<32x128xf32>, vector<8x128xf32> -> vector<8x128xf32>
    %295 = arith.addf %267, %294 : vector<8x128xf32>
    %c0_201 = arith.constant 0 : index
    %c0_202 = arith.constant 0 : index
    %296 = vector.load %arg20[%c0_201, %c0_202] : memref<1x128xf32, #tpu.memory_space<vmem>>, vector<1x128xf32>
    %297 = vector.broadcast %296 : vector<1x128xf32> to vector<8x128xf32>
    %298 = arith.addf %295, %297 : vector<8x128xf32>
    %299 = arith.addf %153, %298 : vector<8x128xf32>
    %cst_203 = arith.constant dense<0.000000e+00> : vector<8xf32>
    %300 = vector.multi_reduction <add>, %299, %cst_203 [1] : vector<8x128xf32> to vector<8xf32>
    %301 = vector.shape_cast %300 : vector<8xf32> to vector<8x1xf32>
    %cst_204 = arith.constant 1.280000e+02 : f32
    %302 = vector.broadcast %cst_204 : f32 to vector<8x1xf32>
    %303 = arith.divf %301, %302 : vector<8x1xf32>
    %304 = vector.broadcast %303 : vector<8x1xf32> to vector<8x128xf32>
    %305 = arith.subf %299, %304 : vector<8x128xf32>
    %306 = vector.broadcast %303 : vector<8x1xf32> to vector<8x128xf32>
    %307 = arith.subf %299, %306 : vector<8x128xf32>
    %308 = arith.mulf %305, %307 : vector<8x128xf32>
    %cst_205 = arith.constant dense<0.000000e+00> : vector<8xf32>
    %309 = vector.multi_reduction <add>, %308, %cst_205 [1] : vector<8x128xf32> to vector<8xf32>
    %310 = vector.shape_cast %309 : vector<8xf32> to vector<8x1xf32>
    %cst_206 = arith.constant 1.280000e+02 : f32
    %311 = vector.broadcast %cst_206 : f32 to vector<8x1xf32>
    %312 = arith.divf %310, %311 : vector<8x1xf32>
    %313 = vector.broadcast %303 : vector<8x1xf32> to vector<8x128xf32>
    %314 = arith.subf %299, %313 : vector<8x128xf32>
    %cst_207 = arith.constant 9.99999974E-6 : f32
    %315 = vector.broadcast %cst_207 : f32 to vector<8x1xf32>
    %316 = arith.addf %312, %315 : vector<8x1xf32>
    %317 = math.rsqrt %316 : vector<8x1xf32>
    %318 = vector.broadcast %317 : vector<8x1xf32> to vector<8x128xf32>
    %319 = arith.mulf %314, %318 : vector<8x128xf32>
    %c0_208 = arith.constant 0 : index
    %c0_209 = arith.constant 0 : index
    %320 = vector.load %arg9[%c0_208, %c0_209] : memref<1x128xf32, #tpu.memory_space<vmem>>, vector<1x128xf32>
    %321 = vector.broadcast %320 : vector<1x128xf32> to vector<8x128xf32>
    %322 = arith.mulf %319, %321 : vector<8x128xf32>
    %c0_210 = arith.constant 0 : index
    %c0_211 = arith.constant 0 : index
    %323 = vector.load %arg10[%c0_210, %c0_211] : memref<1x128xf32, #tpu.memory_space<vmem>>, vector<1x128xf32>
    %324 = vector.broadcast %323 : vector<1x128xf32> to vector<8x128xf32>
    %325 = arith.addf %322, %324 : vector<8x128xf32>
    %c0_212 = arith.constant 0 : index
    %c0_213 = arith.constant 0 : index
    %326 = vector.load %arg21[%c0_212, %c0_213] : memref<128x256xf32, #tpu.memory_space<vmem>>, vector<128x256xf32>
    %cst_214 = arith.constant dense<0.000000e+00> : vector<8x256xf32>
    %327 = tpu.matmul %325, %326, %cst_214 {dimension_numbers = #tpu.dot_dimension_numbers<[1], [0], [0], [1], [0, 0, 1, 1], [], []>} : vector<8x128xf32>, vector<128x256xf32>, vector<8x256xf32> -> vector<8x256xf32>
    %c0_215 = arith.constant 0 : index
    %c0_216 = arith.constant 0 : index
    %328 = vector.load %arg22[%c0_215, %c0_216] : memref<1x256xf32, #tpu.memory_space<vmem>>, vector<1x256xf32>
    %329 = vector.broadcast %328 : vector<1x256xf32> to vector<8x256xf32>
    %330 = arith.addf %327, %329 : vector<8x256xf32>
    %cst_217 = arith.constant 5.000000e-01 : f32
    %331 = vector.broadcast %cst_217 : f32 to vector<8x256xf32>
    %332 = arith.mulf %331, %330 : vector<8x256xf32>
    %cst_218 = arith.constant 4.471500e-02 : f32
    %333 = vector.broadcast %cst_218 : f32 to vector<8x256xf32>
    %334 = arith.mulf %333, %330 : vector<8x256xf32>
    %335 = arith.mulf %334, %330 : vector<8x256xf32>
    %336 = arith.mulf %335, %330 : vector<8x256xf32>
    %337 = arith.addf %330, %336 : vector<8x256xf32>
    %cst_219 = arith.constant 0.797884583 : f32
    %338 = vector.broadcast %cst_219 : f32 to vector<8x256xf32>
    %339 = arith.mulf %338, %337 : vector<8x256xf32>
    %340 = math.tanh %339 : vector<8x256xf32>
    %cst_220 = arith.constant 1.000000e+00 : f32
    %341 = vector.broadcast %cst_220 : f32 to vector<8x256xf32>
    %342 = arith.addf %341, %340 : vector<8x256xf32>
    %343 = arith.mulf %332, %342 : vector<8x256xf32>
    %c0_221 = arith.constant 0 : index
    %c0_222 = arith.constant 0 : index
    %344 = vector.load %arg23[%c0_221, %c0_222] : memref<256x128xf32, #tpu.memory_space<vmem>>, vector<256x128xf32>
    %cst_223 = arith.constant dense<0.000000e+00> : vector<8x128xf32>
    %345 = tpu.matmul %343, %344, %cst_223 {dimension_numbers = #tpu.dot_dimension_numbers<[1], [0], [0], [1], [0, 0, 1, 1], [], []>} : vector<8x256xf32>, vector<256x128xf32>, vector<8x128xf32> -> vector<8x128xf32>
    %c0_224 = arith.constant 0 : index
    %c0_225 = arith.constant 0 : index
    %346 = vector.load %arg24[%c0_224, %c0_225] : memref<1x128xf32, #tpu.memory_space<vmem>>, vector<1x128xf32>
    %347 = vector.broadcast %346 : vector<1x128xf32> to vector<8x128xf32>
    %348 = arith.addf %345, %347 : vector<8x128xf32>
    %349 = arith.addf %299, %348 : vector<8x128xf32>
    %c0_226 = arith.constant 0 : index
    %c0_227 = arith.constant 0 : index
    %c0_228 = arith.constant 0 : index
    %350 = vector.load %arg25[%c0_226, %c0_227, %c0_228] : memref<1x8x128xf32, #tpu.memory_space<vmem>>, vector<1x8x128xf32>
    %351 = vector.shape_cast %350 : vector<1x8x128xf32> to vector<8x128xf32>
    %352 = vector.shape_cast %349 : vector<8x128xf32> to vector<1x8x128xf32>
    tpu.vector_store %arg25[%c0_226, %c0_227, %c0_228], %352 {strides = array<i32>} : memref<1x8x128xf32, #tpu.memory_space<vmem>>, vector<1x8x128xf32>,
    return
  }
  func.func @transform_0(%arg0: i32) -> (i32, i32, i32) {
    %c0_i32 = arith.constant 0 : i32
    %c0_i32_0 = arith.constant 0 : i32
    %c0_i32_1 = arith.constant 0 : i32
    return %arg0, %c0_i32, %c0_i32_0 : i32, i32, i32
  }
  func.func @transform_1(%arg0: i32) -> (i32, i32, i32) {
    %c0_i32 = arith.constant 0 : i32
    %c0_i32_0 = arith.constant 0 : i32
    %c0_i32_1 = arith.constant 0 : i32
    return %arg0, %c0_i32, %c0_i32_0 : i32, i32, i32
  }
  func.func @transform_2(%arg0: i32) -> (i32, i32, i32) {
    %c0_i32 = arith.constant 0 : i32
    %c0_i32_0 = arith.constant 0 : i32
    %c0_i32_1 = arith.constant 0 : i32
    return %arg0, %c0_i32, %c0_i32_0 : i32, i32, i32
  }
  func.func @transform_3(%arg0: i32) -> (i32, i32, i32) {
    %c0_i32 = arith.constant 0 : i32
    %c0_i32_0 = arith.constant 0 : i32
    %c0_i32_1 = arith.constant 0 : i32
    return %arg0, %c0_i32, %c0_i32_0 : i32, i32, i32
  }
  func.func @transform_4(%arg0: i32) -> (i32, i32) {
    %c0_i32 = arith.constant 0 : i32
    %c0_i32_0 = arith.constant 0 : i32
    %c0_i32_1 = arith.constant 0 : i32
    return %c0_i32, %c0_i32_0 : i32, i32
  }
  func.func @transform_5(%arg0: i32) -> (i32, i32) {
    %c0_i32 = arith.constant 0 : i32
    %c0_i32_0 = arith.constant 0 : i32
    %c0_i32_1 = arith.constant 0 : i32
    return %c0_i32, %c0_i32_0 : i32, i32
  }
  func.func @transform_6(%arg0: i32) -> (i32, i32) {
    %c0_i32 = arith.constant 0 : i32
    %c0_i32_0 = arith.constant 0 : i32
    %c0_i32_1 = arith.constant 0 : i32
    return %c0_i32, %c0_i32_0 : i32, i32
  }
  func.func @transform_7(%arg0: i32) -> (i32, i32) {
    %c0_i32 = arith.constant 0 : i32
    %c0_i32_0 = arith.constant 0 : i32
    %c0_i32_1 = arith.constant 0 : i32
    return %c0_i32, %c0_i32_0 : i32, i32
  }
  func.func @transform_8(%arg0: i32) -> (i32, i32) {
    %c0_i32 = arith.constant 0 : i32
    %c0_i32_0 = arith.constant 0 : i32
    %c0_i32_1 = arith.constant 0 : i32
    return %c0_i32, %c0_i32_0 : i32, i32
  }
  func.func @transform_9(%arg0: i32) -> (i32, i32) {
    %c0_i32 = arith.constant 0 : i32
    %c0_i32_0 = arith.constant 0 : i32
    %c0_i32_1 = arith.constant 0 : i32
    return %c0_i32, %c0_i32_0 : i32, i32
  }
  func.func @transform_10(%arg0: i32) -> (i32, i32, i32) {
    %c0_i32 = arith.constant 0 : i32
    %c0_i32_0 = arith.constant 0 : i32
    %c0_i32_1 = arith.constant 0 : i32
    %c0_i32_2 = arith.constant 0 : i32
    return %c0_i32, %c0_i32_0, %c0_i32_1 : i32, i32, i32
  }
  func.func @transform_11(%arg0: i32) -> (i32, i32, i32) {
    %c0_i32 = arith.constant 0 : i32
    %c0_i32_0 = arith.constant 0 : i32
    %c0_i32_1 = arith.constant 0 : i32
    %c0_i32_2 = arith.constant 0 : i32
    return %c0_i32, %c0_i32_0, %c0_i32_1 : i32, i32, i32
  }
  func.func @transform_12(%arg0: i32) -> (i32, i32, i32) {
    %c0_i32 = arith.constant 0 : i32
    %c0_i32_0 = arith.constant 0 : i32
    %c0_i32_1 = arith.constant 0 : i32
    %c0_i32_2 = arith.constant 0 : i32
    return %c0_i32, %c0_i32_0, %c0_i32_1 : i32, i32, i32
  }
  func.func @transform_13(%arg0: i32) -> (i32, i32, i32) {
    %c0_i32 = arith.constant 0 : i32
    %c0_i32_0 = arith.constant 0 : i32
    %c0_i32_1 = arith.constant 0 : i32
    %c0_i32_2 = arith.constant 0 : i32
    return %c0_i32, %c0_i32_0, %c0_i32_1 : i32, i32, i32
  }
  func.func @transform_14(%arg0: i32) -> (i32, i32) {
    %c0_i32 = arith.constant 0 : i32
    %c0_i32_0 = arith.constant 0 : i32
    %c0_i32_1 = arith.constant 0 : i32
    return %c0_i32, %c0_i32_0 : i32, i32
  }
  func.func @transform_15(%arg0: i32) -> (i32, i32, i32) {
    %c0_i32 = arith.constant 0 : i32
    %c0_i32_0 = arith.constant 0 : i32
    %c0_i32_1 = arith.constant 0 : i32
    %c0_i32_2 = arith.constant 0 : i32
    return %c0_i32, %c0_i32_0, %c0_i32_1 : i32, i32, i32
  }
  func.func @transform_16(%arg0: i32) -> (i32, i32, i32) {
    %c0_i32 = arith.constant 0 : i32
    %c0_i32_0 = arith.constant 0 : i32
    %c0_i32_1 = arith.constant 0 : i32
    %c0_i32_2 = arith.constant 0 : i32
    return %c0_i32, %c0_i32_0, %c0_i32_1 : i32, i32, i32
  }
  func.func @transform_17(%arg0: i32) -> (i32, i32, i32) {
    %c0_i32 = arith.constant 0 : i32
    %c0_i32_0 = arith.constant 0 : i32
    %c0_i32_1 = arith.constant 0 : i32
    %c0_i32_2 = arith.constant 0 : i32
    return %c0_i32, %c0_i32_0, %c0_i32_1 : i32, i32, i32
  }
  func.func @transform_18(%arg0: i32) -> (i32, i32, i32) {
    %c0_i32 = arith.constant 0 : i32
    %c0_i32_0 = arith.constant 0 : i32
    %c0_i32_1 = arith.constant 0 : i32
    %c0_i32_2 = arith.constant 0 : i32
    return %c0_i32, %c0_i32_0, %c0_i32_1 : i32, i32, i32
  }
  func.func @transform_19(%arg0: i32) -> (i32, i32) {
    %c0_i32 = arith.constant 0 : i32
    %c0_i32_0 = arith.constant 0 : i32
    %c0_i32_1 = arith.constant 0 : i32
    return %c0_i32, %c0_i32_0 : i32, i32
  }
  func.func @transform_20(%arg0: i32) -> (i32, i32) {
    %c0_i32 = arith.constant 0 : i32
    %c0_i32_0 = arith.constant 0 : i32
    %c0_i32_1 = arith.constant 0 : i32
    return %c0_i32, %c0_i32_0 : i32, i32
  }
  func.func @transform_21(%arg0: i32) -> (i32, i32) {
    %c0_i32 = arith.constant 0 : i32
    %c0_i32_0 = arith.constant 0 : i32
    %c0_i32_1 = arith.constant 0 : i32
    return %c0_i32, %c0_i32_0 : i32, i32
  }
  func.func @transform_22(%arg0: i32) -> (i32, i32) {
    %c0_i32 = arith.constant 0 : i32
    %c0_i32_0 = arith.constant 0 : i32
    %c0_i32_1 = arith.constant 0 : i32
    return %c0_i32, %c0_i32_0 : i32, i32
  }
  func.func @transform_23(%arg0: i32) -> (i32, i32) {
    %c0_i32 = arith.constant 0 : i32
    %c0_i32_0 = arith.constant 0 : i32
    %c0_i32_1 = arith.constant 0 : i32
    return %c0_i32, %c0_i32_0 : i32, i32
  }
  func.func @transform_24(%arg0: i32) -> (i32, i32, i32) {
    %c0_i32 = arith.constant 0 : i32
    %c0_i32_0 = arith.constant 0 : i32
    %c0_i32_1 = arith.constant 0 : i32
    return %arg0, %c0_i32, %c0_i32_0 : i32, i32, i32
  }
}

</mosaic_0001>

<bundles_post_ra>
// kernel: tpu_custom_call.1
= control target key start
LH: loop header
LB: loop body
LE: loop exit
PB: predicated region body
PF: predicated region fallthrough
CT: control target
= control target key end

     0   :  { %s5217_s0 = inlined_call_operand.vmem [shape: f32[2,8,128], index: 0, kind: input, shape index: {}]   ;;  %s5218_s1 = inlined_call_operand.vmem [shape: f32[2,8,8], index: 1, kind: input, shape index: {}]   ;;  %s5219_s2 = inlined_call_operand.vmem [shape: f32[2,16,128], index: 2, kind: input, shape index: {}]   ;;  %s5220_s3 = inlined_call_operand.vmem [shape: f32[2,8,16], index: 3, kind: input, shape index: {}]   ;;  %s5221_s4 = inlined_call_operand.vmem [shape: f32[1,128], index: 4, kind: input, shape index: {}]   ;;  %s5222_s5 = inlined_call_operand.vmem [shape: f32[1,128], index: 5, kind: input, shape index: {}]   ;;  %s5223_s6 = inlined_call_operand.vmem [shape: f32[1,128], index: 6, kind: input, shape index: {}]   ;;  %s5224_s7 = inlined_call_operand.vmem [shape: f32[1,128], index: 7, kind: input, shape index: {}]   ;;  %s5225_s8 = inlined_call_operand.vmem [shape: f32[1,128], index: 8, kind: input, shape index: {}]   ;;  %s5226_s9 = inlined_call_operand.vmem [shape: f32[1,128], index: 9, kind: input, shape index: {}]   ;;  %s5227_s10 = inlined_call_operand.vmem [shape: f32[4,128,32], index: 10, kind: input, shape index: {}]   ;;  %s5228_s11 = inlined_call_operand.vmem [shape: f32[4,128,32], index: 11, kind: input, shape index: {}]   ;;  %s5229_s12 = inlined_call_operand.vmem [shape: f32[4,128,32], index: 12, kind: input, shape index: {}]   ;;  %s5230_s13 = inlined_call_operand.vmem [shape: f32[4,32,128], index: 13, kind: input, shape index: {}]   ;;  %s5231_s14 = inlined_call_operand.vmem [shape: f32[1,128], index: 14, kind: input, shape index: {}]   ;;  %s5232_s15 = inlined_call_operand.vmem [shape: f32[4,128,32], index: 15, kind: input, shape index: {}]   ;;  %s5233_s16 = inlined_call_operand.vmem [shape: f32[4,128,32], index: 16, kind: input, shape index: {}]   ;;  %s5234_s17 = inlined_call_operand.vmem [shape: f32[4,128,32], index: 17, kind: input, shape index: {}]   ;;  %s5235_s18 = inlined_call_operand.vmem [shape: f32[4,32,128], index: 18, kind: input, shape index: {}]   ;;  %s5236_s19 = inlined_call_operand.vmem [shape: f32[1,128], index: 19, kind: input, shape index: {}]   ;;  %s5237_s20 = inlined_call_operand.vmem [shape: f32[128,256], index: 20, kind: input, shape index: {}]   ;;  %s5238_s21 = inlined_call_operand.vmem [shape: f32[1,256], index: 21, kind: input, shape index: {}]   ;;  %s5239_s22 = inlined_call_operand.vmem [shape: f32[256,128], index: 22, kind: input, shape index: {}]   ;;  %s5240_s23 = inlined_call_operand.vmem [shape: f32[1,128], index: 23, kind: input, shape index: {}]   ;;  %s5241_s24 = inlined_call_operand.hbm [shape: f32[2,8,128], index: 24, kind: output, shape index: {}]  }
   0x1   :  { %5250 = sst [smem:[#allocation12_spill]] %s5217_s0 }
   0x2   :  { %5251 = sst [smem:[#allocation13_spill]] %s5218_s1 }
   0x3   :  { %5252 = sst [smem:[#allocation14_spill]] %s5219_s2 }
   0x4   :  { %5253 = sst [smem:[#allocation15_spill]] %s5220_s3 }
   0x5   :  { %5254 = sst [smem:[#allocation16_spill]] %s5221_s4 }
   0x6   :  { %5255 = sst [smem:[#allocation17_spill]] %s5222_s5 }
   0x7   :  { %5256 = sst [smem:[#allocation18_spill]] %s5223_s6 }
   0x8   :  { %5257 = sst [smem:[#allocation19_spill]] %s5224_s7 }
   0x9   :  { %5258 = sst [smem:[#allocation20_spill]] %s5225_s8 }
   0xa   :  { %5259 = sst [smem:[#allocation21_spill]] %s5227_s10 }
   0xb   :  { %29 = vsyncpa [#allocation3], 0 }
   0xc   :  { %31 = vsyncpa [#allocation3 + $0x1], 0  ;;  %s3475_s5 = smov 0   ;;  %s3477_s26 = smov 0  }
   0xd   :  { %s3479_s27 = smov 0   ;;  %s3481_s28 = smov 0  }
   0xe LB: > { %5260 = sst [smem:[#allocation5_spill]] %s3334_s5  ;;  %s3496_s6 = sadd.s32 4294967295, %s3346_s28   ;;  %s3346_s28 = sphi %s3481_s28, %s5283_s28   ;;  %s3342_s27 = sphi %s3479_s27, %s5285_s27   ;;  %s3338_s26 = sphi %s3477_s26, %s5287_s26   ;;  %s3334_s5 = sphi %s3475_s5, %s5286_s5  }
   0xf   : > { %5261 = sst [smem:[#allocation6_spill]] %s3342_s27  ;;  %s2825_s2 = sadd.s32 4294967294, %s3346_s28  }
  0x10   : > { %5262 = sst [smem:[#allocation7_spill]] %s3346_s28  ;;  %s3500_s29 = sadd.s32 1, %s3346_s28  }
  0x11   : > { %5263 = sst [smem:[#allocation8_spill]] %s3500_s29  ;;  %s568_s0 = sadd.s32 1, %s3342_s27 }
  0x12   : > { %s565_s7 = ssub.s32 %s3346_s28, %s3500_s29  ;;  %p578_p0 = scmp.ne.s32.totalorder %s3342_s27, %s3338_s26 }
  0x13   : > { %p566_p1 = scmp.eq.s32.totalorder %s565_s7, 0  ;;  %p579_p2 = scmp.eq.s32.totalorder %s3496_s6, 1 }
  0x14   : > { %p584_p3 = scmp.ne.s32.totalorder %s3338_s26, %s3334_s5  ;;  %p585_p4 = scmp.eq.s32.totalorder %s2825_s2, 1 }
  0x15   : > { %s3511_s30 = scalar_select %p566_p1, %s3342_s27, %s568_s0  }
  0x16   : > { %p3513_p5 = por %p579_p2, %p578_p0  ;;  %p3517_p6 = por %p585_p4, %p584_p3 }
  0x17   : > { %5264 = sst [smem:[#allocation9_spill]] %s3511_s30  ;;  %p2828_p7 = scmp.ge.s32.totalorder %s3346_s28, 1 }
  0x18   : > { %s5265_s3 = scalar_select %p3513_p5, 1, 0 }
  0x19   : > { %s5267_s25 = scalar_select %p3517_p6, 1, 0 }
  0x1a   : > { %5266 = sst [smem:[#allocation10_spill]] %s5265_s3  ;;  %p692_p8 = scmp.lt.s32.totalorder %s3346_s28, 3 }
  0x1b   : > { %5268 = sst [smem:[#allocation11_spill]] %s5267_s25 }
  0x1c   : > { %p693_p9 = pnand %p2828_p7, %p692_p8 }
  0x1d   : > { %p770_p10 = scmp.lt.s32.totalorder (!%p693_p9), %s3496_s6, 1  ;;  %s5269_s0 = sld [smem:[#allocation12_spill]] (!%p693_p9) }
  0x1e   : > { %696 = sbr.rel (%p693_p9) target bundleno = 6332 (0x18bc), region = 116  ;;  %s5270_s10 = sld [smem:[#allocation21_spill]] (!%p693_p9) }
  0x1f   : > { %s5271_s29 = sld [smem:[#allocation16_spill]] (!%p693_p9) }
  0x20   : > { %s5272_s1 = sld [smem:[#allocation17_spill]] (!%p693_p9) }
  0x21   : > { %s5273_s27 = sld [smem:[#allocation13_spill]] (!%p693_p9) }
  0x22   : > { %s5275_s3 = sld [smem:[#allocation18_spill]] (!%p693_p9) }
  0x23   : > { %s3525_s8 = scalar_select %p770_p10, %s3496_s6, 1  ;;  %v3348_v1 = vmov 128.0   ;;  %v883_v4 = vld [vmem:[%s5228_s11 + $0x78] sm:$0xff]  ;;  %v882_v6 = vld [vmem:[%s5228_s11 + $0x70] sm:$0xff]  ;;  %v881_v7 = vld [vmem:[%s5228_s11 + $0x68] sm:$0xff]  ;;  %vm940_vm4 = vcmask 261120  }
  0x24   : > { %3238 = vrcp.f32 %v3348_v1  ;;  %v846_v2 = vld [vmem:[%s5270_s10 + $0x78] sm:$0xff]  ;;  %v845_v3 = vld [vmem:[%s5270_s10 + $0x70] sm:$0xff]  ;;  %v844_v5 = vld [vmem:[%s5270_s10 + $0x68] sm:$0xff]  ;;  %884 = vmatpush.msra.mxu1 %v883_v4  ;;  %vm967_vm6 = vcmask 64512   ;;  %vm1813_vm11 = vcmask 130048  }
  0x25   : > { %s3528_s4 = sshll.u32 %s3525_s8, 3  ;;  %847 = vmatpush.msra.mxu0 %v846_v2  ;;  %v843_v9 = vld [vmem:[%s5270_s10 + $0x60] sm:$0xff]  ;;  %v842_v11 = vld [vmem:[%s5270_s10 + $0x58] sm:$0xff]  ;;  %v841_v14 = vld [vmem:[%s5270_s10 + $0x50] sm:$0xff]  ;;  %s3187_s5 = sshll.u32 %s3525_s8, 4 }
  0x26   : > { %s3534_s7 = scalar_lea.vmem %s5269_s0, %s3528_s4  ;;  %885 = vmatpush.msra.mxu1 %v882_v6  ;;  %v880_v10 = vld [vmem:[%s5228_s11 + $0x60] sm:$0xff]  ;;  %v879_v13 = vld [vmem:[%s5228_s11 + $0x58] sm:$0xff]  ;;  %v878_v15 = vld [vmem:[%s5228_s11 + $0x50] sm:$0xff]  ;;  %s3184_s0 = sshll.u32 %s3496_s6, 3 }
  0x27   : > { %v3537_v0 = vld [vmem:[%s3534_s7] sm:$0xff]  ;;  %848 = vmatpush.msra.mxu0 %v845_v3  ;;  %v919_v16 = vld [vmem:[%s5229_s12 + $0x78] sm:$0xff]  ;;  %v840_v17 = vld [vmem:[%s5270_s10 + $0x48] sm:$0xff]  ;;  %s777_s30 = scalar_lea.vmem %s5273_s27, %s3528_s4  ;;  %s2725_s27 = scalar_lea.hbm %s5241_s24, %s3184_s0 }
  0x28   : > { %792 = vadd.xlane.f32.xlu0 %v3537_v0  ;;  %886 = vmatpush.msra.mxu1 %v881_v7  ;;  %v918_v18 = vld [vmem:[%s5229_s12 + $0x70] sm:$0xff]  ;;  %v877_v20 = vld [vmem:[%s5228_s11 + $0x48] sm:$0xff]  ;;  %v839_v21 = vld [vmem:[%s5270_s10 + $0x40] sm:$0xff] }
  0x29   : > { %849 = vmatpush.msra.mxu0 %v844_v5  ;;  %920 = vmatpush.msra.mxu2 %v919_v16  ;;  %v876_v22 = vld [vmem:[%s5228_s11 + $0x40] sm:$0xff]  ;;  %v838_v23 = vld [vmem:[%s5270_s10 + $0x38] sm:$0xff]  ;;  %v837_v26 = vld [vmem:[%s5270_s10 + $0x30] sm:$0xff] }
  0x2a   : > { %v3239_v8 = vpop.eup %3238  ;;  %887 = vmatpush.msra.mxu1 %v880_v10  ;;  %v875_v25 = vld [vmem:[%s5228_s11 + $0x38] sm:$0xff]  ;;  %v874_v27 = vld [vmem:[%s5228_s11 + $0x30] sm:$0xff]  ;;  %v836_v28 = vld [vmem:[%s5270_s10 + $0x28] sm:$0xff] }
  0x2b   : > { %v795_v12 = vmul.f32 128.0, %v3239_v8  ;;  %850 = vmatpush.msra.mxu0 %v843_v9  ;;  %921 = vmatpush.msra.mxu2 %v918_v18  ;;  %v873_v30 = vld [vmem:[%s5228_s11 + $0x28] sm:$0xff]  ;;  %vm799_vm0 = vweird.f32 %v3239_v8  ;;  %v835_v31 = vld [vmem:[%s5270_s10 + $0x20] sm:$0xff]  ;;  %v834_v33 = vld [vmem:[%s5270_s10 + $0x18] sm:$0xff] }
  0x2c   : > { %888 = vmatpush.msra.mxu1 %v879_v13  ;;  %v872_v32 = vld [vmem:[%s5228_s11 + $0x20] sm:$0xff]  ;;  %v871_v35 = vld [vmem:[%s5228_s11 + $0x18] sm:$0xff]  ;;  %v833_v36 = vld [vmem:[%s5270_s10 + $0x10] sm:$0xff] }
  0x2d   : > { %851 = vmatpush.msra.mxu0 %v842_v11  ;;  %v796_v19 = vsub.f32 1.0, %v795_v12  ;;  %v832_v39 = vld [vmem:[%s5270_s10 + $0x8] sm:$0xff]  ;;  %v831_v41 = vld [vmem:[%s5270_s10] sm:$0xff]  ;;  %v2869_v42 = vld [vmem:[%s5228_s11 + $0xf8] sm:$0xff] }
  0x2e   : > { %889 = vmatpush.msra.mxu1 %v878_v15  ;;  %v2868_v44 = vld [vmem:[%s5228_s11 + $0xf0] sm:$0xff]  ;;  %v917_v46 = vld [vmem:[%s5229_s12 + $0x68] sm:$0xff]  ;;  %v916_v49 = vld [vmem:[%s5229_s12 + $0x60] sm:$0xff] }
  0x2f   : > { %852 = vmatpush.msra.mxu0 %v841_v14  ;;  %v797_v24 = vmul.f32 %v3239_v8, %v796_v19  ;;  %v870_v45 = vld [vmem:[%s5228_s11 + $0x10] sm:$0xff]  ;;  %v2867_v47 = vld [vmem:[%s5228_s11 + $0xe8] sm:$0xff]  ;;  %922 = vmatpush.msra.mxu2 %v917_v46  ;;  %v2866_v50 = vld [vmem:[%s5228_s11 + $0xe0] sm:$0xff] }
  0x30   : > { %890 = vmatpush.msra.mxu1 %v877_v20  ;;  %v869_v48 = vld [vmem:[%s5228_s11 + $0x8] sm:$0xff]  ;;  %v868_v51 = vld [vmem:[%s5228_s11] sm:$0xff]  ;;  %v915_v52 = vld [vmem:[%s5229_s12 + $0x58] sm:$0xff] }
  0x31   : > { %853 = vmatpush.msra.mxu0 %v840_v17  ;;  %v798_v29 = vadd.f32 %v3239_v8, %v797_v24  ;;  %923 = vmatpush.msra.mxu2 %v916_v49  ;;  %v2865_v53 = vld [vmem:[%s5228_s11 + $0xd8] sm:$0xff]  ;;  %v914_v55 = vld [vmem:[%s5229_s12 + $0x50] sm:$0xff]  ;;  %v913_v58 = vld [vmem:[%s5229_s12 + $0x48] sm:$0xff] }
  0x32   : > { %891 = vmatpush.msra.mxu1 %v876_v22  ;;  %v2885_v54 = vld [vmem:[%s5229_s12 + $0xf8] sm:$0xff]  ;;  %v2864_v56 = vld [vmem:[%s5228_s11 + $0xd0] sm:$0xff]  ;;  %v2863_v59 = vld [vmem:[%s5228_s11 + $0xc8] sm:$0xff] }
  0x33   : > { %854 = vmatpush.msra.mxu0 %v839_v21  ;;  %v3621_v34 = vsel %vm799_vm0, %v3239_v8, %v798_v29  ;;  %924 = vmatpush.msra.mxu2 %v915_v52  ;;  %v2884_v57 = vld [vmem:[%s5229_s12 + $0xf0] sm:$0xff]  ;;  %v2883_v60 = vld [vmem:[%s5229_s12 + $0xe8] sm:$0xff]  ;;  %v912_v61 = vld [vmem:[%s5229_s12 + $0x40] sm:$0xff] }
  0x34   : > { %892 = vmatpush.msra.mxu1 %v875_v25  ;;  %v2862_v62 = vld [vmem:[%s5228_s11 + $0xc0] sm:$0xff]  ;;  %v2861_v1 = vld [vmem:[%s5228_s11 + $0xb8] sm:$0xff]  ;;  %v910_v3 = vld [vmem:[%s5229_s12 + $0x30] sm:$0xff] }
  0x35   : > { %855 = vmatpush.msra.mxu0 %v838_v23  ;;  %925 = vmatpush.msra.mxu2 %v914_v55  ;;  %v2882_v63 = vld [vmem:[%s5229_s12 + $0xe0] sm:$0xff]  ;;  %v2881_v2 = vld [vmem:[%s5229_s12 + $0xd8] sm:$0xff]  ;;  %v2860_v4 = vld [vmem:[%s5228_s11 + $0xb0] sm:$0xff] }
  0x36   : > { %893 = vmatpush.msra.mxu1 %v874_v27  ;;  %v2880_v5 = vld [vmem:[%s5229_s12 + $0xd0] sm:$0xff]  ;;  %v909_v6 = vld [vmem:[%s5229_s12 + $0x28] sm:$0xff]  ;;  %v908_v9 = vld [vmem:[%s5229_s12 + $0x20] sm:$0xff] }
  0x37   : > { %856 = vmatpush.msra.mxu0 %v837_v26  ;;  %926 = vmatpush.msra.mxu2 %v913_v58  ;;  %v2859_v7 = vld [vmem:[%s5228_s11 + $0xa8] sm:$0xff]  ;;  %v2858_v10 = vld [vmem:[%s5228_s11 + $0xa0] sm:$0xff]  ;;  %v907_v12 = vld [vmem:[%s5229_s12 + $0x18] sm:$0xff] }
  0x38   : > { %894 = vmatpush.msra.mxu1 %v873_v30  ;;  %v2879_v8 = vld [vmem:[%s5229_s12 + $0xc8] sm:$0xff]  ;;  %v2878_v11 = vld [vmem:[%s5229_s12 + $0xc0] sm:$0xff]  ;;  %v2857_v13 = vld [vmem:[%s5228_s11 + $0x98] sm:$0xff] }
  0x39   : > { %857 = vmatpush.msra.mxu0 %v836_v28  ;;  %927 = vmatpush.msra.mxu2 %v912_v61  ;;  %v2877_v14 = vld [vmem:[%s5229_s12 + $0xb8] sm:$0xff]  ;;  %v906_v15 = vld [vmem:[%s5229_s12 + $0x10] sm:$0xff]  ;;  %v905_v18 = vld [vmem:[%s5229_s12 + $0x8] sm:$0xff] }
  0x3a   : > { %895 = vmatpush.msra.mxu1 %v872_v32  ;;  %v2856_v16 = vld [vmem:[%s5228_s11 + $0x90] sm:$0xff]  ;;  %v2855_v19 = vld [vmem:[%s5228_s11 + $0x88] sm:$0xff]  ;;  %v904_v21 = vld [vmem:[%s5229_s12] sm:$0xff] }
  0x3b   : > { %858 = vmatpush.msra.mxu0 %v835_v31  ;;  %v2876_v17 = vld [vmem:[%s5229_s12 + $0xb0] sm:$0xff]  ;;  %v2875_v20 = vld [vmem:[%s5229_s12 + $0xa8] sm:$0xff]  ;;  %v2854_v22 = vld [vmem:[%s5228_s11 + $0x80] sm:$0xff] }
  0x3c   : > { %896 = vmatpush.msra.mxu1 %v871_v35  ;;  %v2874_v23 = vld [vmem:[%s5229_s12 + $0xa0] sm:$0xff]  ;;  %v2873_v24 = vld [vmem:[%s5229_s12 + $0x98] sm:$0xff]  ;;  %v2872_v26 = vld [vmem:[%s5229_s12 + $0x90] sm:$0xff] }
  0x3d   : > { %859 = vmatpush.msra.mxu0 %v834_v33  ;;  %v2871_v28 = vld [vmem:[%s5229_s12 + $0x88] sm:$0xff]  ;;  %v2870_v30 = vld [vmem:[%s5229_s12 + $0x80] sm:$0xff]  ;;  %v2941_v46 = vld [vmem:[%s5229_s12 + $0x170] sm:$0xff] }
  0x3e   : > { %897 = vmatpush.msra.mxu1 %v870_v45  ;;  %v2942_v45 = vld [vmem:[%s5229_s12 + $0x178] sm:$0xff]  ;;  %v2937_v49 = vld [vmem:[%s5229_s12 + $0x150] sm:$0xff]  ;;  %v2931_v55 = vld [vmem:[%s5229_s12 + $0x120] sm:$0xff] }
  0x3f   : > { %860 = vmatpush.msra.mxu0 %v833_v36  ;;  %v2934_v52 = vld [vmem:[%s5229_s12 + $0x138] sm:$0xff]  ;;  %v2928_v58 = vld [vmem:[%s5229_s12 + $0x108] sm:$0xff] }
  0x40   : > { %898 = vmatpush.msra.mxu1 %v869_v48  ;;  %v2938_v48 = vld [vmem:[%s5229_s12 + $0x158] sm:$0xff] }
  0x41   : > { %861 = vmatpush.msra.mxu0 %v832_v39 }
  0x42   : > { %899 = vmatpush.msra.mxu1 %v868_v51  ;;  %v2935_v51 = vld [vmem:[%s5229_s12 + $0x140] sm:$0xff] }
  0x43   : > { %862 = vmatpush.msra.mxu0 %v831_v41  ;;  %v3230_v41 = vld [vmem:[%s5272_s1] ss:$0 sm:$0xff] }
  0x44   : > { %1098 = vmatpush.msrb.mxu1 %v2885_v54  ;;  %v2932_v54 = vld [vmem:[%s5229_s12 + $0x128] sm:$0xff] }
  0x45   : > { %1061 = vmatpush.msrb.mxu0 %v2869_v42 }
  0x46   : > { %1099 = vmatpush.msrb.mxu1 %v2884_v57  ;;  %v2929_v57 = vld [vmem:[%s5229_s12 + $0x110] sm:$0xff] }
  0x47   : > { %1062 = vmatpush.msrb.mxu0 %v2868_v44 }
  0x48   : > { %1100 = vmatpush.msrb.mxu1 %v2883_v60 }
  0x49   : > { %1063 = vmatpush.msrb.mxu0 %v2867_v47  ;;  %v2939_v47 = vld [vmem:[%s5229_s12 + $0x160] sm:$0xff] }
  0x4a   : > { %1101 = vmatpush.msrb.mxu1 %v2882_v63 }
  0x4b   : > { %1064 = vmatpush.msrb.mxu0 %v2866_v50  ;;  %v2936_v50 = vld [vmem:[%s5229_s12 + $0x148] sm:$0xff] }
  0x4c   : > { %1102 = vmatpush.msrb.mxu1 %v2881_v2  ;;  %v790_v2 = vld [vmem:[%s777_s30] sm:$0xff]  ;;  %s5276_s30 = sld [smem:[#allocation19_spill]] }
  0x4d   : > { %1065 = vmatpush.msrb.mxu0 %v2865_v53  ;;  %v2933_v53 = vld [vmem:[%s5229_s12 + $0x130] sm:$0xff]  ;;  %vm829_vm5 = vcmp.gt.f32.partialorder %v790_v2, 0.0  ;;  %v2912_v2 = vld [vmem:[%s5228_s11 + $0x108] sm:$0xff] }
  0x4e   : > { %1103 = vmatpush.msrb.mxu1 %v2880_v5 }
  0x4f   : > { %1066 = vmatpush.msrb.mxu0 %v2864_v56  ;;  %v2930_v56 = vld [vmem:[%s5229_s12 + $0x118] sm:$0xff] }
  0x50   : > { %1104 = vmatpush.msrb.mxu1 %v2879_v8  ;;  %v2853_v8 = vld [vmem:[%s5270_s10 + $0xf8] sm:$0xff] }
  0x51   : > { %1067 = vmatpush.msrb.mxu0 %v2863_v59  ;;  %v2927_v59 = vld [vmem:[%s5229_s12 + $0x100] sm:$0xff] }
  0x52   : > { %1105 = vmatpush.msrb.mxu1 %v2878_v11  ;;  %v2850_v11 = vld [vmem:[%s5270_s10 + $0xe0] sm:$0xff] }
  0x53   : > { %1068 = vmatpush.msrb.mxu0 %v2862_v62 }
  0x54   : > { %1106 = vmatpush.msrb.mxu1 %v2877_v14  ;;  %v2847_v14 = vld [vmem:[%s5270_s10 + $0xc8] sm:$0xff] }
  0x55   : > { %1069 = vmatpush.msrb.mxu0 %v2861_v1 }
  0x56   : > { %1107 = vmatpush.msrb.mxu1 %v2876_v17 }
  0x57   : > { %1070 = vmatpush.msrb.mxu0 %v2860_v4 }
  0x58   : > { %1108 = vmatpush.msrb.mxu1 %v2875_v20  ;;  %v2846_v20 = vld [vmem:[%s5270_s10 + $0xc0] sm:$0xff] }
  0x59   : > { %1071 = vmatpush.msrb.mxu0 %v2859_v7 }
  0x5a   : > { %1109 = vmatpush.msrb.mxu1 %v2874_v23  ;;  %v2843_v23 = vld [vmem:[%s5270_s10 + $0xa8] sm:$0xff] }
  0x5b   : > { %1072 = vmatpush.msrb.mxu0 %v2858_v10  ;;  %v2851_v10 = vld [vmem:[%s5270_s10 + $0xe8] sm:$0xff] }
  0x5c   : > { %1110 = vmatpush.msrb.mxu1 %v2873_v24  ;;  %v2842_v24 = vld [vmem:[%s5270_s10 + $0xa0] sm:$0xff] }
  0x5d   : > { %1073 = vmatpush.msrb.mxu0 %v2857_v13  ;;  %v2848_v13 = vld [vmem:[%s5270_s10 + $0xd0] sm:$0xff] }
  0x5e   : > { %1111 = vmatpush.msrb.mxu1 %v2872_v26  ;;  %v2840_v26 = vld [vmem:[%s5270_s10 + $0x90] sm:$0xff] }
  0x5f   : > { %1074 = vmatpush.msrb.mxu0 %v2856_v16 }
  0x60   : > { %1112 = vmatpush.msrb.mxu1 %v2871_v28  ;;  %v2838_v28 = vld [vmem:[%s5270_s10 + $0x80] sm:$0xff] }
  0x61   : > { %1075 = vmatpush.msrb.mxu0 %v2855_v19 }
  0x62   : > { %1113 = vmatpush.msrb.mxu1 %v2870_v30 }
  0x63   : > { %1076 = vmatpush.msrb.mxu0 %v2854_v22  ;;  %v2844_v22 = vld [vmem:[%s5270_s10 + $0xb0] sm:$0xff] }
  0x9b   : > { %v793_v37 = vpop.xlane.xlu0 %792 }
  0x9c   : > { %v801_v38 = vmul.f32 %v3621_v34, %v793_v37 }
  0x9e   : > { %v3634_v40 = vsub.f32 %v3537_v0, %v801_v38  ;;  %v911_v0 = vld [vmem:[%s5229_s12 + $0x38] sm:$0xff]  ;;  %v3229_v38 = vld [vmem:[%s5271_s29] ss:$0 sm:$0xff]  ;;  %s5274_s29 = sld [smem:[#allocation14_spill]] }
  0x9f   : > { %928 = vmatpush.msra.mxu2 %v911_v0 }
  0xa0   : > { %v803_v43 = vmul.f32 %v3634_v40, %v3634_v40 }
  0xa1   : > { %929 = vmatpush.msra.mxu2 %v910_v3  ;;  %v3349_v3 = vmov -1e+30  }
  0xa2   : > { %804 = vadd.xlane.f32.xlu0 %v803_v43  ;;  %v3860_v4 = vsel %vm829_vm5, 0.0, %v3349_v3 }
  0xa3   : > { %930 = vmatpush.msra.mxu2 %v909_v6 }
  0xa4   : > { %s4303_s25 = scalar_lea.vmem %s5274_s29, %s3187_s5 }
  0xa5   : > { %931 = vmatpush.msra.mxu2 %v908_v9  ;;  %v2852_v9 = vld [vmem:[%s5270_s10 + $0xf0] sm:$0xff] }
  0xa7   : > { %932 = vmatpush.msra.mxu2 %v907_v12  ;;  %v2849_v12 = vld [vmem:[%s5270_s10 + $0xd8] sm:$0xff] }
  0xa9   : > { %933 = vmatpush.msra.mxu2 %v906_v15 }
  0xab   : > { %934 = vmatpush.msra.mxu2 %v905_v18 }
  0xad   : > { %935 = vmatpush.msra.mxu2 %v904_v21  ;;  %v2845_v21 = vld [vmem:[%s5270_s10 + $0xb8] sm:$0xff] }
 0x115   : > { %v805_v25 = vpop.xlane.xlu0 %804 }
 0x116   : > { %v806_v27 = vmul.f32 %v805_v25, %v3621_v34  ;;  %v2841_v25 = vld [vmem:[%s5270_s10 + $0x98] sm:$0xff] }
 0x118   : > { %v807_v29 = vadd.f32 1e-05, %v806_v27  ;;  %v2839_v27 = vld [vmem:[%s5270_s10 + $0x88] sm:$0xff] }
 0x11a   : > { %3240 = vrsqrt.f32 %v807_v29  ;;  %vm814_vm2 = vweird.f32 %v807_v29 }
 0x120   : > { %v3241_v31 = vpop.eup %3240 }
 0x121   : > { %v809_v32 = vmul.f32 %v3241_v31, %v807_v29  ;;  %vm815_vm1 = vweird.f32 %v3241_v31 }
 0x122   : > { %vm816_vm3 = vmor %vm814_vm2, %vm815_vm1 }
 0x123   : > { %v810_v33 = vmul.f32 %v3241_v31, %v809_v32 }
 0x125   : > { %v811_v35 = vmul.f32 0.5, %v810_v33 }
 0x127   : > { %v812_v36 = vsub.f32 1.5, %v811_v35 }
 0x129   : > { %v813_v37 = vmul.f32 %v3241_v31, %v812_v36 }
 0x12b   : > { %v817_v39 = vsel %vm816_vm3, %v3241_v31, %v813_v37 }
 0x12c   : > { %v818_v42 = vmul.f32 %v817_v39, %v3634_v40  ;;  %v2940_v40 = vld [vmem:[%s5229_s12 + $0x168] sm:$0xff] }
 0x12e   : > { %v823_v43 = vmul.f32 %v3229_v38, %v818_v42 }
 0x130   : > { %v3796_v44 = vadd.f32 %v3230_v41, %v823_v43 }
 0x132   : > { %863 = vmatmul.f32.vlgmr.msra.gmra.mxu0 %v3796_v44  ;;  %900 = vmatmul.f32.vlgmr.msra.gmra.mxu1 %v3796_v44 }
 0x133   : > { %936 = vmatmul.f32.vlgmr.msra.gmra.mxu2 %v3796_v44  ;;  %1321 = vmatpush.msra.mxu0 %v2942_v45 }
 0x135   : > { %1322 = vmatpush.msra.mxu0 %v2941_v46  ;;  %v1005_v46 = vld [vmem:[%s5230_s13 + $0x18] sm:$0xff] }
 0x137   : > { %1323 = vmatpush.msra.mxu0 %v2940_v40  ;;  %v1004_v40 = vld [vmem:[%s5230_s13 + $0x10] sm:$0xff] }
 0x139   : > { %1324 = vmatpush.msra.mxu0 %v2939_v47  ;;  %v1003_v47 = vld [vmem:[%s5230_s13 + $0x8] sm:$0xff] }
 0x13a   : > { %1077 = vmatmul.f32.vlgmr.msrb.gmra.mxu0 %v3796_v44  ;;  %1114 = vmatmul.f32.vlgmr.msrb.gmra.mxu1 %v3796_v44 }
 0x13b   : > { %1325 = vmatpush.msra.mxu0 %v2938_v48  ;;  %v1002_v48 = vld [vmem:[%s5230_s13] sm:$0xff] }
 0x13d   : > { %1326 = vmatpush.msra.mxu0 %v2937_v49 }
 0x13f   : > { %1327 = vmatpush.msra.mxu0 %v2936_v50 }
 0x141   : > { %1328 = vmatpush.msra.mxu0 %v2935_v51 }
 0x143   : > { %1329 = vmatpush.msra.mxu0 %v2934_v52  ;;  %v2926_v52 = vld [vmem:[%s5228_s11 + $0x178] sm:$0xff] }
 0x145   : > { %1330 = vmatpush.msra.mxu0 %v2933_v53  ;;  %v2925_v53 = vld [vmem:[%s5228_s11 + $0x170] sm:$0xff] }
 0x147   : > { %1331 = vmatpush.msra.mxu0 %v2932_v54  ;;  %v2924_v54 = vld [vmem:[%s5228_s11 + $0x168] sm:$0xff] }
 0x149   : > { %1332 = vmatpush.msra.mxu0 %v2931_v55  ;;  %v2923_v55 = vld [vmem:[%s5228_s11 + $0x160] sm:$0xff] }
 0x14b   : > { %1333 = vmatpush.msra.mxu0 %v2930_v56  ;;  %v2922_v56 = vld [vmem:[%s5228_s11 + $0x158] sm:$0xff] }
 0x14d   : > { %1334 = vmatpush.msra.mxu0 %v2929_v57  ;;  %v2921_v57 = vld [vmem:[%s5228_s11 + $0x150] sm:$0xff] }
 0x14f   : > { %1335 = vmatpush.msra.mxu0 %v2928_v58  ;;  %v2920_v58 = vld [vmem:[%s5228_s11 + $0x148] sm:$0xff] }
 0x151   : > { %1336 = vmatpush.msra.mxu0 %v2927_v59  ;;  %v2919_v59 = vld [vmem:[%s5228_s11 + $0x140] sm:$0xff] }
 0x152   : > { %1337 = vmatmul.f32.vlgmr.msra.gmra.mxu0 %v3796_v44 }
 0x1af   : > { %v864_v60 = vpop.f32.mrf.mxu0  ;;  %v901_v61 = vpop.f32.mrf.mxu1 }
 0x1b0   : > { %v867_v62 = vmul.f32 0.17677669, %v864_v60  ;;  %2835 = vmatpush.xpose.msk.msra.mxu3 %vm940_vm4, %v901_v61  ;;  %v2918_v60 = vld [vmem:[%s5228_s11 + $0x138] sm:$0xff]  ;;  %v2917_v61 = vld [vmem:[%s5228_s11 + $0x130] sm:$0xff] }
 0x1b3   : > { %2836 = vmatmul.msk.f32.vlgmr.msra.gmra.mxu3 %vm940_vm4, %v867_v62  ;;  %v2916_v62 = vld [vmem:[%s5228_s11 + $0x128] sm:$0xff] }
 0x1b6   : > { %v937_v63 = vpop.f32.mrf.mxu2 }
 0x1b7   : > { %997 = vmatpush.msrb.mxu3 %v937_v63  ;;  %v1078_v0 = vpop.f32.mrf.mxu0  ;;  %v1115_v1 = vpop.f32.mrf.mxu1  ;;  %v2915_v63 = vld [vmem:[%s5228_s11 + $0x120] sm:$0xff] }
 0x1b8   : > { %2886 = vmatpush.xpose.msk.msrb.mxu2 %vm940_vm4, %v1078_v0  ;;  %v2914_v0 = vld [vmem:[%s5228_s11 + $0x118] sm:$0xff] }
 0x1b9   : > { %1023 = vmatpush.msra.mxu3 %v2853_v8  ;;  %v2892_v8 = vld [vmem:[%s5230_s13 + $0x38] sm:$0xff] }
 0x1bb   : > { %1024 = vmatpush.msra.mxu3 %v2852_v9  ;;  %v2891_v9 = vld [vmem:[%s5230_s13 + $0x30] sm:$0xff] }
 0x1bc   : > { %1173 = vmatpush.msra.mxu2 %v1115_v1  ;;  %v2913_v1 = vld [vmem:[%s5228_s11 + $0x110] sm:$0xff] }
 0x1bd   : > { %1025 = vmatpush.msra.mxu3 %v2851_v10  ;;  %v2996_v10 = vld [vmem:[%s5229_s12 + $0x1e8] sm:$0xff] }
 0x1bf   : > { %1026 = vmatpush.msra.mxu3 %v2850_v11  ;;  %v2890_v11 = vld [vmem:[%s5230_s13 + $0x28] sm:$0xff] }
 0x1c1   : > { %1027 = vmatpush.msra.mxu3 %v2849_v12  ;;  %v2995_v12 = vld [vmem:[%s5229_s12 + $0x1e0] sm:$0xff] }
 0x1c3   : > { %1028 = vmatpush.msra.mxu3 %v2848_v13  ;;  %v2889_v13 = vld [vmem:[%s5230_s13 + $0x20] sm:$0xff] }
 0x1c5   : > { %1029 = vmatpush.msra.mxu3 %v2847_v14  ;;  %v2910_v14 = vld [vmem:[%s5270_s10 + $0x178] sm:$0xff] }
 0x1c7   : > { %1030 = vmatpush.msra.mxu3 %v2846_v20  ;;  %v2907_v20 = vld [vmem:[%s5270_s10 + $0x160] sm:$0xff] }
 0x1c9   : > { %1031 = vmatpush.msra.mxu3 %v2845_v21  ;;  %v2991_v21 = vld [vmem:[%s5229_s12 + $0x1c0] sm:$0xff] }
 0x1cb   : > { %1032 = vmatpush.msra.mxu3 %v2844_v22  ;;  %v2906_v22 = vld [vmem:[%s5270_s10 + $0x158] sm:$0xff] }
 0x1cd   : > { %1033 = vmatpush.msra.mxu3 %v2843_v23  ;;  %v2990_v23 = vld [vmem:[%s5229_s12 + $0x1b8] sm:$0xff] }
 0x1cf   : > { %1034 = vmatpush.msra.mxu3 %v2842_v24  ;;  %v2905_v24 = vld [vmem:[%s5270_s10 + $0x150] sm:$0xff] }
 0x1d1   : > { %1035 = vmatpush.msra.mxu3 %v2841_v25  ;;  %v2989_v25 = vld [vmem:[%s5229_s12 + $0x1b0] sm:$0xff] }
 0x1d3   : > { %1036 = vmatpush.msra.mxu3 %v2840_v26  ;;  %v2904_v26 = vld [vmem:[%s5270_s10 + $0x148] sm:$0xff] }
 0x1d5   : > { %1037 = vmatpush.msra.mxu3 %v2839_v27  ;;  %v2988_v27 = vld [vmem:[%s5229_s12 + $0x1a8] sm:$0xff] }
 0x1d7   : > { %1038 = vmatpush.msra.mxu3 %v2838_v28  ;;  %v2903_v28 = vld [vmem:[%s5270_s10 + $0x140] sm:$0xff] }
 0x236   : > { %v964_v5 = vpop.f32.mrf.mxu3 }
 0x237   : > { %v965_v6 = vadd.f32 %v964_v5, %v3860_v4  ;;  %v2911_v5 = vld [vmem:[%s5228_s11 + $0x100] sm:$0xff] }
 0x239   : > { %v968_v7 = vsel %vm967_vm6, %v965_v6, -inf }
 0x23a   : > { %969 = vmax.xlane.f32.xlu1 %v968_v7  ;;  %v2997_v7 = vld [vmem:[%s5229_s12 + $0x1f0] sm:$0xff] }
 0x2ad   : > { %v970_v15 = vpop.xlane.xlu1 %969 }
 0x2ae   : > { %v971_v16 = vsub.f32 %v965_v6, %v970_v15  ;;  %v2998_v6 = vld [vmem:[%s5229_s12 + $0x1f8] sm:$0xff] }
 0x2af   : > { %v2994_v15 = vld [vmem:[%s5229_s12 + $0x1d8] sm:$0xff] }
 0x2b0   : > { %v972_v17 = vmul.f32 1.442695, %v971_v16  ;;  %v2909_v16 = vld [vmem:[%s5270_s10 + $0x170] sm:$0xff] }
 0x2b2   : > { %3242 = vpow2.f32 %v972_v17  ;;  %v2993_v17 = vld [vmem:[%s5229_s12 + $0x1d0] sm:$0xff] }
 0x2b8   : > { %v3243_v18 = vpop.eup %3242 }
 0x2b9   : > { %v974_v19 = vsel %vm967_vm6, %v3243_v18, 0.0 }
 0x2ba   : > { %975 = vadd.xlane.f32.xlu1 %v974_v19  ;;  %v2992_v19 = vld [vmem:[%s5229_s12 + $0x1c8] sm:$0xff] }
 0x32d   : > { %v976_v29 = vpop.xlane.xlu1 %975 }
 0x32e   : > { %3244 = vrcp.f32 %v976_v29  ;;  %v2987_v29 = vld [vmem:[%s5229_s12 + $0x1a0] sm:$0xff] }
 0x334   : > { %v3245_v30 = vpop.eup %3244 }
 0x335   : > { %v978_v31 = vmul.f32 %v3245_v30, %v3243_v18  ;;  %v2908_v18 = vld [vmem:[%s5270_s10 + $0x168] sm:$0xff]  ;;  %v2902_v30 = vld [vmem:[%s5270_s10 + $0x138] sm:$0xff] }
 0x337   : > { %2837 = vmatmul.msk.f32.vlgmr.msrb.gmra.mxu3 %vm967_vm6, %v978_v31  ;;  %v2986_v31 = vld [vmem:[%s5229_s12 + $0x198] sm:$0xff] }
 0x338   : > { %1198 = vmatpush.msrb.mxu3 %v2892_v8 }
 0x33a   : > { %1199 = vmatpush.msrb.mxu3 %v2891_v9 }
 0x33c   : > { %1200 = vmatpush.msrb.mxu3 %v2890_v11 }
 0x33e   : > { %1201 = vmatpush.msrb.mxu3 %v2889_v13  ;;  %v2949_v13 = vld [vmem:[%s5230_s13 + $0x58] sm:$0xff] }
 0x33f   : > { %1039 = vmatmul.f32.vlgmr.msra.gmra.mxu3 %v3796_v44 }
 0x340   : > { %1246 = vmatpush.msra.mxu3 %v2910_v14  ;;  %v2948_v14 = vld [vmem:[%s5230_s13 + $0x50] sm:$0xff] }
 0x342   : > { %1247 = vmatpush.msra.mxu3 %v2909_v16  ;;  %v2946_v16 = vld [vmem:[%s5230_s13 + $0x40] sm:$0xff] }
 0x344   : > { %1248 = vmatpush.msra.mxu3 %v2908_v18 }
 0x346   : > { %1249 = vmatpush.msra.mxu3 %v2907_v20  ;;  %v2982_v20 = vld [vmem:[%s5228_s11 + $0x1f8] sm:$0xff] }
 0x348   : > { %1250 = vmatpush.msra.mxu3 %v2906_v22  ;;  %v2980_v22 = vld [vmem:[%s5228_s11 + $0x1e8] sm:$0xff] }
 0x34a   : > { %1251 = vmatpush.msra.mxu3 %v2905_v24  ;;  %v2978_v24 = vld [vmem:[%s5228_s11 + $0x1d8] sm:$0xff] }
 0x34c   : > { %1252 = vmatpush.msra.mxu3 %v2904_v26  ;;  %v2976_v26 = vld [vmem:[%s5228_s11 + $0x1c8] sm:$0xff] }
 0x34e   : > { %1253 = vmatpush.msra.mxu3 %v2903_v28  ;;  %v2974_v28 = vld [vmem:[%s5228_s11 + $0x1b8] sm:$0xff] }
 0x350   : > { %1254 = vmatpush.msra.mxu3 %v2902_v30  ;;  %v2972_v30 = vld [vmem:[%s5228_s11 + $0x1a8] sm:$0xff] }
 0x3ba   : > { %v999_v32 = vpop.f32.mrf.mxu3 }
 0x3c2   : > { %v1040_v33 = vpop.f32.mrf.mxu3 }
 0x3c3   : > { %v1043_v35 = vmul.f32 0.17677669, %v1040_v33  ;;  %v2985_v33 = vld [vmem:[%s5229_s12 + $0x190] sm:$0xff] }
 0x3c5   : > { %2887 = vmatmul.msk.f32.vlgmr.msrb.gmra.mxu2 %vm940_vm4, %v1043_v35  ;;  %v2900_v35 = vld [vmem:[%s5270_s10 + $0x128] sm:$0xff] }
 0x3c6   : > { %1221 = vmatpush.msrb.mxu2 %v1005_v46 }
 0x3c8   : > { %1222 = vmatpush.msrb.mxu2 %v1004_v40  ;;  %v2965_v40 = vld [vmem:[%s5270_s10 + $0x1f0] sm:$0xff] }
 0x3ca   : > { %1223 = vmatpush.msrb.mxu2 %v1003_v47  ;;  %v2964_v47 = vld [vmem:[%s5270_s10 + $0x1e8] sm:$0xff] }
 0x3cc   : > { %1224 = vmatpush.msrb.mxu2 %v1002_v48  ;;  %v2963_v48 = vld [vmem:[%s5270_s10 + $0x1e0] sm:$0xff] }
 0x448   : > { %v1141_v36 = vpop.f32.mrf.mxu2 }
 0x449   : > { %v1142_v37 = vadd.f32 %v1141_v36, %v3860_v4  ;;  %v2984_v36 = vld [vmem:[%s5229_s12 + $0x188] sm:$0xff] }
 0x44b   : > { %v1144_v38 = vsel %vm967_vm6, %v1142_v37, -inf }
 0x44c   : > { %1145 = vmax.xlane.f32.xlu2 %v1144_v38  ;;  %v2983_v38 = vld [vmem:[%s5229_s12 + $0x180] sm:$0xff] }
 0x4bf   : > { %v1146_v39 = vpop.xlane.xlu2 %1145 }
 0x4c0   : > { %v1147_v41 = vsub.f32 %v1142_v37, %v1146_v39  ;;  %v2899_v37 = vld [vmem:[%s5270_s10 + $0x120] sm:$0xff]  ;;  %v2898_v39 = vld [vmem:[%s5270_s10 + $0x118] sm:$0xff] }
 0x4c2   : > { %v1148_v42 = vmul.f32 1.442695, %v1147_v41  ;;  %v2897_v41 = vld [vmem:[%s5270_s10 + $0x110] sm:$0xff] }
 0x4c4   : > { %3246 = vpow2.f32 %v1148_v42  ;;  %v2896_v42 = vld [vmem:[%s5270_s10 + $0x108] sm:$0xff] }
 0x4ca   : > { %v3247_v43 = vpop.eup %3246 }
 0x4cb   : > { %v1150_v45 = vsel %vm967_vm6, %v3247_v43, 0.0 }
 0x4cc   : > { %1151 = vadd.xlane.f32.xlu2 %v1150_v45  ;;  %v2966_v45 = vld [vmem:[%s5270_s10 + $0x1f8] sm:$0xff] }
 0x53f   : > { %v1152_v49 = vpop.xlane.xlu2 %1151 }
 0x540   : > { %3248 = vrcp.f32 %v1152_v49  ;;  %v2962_v49 = vld [vmem:[%s5270_s10 + $0x1d8] sm:$0xff] }
 0x546   : > { %v3249_v50 = vpop.eup %3248 }
 0x547   : > { %v1154_v51 = vmul.f32 %v3249_v50, %v3247_v43  ;;  %v2895_v43 = vld [vmem:[%s5270_s10 + $0x100] sm:$0xff]  ;;  %v2961_v50 = vld [vmem:[%s5270_s10 + $0x1d0] sm:$0xff] }
 0x549   : > { %2888 = vmatmul.msk.f32.vlgmr.msra.gmra.mxu2 %vm967_vm6, %v1154_v51  ;;  %v2960_v51 = vld [vmem:[%s5270_s10 + $0x1c8] sm:$0xff] }
 0x54a   : > { %1284 = vmatpush.msra.mxu2 %v2926_v52  ;;  %v2959_v52 = vld [vmem:[%s5270_s10 + $0x1c0] sm:$0xff] }
 0x54c   : > { %1285 = vmatpush.msra.mxu2 %v2925_v53  ;;  %v2958_v53 = vld [vmem:[%s5270_s10 + $0x1b8] sm:$0xff] }
 0x54e   : > { %1286 = vmatpush.msra.mxu2 %v2924_v54  ;;  %v2957_v54 = vld [vmem:[%s5270_s10 + $0x1b0] sm:$0xff] }
 0x550   : > { %1287 = vmatpush.msra.mxu2 %v2923_v55  ;;  %v2956_v55 = vld [vmem:[%s5270_s10 + $0x1a8] sm:$0xff] }
 0x551   : > { %2894 = vmatmul.msk.f32.vlgmr.msrb.gmra.mxu2 %vm940_vm4, %v999_v32  ;;  %v2901_v32 = vld [vmem:[%s5270_s10 + $0x130] sm:$0xff] }
 0x552   : > { %1288 = vmatpush.msra.mxu2 %v2922_v56  ;;  %1255 = vmatpush.msra.mxu3 %v2901_v32  ;;  %v2955_v56 = vld [vmem:[%s5270_s10 + $0x1a0] sm:$0xff]  ;;  %v2970_v32 = vld [vmem:[%s5228_s11 + $0x198] sm:$0xff] }
 0x554   : > { %1289 = vmatpush.msra.mxu2 %v2921_v57  ;;  %1256 = vmatpush.msra.mxu3 %v2900_v35  ;;  %v2954_v57 = vld [vmem:[%s5270_s10 + $0x198] sm:$0xff]  ;;  %v2968_v35 = vld [vmem:[%s5228_s11 + $0x188] sm:$0xff] }
 0x556   : > { %1290 = vmatpush.msra.mxu2 %v2920_v58  ;;  %1257 = vmatpush.msra.mxu3 %v2899_v37 }
 0x558   : > { %1291 = vmatpush.msra.mxu2 %v2919_v59  ;;  %1258 = vmatpush.msra.mxu3 %v2898_v39  ;;  %v2953_v59 = vld [vmem:[%s5270_s10 + $0x190] sm:$0xff] }
 0x55a   : > { %1292 = vmatpush.msra.mxu2 %v2918_v60  ;;  %1259 = vmatpush.msra.mxu3 %v2897_v41  ;;  %v2952_v60 = vld [vmem:[%s5270_s10 + $0x188] sm:$0xff] }
 0x55c   : > { %1293 = vmatpush.msra.mxu2 %v2917_v61  ;;  %1260 = vmatpush.msra.mxu3 %v2896_v42  ;;  %v2951_v61 = vld [vmem:[%s5270_s10 + $0x180] sm:$0xff]  ;;  %s5277_s10 = sld [smem:[#allocation15_spill]] }
 0x55e   : > { %1294 = vmatpush.msra.mxu2 %v2916_v62  ;;  %1261 = vmatpush.msra.mxu3 %v2895_v43 }
 0x560   : > { %1295 = vmatpush.msra.mxu2 %v2915_v63  ;;  %v1338_v63 = vpop.f32.mrf.mxu0 }
 0x562   : > { %1296 = vmatpush.msra.mxu2 %v2914_v0 }
 0x564   : > { %1297 = vmatpush.msra.mxu2 %v2913_v1 }
 0x566   : > { %1298 = vmatpush.msra.mxu2 %v2912_v2 }
 0x568   : > { %1299 = vmatpush.msra.mxu2 %v2911_v5 }
 0x569   : > { %1300 = vmatmul.f32.vlgmr.msra.gmra.mxu2 %v3796_v44 }
 0x56a   : > { %1522 = vmatpush.msrb.mxu2 %v2998_v6 }
 0x56c   : > { %1523 = vmatpush.msrb.mxu2 %v2997_v7 }
 0x56e   : > { %1524 = vmatpush.msrb.mxu2 %v2996_v10 }
 0x570   : > { %1525 = vmatpush.msrb.mxu2 %v2995_v12 }
 0x572   : > { %1526 = vmatpush.msrb.mxu2 %v2994_v15  ;;  %v2947_v15 = vld [vmem:[%s5230_s13 + $0x48] sm:$0xff] }
 0x574   : > { %1527 = vmatpush.msrb.mxu2 %v2993_v17 }
 0x576   : > { %1528 = vmatpush.msrb.mxu2 %v2992_v19 }
 0x578   : > { %1529 = vmatpush.msrb.mxu2 %v2991_v21  ;;  %v2981_v21 = vld [vmem:[%s5228_s11 + $0x1f0] sm:$0xff] }
 0x57a   : > { %1530 = vmatpush.msrb.mxu2 %v2990_v23  ;;  %v2979_v23 = vld [vmem:[%s5228_s11 + $0x1e0] sm:$0xff] }
 0x57c   : > { %1531 = vmatpush.msrb.mxu2 %v2989_v25  ;;  %v2977_v25 = vld [vmem:[%s5228_s11 + $0x1d0] sm:$0xff] }
 0x57e   : > { %1532 = vmatpush.msrb.mxu2 %v2988_v27  ;;  %v2975_v27 = vld [vmem:[%s5228_s11 + $0x1c0] sm:$0xff] }
 0x580   : > { %1533 = vmatpush.msrb.mxu2 %v2987_v29  ;;  %v2973_v29 = vld [vmem:[%s5228_s11 + $0x1b0] sm:$0xff] }
 0x582   : > { %1534 = vmatpush.msrb.mxu2 %v2986_v31  ;;  %v2971_v31 = vld [vmem:[%s5228_s11 + $0x1a0] sm:$0xff] }
 0x584   : > { %1535 = vmatpush.msrb.mxu2 %v2985_v33  ;;  %v2969_v33 = vld [vmem:[%s5228_s11 + $0x190] sm:$0xff] }
 0x586   : > { %1536 = vmatpush.msrb.mxu2 %v2984_v36  ;;  %v2967_v36 = vld [vmem:[%s5228_s11 + $0x180] sm:$0xff] }
 0x588   : > { %1537 = vmatpush.msrb.mxu2 %v2983_v38 }
 0x589   : > { %1538 = vmatmul.f32.vlgmr.msrb.gmra.mxu2 %v3796_v44 }
 0x5cc   : > { %v1175_v46 = vpop.f32.mrf.mxu2 }
 0x5cd   : > { %2893 = vmatmul.msk.f32.vlgmr.msrb.gmra.mxu3 %vm940_vm4, %v1175_v46 }
 0x5ce   : > { %1447 = vmatpush.msrb.mxu3 %v2966_v45 }
 0x5d0   : > { %1448 = vmatpush.msrb.mxu3 %v2965_v40 }
 0x5d2   : > { %1449 = vmatpush.msrb.mxu3 %v2964_v47 }
 0x5d4   : > { %1450 = vmatpush.msrb.mxu3 %v2963_v48  ;;  %v4132_v58 = vpop.f32.mrf.mxu2 }
 0x5d5   : > { %1262 = vmatmul.f32.vlgmr.msra.gmra.mxu3 %v3796_v44 }
 0x5d6   : > { %1451 = vmatpush.msrb.mxu3 %v2962_v49 }
 0x5d8   : > { %1452 = vmatpush.msrb.mxu3 %v2961_v50 }
 0x5da   : > { %1453 = vmatpush.msrb.mxu3 %v2960_v51 }
 0x5dc   : > { %1454 = vmatpush.msrb.mxu3 %v2959_v52 }
 0x5de   : > { %1455 = vmatpush.msrb.mxu3 %v2958_v53  ;;  %v3005_v53 = vld [vmem:[%s5230_s13 + $0x78] sm:$0xff] }
 0x5e0   : > { %1456 = vmatpush.msrb.mxu3 %v2957_v54  ;;  %v3004_v54 = vld [vmem:[%s5230_s13 + $0x70] sm:$0xff] }
 0x5e2   : > { %1457 = vmatpush.msrb.mxu3 %v2956_v55 }
 0x5e4   : > { %1458 = vmatpush.msrb.mxu3 %v2955_v56 }
 0x5e6   : > { %1459 = vmatpush.msrb.mxu3 %v2954_v57 }
 0x5e8   : > { %1460 = vmatpush.msrb.mxu3 %v2953_v59 }
 0x5ea   : > { %1461 = vmatpush.msrb.mxu3 %v2952_v60  ;;  %v3231_v60 = vld [vmem:[%s5231_s14] ss:$0 sm:$0xff] }
 0x5ec   : > { %v1301_v62 = vpop.f32.mrf.mxu2  ;;  %1462 = vmatpush.msrb.mxu3 %v2951_v61 }
 0x5ed   : > { %2943 = vmatpush.xpose.msk.msra.mxu1 %vm940_vm4, %v1301_v62  ;;  %1463 = vmatmul.f32.vlgmr.msrb.gmra.mxu3 %v3796_v44 }
 0x5f1   : > { %1396 = vmatpush.msrb.mxu1 %v1338_v63 }
 0x60c   : > { %v1539_v45 = vpop.f32.mrf.mxu2 }
 0x650   : > { %v4145_v0 = vpop.f32.mrf.mxu3 }
 0x651   : > { %v1227_v38 = vadd.f32 %v4132_v58, %v4145_v0  ;;  %v3002_v58 = vld [vmem:[%s5230_s13 + $0x60] sm:$0xff] }
 0x652   : > { %v3282_v0 = vld [vmem:[%s3534_s7] sm:$0xff]  ;;  %s767_s7 = sand.u32 1, %s3338_s26  }
 0x653   : > { %s2829_s2 = sshll.u32 %s767_s7, 3  ;;  %s2715_s6 = scalar_lea.sflag [#allocation3], %s767_s7 }
 0x658   : > { %v1263_v1 = vpop.f32.mrf.mxu3 }
 0x659   : > { %v1266_v2 = vmul.f32 0.17677669, %v1263_v1 }
 0x65b   : > { %2944 = vmatmul.msk.f32.vlgmr.msra.gmra.mxu1 %vm940_vm4, %v1266_v2  ;;  %v1721_v2 = vld [vmem:[%s5233_s16 + $0x78] sm:$0xff] }
 0x65c   : > { %1421 = vmatpush.msra.mxu1 %v2949_v13  ;;  %v1714_v13 = vld [vmem:[%s5233_s16 + $0x40] sm:$0xff] }
 0x65e   : > { %1422 = vmatpush.msra.mxu1 %v2948_v14  ;;  %v1713_v14 = vld [vmem:[%s5233_s16 + $0x38] sm:$0xff] }
 0x660   : > { %1423 = vmatpush.msra.mxu1 %v2947_v15 }
 0x662   : > { %1424 = vmatpush.msra.mxu1 %v2946_v16 }
 0x670   : > { %v1464_v42 = vpop.f32.mrf.mxu3 }
 0x671   : > { %v1467_v46 = vmul.f32 0.17677669, %v1464_v42  ;;  %v1670_v42 = vld [vmem:[%s5232_s15 + $0x8] sm:$0xff] }
 0x6d8   : > { %v1364_v5 = vpop.f32.mrf.mxu1 }
 0x6d9   : > { %v1365_v6 = vadd.f32 %v1364_v5, %v3860_v4  ;;  %v1720_v5 = vld [vmem:[%s5233_s16 + $0x70] sm:$0xff] }
 0x6db   : > { %v1367_v7 = vsel %vm967_vm6, %v1365_v6, -inf }
 0x6dc   : > { %1368 = vmax.xlane.f32.xlu0 %v1367_v7  ;;  %v1684_v7 = vld [vmem:[%s5232_s15 + $0x78] sm:$0xff] }
 0x6dd   : > { %1685 = vmatpush.msra.mxu3 %v1684_v7  ;;  %v1753_v7 = vld [vmem:[%s5234_s17 + $0x40] sm:$0xff] }
 0x74f   : > { %v1369_v8 = vpop.xlane.xlu0 %1368 }
 0x750   : > { %v1370_v9 = vsub.f32 %v1365_v6, %v1369_v8  ;;  %v1719_v6 = vld [vmem:[%s5233_s16 + $0x68] sm:$0xff]  ;;  %v1683_v8 = vld [vmem:[%s5232_s15 + $0x70] sm:$0xff] }
 0x751   : > { %1686 = vmatpush.msra.mxu3 %v1683_v8  ;;  %v1752_v8 = vld [vmem:[%s5234_s17 + $0x38] sm:$0xff] }
 0x752   : > { %v1371_v10 = vmul.f32 1.442695, %v1370_v9  ;;  %v1718_v9 = vld [vmem:[%s5233_s16 + $0x60] sm:$0xff] }
 0x754   : > { %3250 = vpow2.f32 %v1371_v10  ;;  %v1717_v10 = vld [vmem:[%s5233_s16 + $0x58] sm:$0xff] }
 0x75a   : > { %v3251_v11 = vpop.eup %3250 }
 0x75b   : > { %v1373_v12 = vsel %vm967_vm6, %v3251_v11, 0.0 }
 0x75c   : > { %1374 = vadd.xlane.f32.xlu1 %v1373_v12  ;;  %v1715_v12 = vld [vmem:[%s5233_s16 + $0x48] sm:$0xff] }
 0x7cf   : > { %v1375_v17 = vpop.xlane.xlu1 %1374 }
 0x7d0   : > { %3252 = vrcp.f32 %v1375_v17 }
 0x7d6   : > { %v3253_v18 = vpop.eup %3252 }
 0x7d7   : > { %v1377_v19 = vmul.f32 %v3253_v18, %v3251_v11  ;;  %v1716_v11 = vld [vmem:[%s5233_s16 + $0x50] sm:$0xff] }
 0x7d9   : > { %2945 = vmatmul.msk.f32.vlgmr.msrb.gmra.mxu1 %vm967_vm6, %v1377_v19  ;;  %v1712_v19 = vld [vmem:[%s5233_s16 + $0x30] sm:$0xff] }
 0x7da   : > { %1485 = vmatpush.msrb.mxu1 %v2982_v20  ;;  %v1711_v20 = vld [vmem:[%s5233_s16 + $0x28] sm:$0xff] }
 0x7dc   : > { %1486 = vmatpush.msrb.mxu1 %v2981_v21  ;;  %v1710_v21 = vld [vmem:[%s5233_s16 + $0x20] sm:$0xff] }
 0x7de   : > { %1487 = vmatpush.msrb.mxu1 %v2980_v22  ;;  %v1682_v22 = vld [vmem:[%s5232_s15 + $0x68] sm:$0xff] }
 0x7df   : > { %1687 = vmatpush.msra.mxu3 %v1682_v22  ;;  %v3040_v22 = vld [vmem:[%s5233_s16 + $0xe8] sm:$0xff] }
 0x7e0   : > { %1488 = vmatpush.msrb.mxu1 %v2979_v23  ;;  %v1709_v23 = vld [vmem:[%s5233_s16 + $0x18] sm:$0xff] }
 0x7e2   : > { %1489 = vmatpush.msrb.mxu1 %v2978_v24  ;;  %v1681_v24 = vld [vmem:[%s5232_s15 + $0x60] sm:$0xff] }
 0x7e3   : > { %1688 = vmatpush.msra.mxu3 %v1681_v24  ;;  %v3038_v24 = vld [vmem:[%s5233_s16 + $0xd8] sm:$0xff] }
 0x7e4   : > { %1490 = vmatpush.msrb.mxu1 %v2977_v25  ;;  %v1708_v25 = vld [vmem:[%s5233_s16 + $0x10] sm:$0xff] }
 0x7e6   : > { %1491 = vmatpush.msrb.mxu1 %v2976_v26  ;;  %v1680_v26 = vld [vmem:[%s5232_s15 + $0x58] sm:$0xff] }
 0x7e7   : > { %1689 = vmatpush.msra.mxu3 %v1680_v26  ;;  %v3036_v26 = vld [vmem:[%s5233_s16 + $0xc8] sm:$0xff] }
 0x7e8   : > { %1492 = vmatpush.msrb.mxu1 %v2975_v27  ;;  %v1707_v27 = vld [vmem:[%s5233_s16 + $0x8] sm:$0xff] }
 0x7ea   : > { %1493 = vmatpush.msrb.mxu1 %v2974_v28  ;;  %v4315_v28 = vld [vmem:[%s4303_s25] sm:$0xff] }
 0x7ec   : > { %1494 = vmatpush.msrb.mxu1 %v2973_v29  ;;  %v1679_v29 = vld [vmem:[%s5232_s15 + $0x50] sm:$0xff] }
 0x7ed   : > { %1690 = vmatpush.msra.mxu3 %v1679_v29  ;;  %v3034_v29 = vld [vmem:[%s5233_s16 + $0xb8] sm:$0xff] }
 0x7ee   : > { %1495 = vmatpush.msrb.mxu1 %v2972_v30  ;;  %v1706_v30 = vld [vmem:[%s5233_s16] sm:$0xff] }
 0x7f0   : > { %1496 = vmatpush.msrb.mxu1 %v2971_v31  ;;  %v1678_v31 = vld [vmem:[%s5232_s15 + $0x48] sm:$0xff] }
 0x7f1   : > { %1691 = vmatpush.msra.mxu3 %v1678_v31  ;;  %v3032_v31 = vld [vmem:[%s5233_s16 + $0xa8] sm:$0xff] }
 0x7f2   : > { %1497 = vmatpush.msrb.mxu1 %v2970_v32  ;;  %v1677_v32 = vld [vmem:[%s5232_s15 + $0x40] sm:$0xff] }
 0x7f3   : > { %1692 = vmatpush.msra.mxu3 %v1677_v32 }
 0x7f4   : > { %1498 = vmatpush.msrb.mxu1 %v2969_v33  ;;  %v1676_v33 = vld [vmem:[%s5232_s15 + $0x38] sm:$0xff] }
 0x7f5   : > { %1693 = vmatpush.msra.mxu3 %v1676_v33 }
 0x7f6   : > { %1499 = vmatpush.msrb.mxu1 %v2968_v35  ;;  %v4334_v35 = vld [vmem:[%s4303_s25 + $0x8] sm:$0xff] }
 0x7f8   : > { %1500 = vmatpush.msrb.mxu1 %v2967_v36  ;;  %v1675_v36 = vld [vmem:[%s5232_s15 + $0x30] sm:$0xff] }
 0x7f9   : > { %1694 = vmatpush.msra.mxu3 %v1675_v36  ;;  %v3031_v36 = vld [vmem:[%s5233_s16 + $0xa0] sm:$0xff] }
 0x856   : > { %v1398_v37 = vpop.f32.mrf.mxu1 }
 0x857   : > { %2950 = vmatmul.msk.f32.vlgmr.msra.gmra.mxu1 %vm940_vm4, %v1398_v37  ;;  %v1674_v37 = vld [vmem:[%s5232_s15 + $0x28] sm:$0xff] }
 0x858   : > { %1695 = vmatpush.msra.mxu3 %v1674_v37 }
 0x85f   : > { %1501 = vmatmul.f32.vlgmr.msrb.gmra.mxu1 %v3796_v44 }
 0x8d4   : > { %v1426_v39 = vpop.f32.mrf.mxu1 }
 0x8d5   : > { %v1429_v41 = vadd.f32 %v1426_v39, %v1227_v38  ;;  %v1673_v38 = vld [vmem:[%s5232_s15 + $0x20] sm:$0xff]  ;;  %v1672_v39 = vld [vmem:[%s5232_s15 + $0x18] sm:$0xff] }
 0x8d6   : > { %1696 = vmatpush.msra.mxu3 %v1673_v38  ;;  %v3030_v38 = vld [vmem:[%s5233_s16 + $0x98] sm:$0xff] }
 0x8d8   : > { %1697 = vmatpush.msra.mxu3 %v1672_v39  ;;  %v3029_v39 = vld [vmem:[%s5233_s16 + $0x90] sm:$0xff] }
 0x8dc   : > { %v1502_v43 = vpop.f32.mrf.mxu1 }
 0x8dd   : > { %2999 = vmatpush.xpose.msk.msrb.mxu0 %vm940_vm4, %v1502_v43  ;;  %v1669_v43 = vld [vmem:[%s5232_s15] sm:$0xff] }
 0x8e0   : > { %3000 = vmatmul.msk.f32.vlgmr.msrb.gmra.mxu0 %vm940_vm4, %v1467_v46 }
 0x8e1   : > { %1597 = vmatpush.msra.mxu0 %v1539_v45 }
 0x8e3   : > { %1622 = vmatpush.msrb.mxu0 %v3005_v53 }
 0x8e5   : > { %1623 = vmatpush.msrb.mxu0 %v3004_v54 }
 0x95d   : > { %v1565_v40 = vpop.f32.mrf.mxu0 }
 0x95e   : > { %v1566_v47 = vadd.f32 %v1565_v40, %v3860_v4  ;;  %v3003_v4 = vld [vmem:[%s5230_s13 + $0x68] sm:$0xff] }
 0x95f   : > { %1624 = vmatpush.msrb.mxu0 %v3003_v4  ;;  %v3233_v4 = vld [vmem:[%s5276_s30] ss:$0 sm:$0xff]  ;;  %s786_s30 = scalar_lea.vmem %s5277_s10, %s3528_s4 }
 0x960   : > { %v1568_v48 = vsel %vm967_vm6, %v1566_v47, -inf }
 0x961   : > { %1569 = vmax.xlane.f32.xlu2 %v1568_v48  ;;  %1625 = vmatpush.msrb.mxu0 %v3002_v58 }
 0x9d4   : > { %v1570_v44 = vpop.xlane.xlu2 %1569 }
 0x9d5   : > { %v1571_v49 = vsub.f32 %v1566_v47, %v1570_v44 }
 0x9d7   : > { %v1572_v50 = vmul.f32 1.442695, %v1571_v49 }
 0x9d9   : > { %3254 = vpow2.f32 %v1572_v50 }
 0x9df   : > { %v3255_v51 = vpop.eup %3254 }
 0x9e0   : > { %v1574_v52 = vsel %vm967_vm6, %v3255_v51, 0.0 }
 0x9e1   : > { %1575 = vadd.xlane.f32.xlu0 %v1574_v52  ;;  %v3232_v52 = vld [vmem:[%s5275_s3] ss:$0 sm:$0xff] }
 0xa54   : > { %v1576_v55 = vpop.xlane.xlu0 %1575 }
 0xa55   : > { %3256 = vrcp.f32 %v1576_v55 }
 0xa5b   : > { %v3257_v56 = vpop.eup %3256 }
 0xa5c   : > { %v1578_v57 = vmul.f32 %v3257_v56, %v3255_v51 }
 0xa5e   : > { %3001 = vmatmul.msk.f32.vlgmr.msra.gmra.mxu0 %vm967_vm6, %v1578_v57 }
 0xa5f   : > { %1722 = vmatpush.msra.mxu0 %v1721_v2  ;;  %v1756_v2 = vld [vmem:[%s5234_s17 + $0x58] sm:$0xff] }
 0xa61   : > { %1723 = vmatpush.msra.mxu0 %v1720_v5  ;;  %v1755_v5 = vld [vmem:[%s5234_s17 + $0x50] sm:$0xff] }
 0xa63   : > { %1724 = vmatpush.msra.mxu0 %v1719_v6  ;;  %v1754_v6 = vld [vmem:[%s5234_s17 + $0x48] sm:$0xff] }
 0xa65   : > { %1725 = vmatpush.msra.mxu0 %v1718_v9  ;;  %v1751_v9 = vld [vmem:[%s5234_s17 + $0x30] sm:$0xff] }
 0xa67   : > { %1726 = vmatpush.msra.mxu0 %v1717_v10  ;;  %v1750_v10 = vld [vmem:[%s5234_s17 + $0x28] sm:$0xff] }
 0xa69   : > { %1727 = vmatpush.msra.mxu0 %v1716_v11  ;;  %v791_v11 = vld [vmem:[%s786_s30] sm:$0xff]  ;;  %s769_s30 = scalar_lea.vmem [#allocation2], %s2829_s2  ;;  %s3304_s2 = scalar_lea.hbm %s5241_s24, 16 }
 0xa6a   : > { %vm1667_vm10 = vcmp.gt.f32.partialorder %v791_v11, 0.0  ;;  %v3056_v11 = vld [vmem:[%s5234_s17 + $0xe8] sm:$0xff]  ;;  %s2727_s29 = sshll.u32 %s769_s30, 4  ;;  %s2728_s29 = int_to_ptr.vmem [resolvable:$true] %s2727_s29 }
 0xa6b   : > { %1728 = vmatpush.msra.mxu0 %v1715_v12  ;;  %v1749_v12 = vld [vmem:[%s5234_s17 + $0x20] sm:$0xff] }
 0xa6d   : > { %1729 = vmatpush.msra.mxu0 %v1714_v13  ;;  %v1748_v13 = vld [vmem:[%s5234_s17 + $0x18] sm:$0xff] }
 0xa6f   : > { %1730 = vmatpush.msra.mxu0 %v1713_v14  ;;  %v1747_v14 = vld [vmem:[%s5234_s17 + $0x10] sm:$0xff] }
 0xa71   : > { %1731 = vmatpush.msra.mxu0 %v1712_v19 }
 0xa73   : > { %1732 = vmatpush.msra.mxu0 %v1711_v20 }
 0xa75   : > { %1733 = vmatpush.msra.mxu0 %v1710_v21  ;;  %v3041_v21 = vld [vmem:[%s5233_s16 + $0xf0] sm:$0xff] }
 0xa77   : > { %1734 = vmatpush.msra.mxu0 %v1709_v23  ;;  %v3039_v23 = vld [vmem:[%s5233_s16 + $0xe0] sm:$0xff] }
 0xa79   : > { %1735 = vmatpush.msra.mxu0 %v1708_v25  ;;  %v3037_v25 = vld [vmem:[%s5233_s16 + $0xd0] sm:$0xff] }
 0xa7b   : > { %1736 = vmatpush.msra.mxu0 %v1707_v27  ;;  %v3035_v27 = vld [vmem:[%s5233_s16 + $0xc0] sm:$0xff] }
 0xa7d   : > { %1737 = vmatpush.msra.mxu0 %v1706_v30  ;;  %v3033_v30 = vld [vmem:[%s5233_s16 + $0xb0] sm:$0xff] }
 0xadb   : > { %v1599_v59 = vpop.f32.mrf.mxu0 }
 0xadc   : > { %3006 = vmatmul.msk.f32.vlgmr.msrb.gmra.mxu0 %vm940_vm4, %v1599_v59 }
 0xae4   : > { %1738 = vmatmul.f32.vlgmr.msra.gmra.mxu0 %v4315_v28 }
 0xaec   : > { %1741 = vmatmul.f32.gmra.mxu0 %v4334_v35 }
 0xb59   : > { %v1627_v61 = vpop.f32.mrf.mxu0 }
 0xb5a   : > { %v1630_v62 = vadd.f32 %v1627_v61, %v1429_v41  ;;  %v1671_v41 = vld [vmem:[%s5232_s15 + $0x10] sm:$0xff]  ;;  %v1760_v61 = vld [vmem:[%s5234_s17 + $0x78] sm:$0xff] }
 0xb5b   : > { %1698 = vmatpush.msra.mxu3 %v1671_v41  ;;  %1761 = vmatpush.msra.mxu1 %v1760_v61  ;;  %v3028_v41 = vld [vmem:[%s5233_s16 + $0x88] sm:$0xff]  ;;  %v3011_v61 = vld [vmem:[%s5232_s15 + $0x80] sm:$0xff] }
 0xb5c   : > { %v1635_v63 = vadd.f32 %v3231_v60, %v1630_v62  ;;  %v1759_v62 = vld [vmem:[%s5234_s17 + $0x70] sm:$0xff] }
 0xb5d   : > { %1699 = vmatpush.msra.mxu3 %v1670_v42  ;;  %1762 = vmatpush.msra.mxu1 %v1759_v62  ;;  %v3027_v42 = vld [vmem:[%s5233_s16 + $0x80] sm:$0xff] }
 0xb5e   : > { %v4239_v1 = vadd.f32 %v3282_v0, %v1635_v63  ;;  %v1758_v63 = vld [vmem:[%s5234_s17 + $0x68] sm:$0xff]  ;;  %v1757_v0 = vld [vmem:[%s5234_s17 + $0x60] sm:$0xff] }
 0xb5f   : > { %1700 = vmatpush.msra.mxu3 %v1669_v43  ;;  %1763 = vmatpush.msra.mxu1 %v1758_v63 }
 0xb60   : > { %1637 = vadd.xlane.f32.xlu1 %v4239_v1 }
 0xb61   : > { %v1739_v57 = vpop.f32.mrf.mxu0  ;;  %1764 = vmatpush.msra.mxu1 %v1757_v0 }
 0xb63   : > { %1765 = vmatpush.msra.mxu1 %v1756_v2 }
 0xb65   : > { %1766 = vmatpush.msra.mxu1 %v1755_v5 }
 0xb67   : > { %1767 = vmatpush.msra.mxu1 %v1754_v6 }
 0xb69   : > { %v1742_v58 = vpop.f32.mrf.mxu0  ;;  %1768 = vmatpush.msra.mxu1 %v1753_v7 }
 0xb6a   : > { %3007 = vmatpush.xpose.msk.msra.mxu2 %vm940_vm4, %v1742_v58  ;;  %v3014_v58 = vld [vmem:[%s5232_s15 + $0x98] sm:$0xff] }
 0xb6b   : > { %1769 = vmatpush.msra.mxu1 %v1752_v8 }
 0xb6d   : > { %1770 = vmatpush.msra.mxu1 %v1751_v9  ;;  %v3058_v9 = vld [vmem:[%s5234_s17 + $0xf8] sm:$0xff] }
 0xb6e   : > { %3008 = vmatpush.xpose.msk.msra.mxu2 %vm940_vm4, %v1739_v57  ;;  %v3015_v57 = vld [vmem:[%s5232_s15 + $0xa0] sm:$0xff]  ;;  %1947 = vmatpush.msrb.mxu0 %v3058_v9  ;;  %v3088_v9 = vld [vmem:[%s5233_s16 + $0x118] sm:$0xff] }
 0xb6f   : > { %1771 = vmatpush.msra.mxu1 %v1750_v10  ;;  %v3057_v10 = vld [vmem:[%s5234_s17 + $0xf0] sm:$0xff] }
 0xb70   : > { %1948 = vmatpush.msrb.mxu0 %v3057_v10  ;;  %v3076_v10 = vld [vmem:[%s5232_s15 + $0x138] sm:$0xff] }
 0xb71   : > { %1772 = vmatpush.msra.mxu1 %v1749_v12  ;;  %v3055_v12 = vld [vmem:[%s5234_s17 + $0xe0] sm:$0xff] }
 0xb72   : > { %1949 = vmatpush.msrb.mxu0 %v3056_v11  ;;  %v3087_v11 = vld [vmem:[%s5233_s16 + $0x110] sm:$0xff] }
 0xb73   : > { %1773 = vmatpush.msra.mxu1 %v1748_v13  ;;  %v3054_v13 = vld [vmem:[%s5234_s17 + $0xd8] sm:$0xff] }
 0xb74   : > { %1950 = vmatpush.msrb.mxu0 %v3055_v12  ;;  %v3075_v12 = vld [vmem:[%s5232_s15 + $0x130] sm:$0xff] }
 0xb75   : > { %1774 = vmatpush.msra.mxu1 %v1747_v14  ;;  %v3053_v14 = vld [vmem:[%s5234_s17 + $0xd0] sm:$0xff] }
 0xb76   : > { %1951 = vmatpush.msrb.mxu0 %v3054_v13  ;;  %v3086_v13 = vld [vmem:[%s5233_s16 + $0x108] sm:$0xff] }
 0xb78   : > { %1952 = vmatpush.msrb.mxu0 %v3053_v14  ;;  %v3074_v14 = vld [vmem:[%s5232_s15 + $0x128] sm:$0xff] }
 0xbd3   : > { %v1638_v15 = vpop.xlane.xlu1 %1637 }
 0xbd4   : > { %v1639_v16 = vmul.f32 %v1638_v15, %v3621_v34  ;;  %v4419_v15 = vsel %vm1667_vm10, 0.0, %v3349_v3  ;;  %v3042_v3 = vld [vmem:[%s5233_s16 + $0xf8] sm:$0xff] }
 0xbd5   : > { %1907 = vmatpush.msrb.mxu3 %v3042_v3  ;;  %v3047_v3 = vld [vmem:[%s5234_s17 + $0xa0] sm:$0xff] }
 0xbd6   : > { %v4277_v17 = vsub.f32 %v4239_v1, %v1639_v16  ;;  %v1746_v16 = vld [vmem:[%s5234_s17 + $0x8] sm:$0xff] }
 0xbd7   : > { %1775 = vmatpush.msra.mxu1 %v1746_v16  ;;  %1908 = vmatpush.msrb.mxu3 %v3041_v21  ;;  %v3052_v16 = vld [vmem:[%s5234_s17 + $0xc8] sm:$0xff]  ;;  %v3046_v21 = vld [vmem:[%s5234_s17 + $0x98] sm:$0xff] }
 0xbd8   : > { %v1641_v18 = vmul.f32 %v4277_v17, %v4277_v17  ;;  %1953 = vmatpush.msrb.mxu0 %v3052_v16  ;;  %v3085_v16 = vld [vmem:[%s5233_s16 + $0x100] sm:$0xff] }
 0xbd9   : > { %1909 = vmatpush.msrb.mxu3 %v3040_v22  ;;  %v3045_v22 = vld [vmem:[%s5234_s17 + $0x90] sm:$0xff] }
 0xbda   : > { %1642 = vadd.xlane.f32.xlu2 %v1641_v18  ;;  %v1745_v18 = vld [vmem:[%s5234_s17] sm:$0xff] }
 0xbdb   : > { %1776 = vmatpush.msra.mxu1 %v1745_v18  ;;  %1910 = vmatpush.msrb.mxu3 %v3039_v23  ;;  %v3050_v18 = vld [vmem:[%s5234_s17 + $0xb8] sm:$0xff]  ;;  %v3044_v23 = vld [vmem:[%s5234_s17 + $0x88] sm:$0xff] }
 0xbdc   : > { %1777 = vmatmul.f32.vlgmr.msra.gmra.mxu1 %v4315_v28 }
 0xbdd   : > { %1911 = vmatpush.msrb.mxu3 %v3038_v24 }
 0xbdf   : > { %1912 = vmatpush.msrb.mxu3 %v3037_v25  ;;  %v3043_v25 = vld [vmem:[%s5234_s17 + $0x80] sm:$0xff] }
 0xbe1   : > { %1913 = vmatpush.msrb.mxu3 %v3036_v26 }
 0xbe3   : > { %1914 = vmatpush.msrb.mxu3 %v3035_v27 }
 0xbe4   : > { %1780 = vmatmul.f32.gmra.mxu1 %v4334_v35 }
 0xbe5   : > { %1915 = vmatpush.msrb.mxu3 %v3034_v29 }
 0xbe7   : > { %1916 = vmatpush.msrb.mxu3 %v3033_v30 }
 0xbe9   : > { %1917 = vmatpush.msrb.mxu3 %v3032_v31 }
 0xbeb   : > { %1918 = vmatpush.msrb.mxu3 %v3031_v36 }
 0xbed   : > { %1919 = vmatpush.msrb.mxu3 %v3030_v38  ;;  %v1851_v38 = vld [vmem:[%s5235_s18 + $0x18] sm:$0xff] }
 0xbef   : > { %1920 = vmatpush.msrb.mxu3 %v3029_v39  ;;  %v1850_v39 = vld [vmem:[%s5235_s18 + $0x10] sm:$0xff] }
 0xbf1   : > { %1921 = vmatpush.msrb.mxu3 %v3028_v41  ;;  %v1849_v41 = vld [vmem:[%s5235_s18 + $0x8] sm:$0xff] }
 0xbf3   : > { %1922 = vmatpush.msrb.mxu3 %v3027_v42  ;;  %v1848_v42 = vld [vmem:[%s5235_s18] sm:$0xff] }
 0xc4d   : > { %v1643_v45 = vpop.xlane.xlu2 %1642 }
 0xc4e   : > { %v1644_v46 = vmul.f32 %v1643_v45, %v3621_v34 }
 0xc50   : > { %v1645_v40 = vadd.f32 1e-05, %v1644_v46 }
 0xc52   : > { %3258 = vrsqrt.f32 %v1645_v40  ;;  %vm1652_vm8 = vweird.f32 %v1645_v40 }
 0xc58   : > { %v3259_v47 = vpop.eup %3258 }
 0xc59   : > { %v1647_v48 = vmul.f32 %v3259_v47, %v1645_v40  ;;  %vm1653_vm7 = vweird.f32 %v3259_v47  ;;  %v1778_v43 = vpop.f32.mrf.mxu1 }
 0xc5a   : > { %vm1654_vm9 = vmor %vm1652_vm8, %vm1653_vm7 }
 0xc5b   : > { %v1648_v44 = vmul.f32 %v3259_v47, %v1647_v48  ;;  %v3025_v48 = vld [vmem:[%s5232_s15 + $0xf0] sm:$0xff] }
 0xc5d   : > { %v1649_v49 = vmul.f32 0.5, %v1648_v44  ;;  %v3024_v44 = vld [vmem:[%s5232_s15 + $0xe8] sm:$0xff] }
 0xc5f   : > { %v1650_v50 = vsub.f32 1.5, %v1649_v49  ;;  %v3023_v49 = vld [vmem:[%s5232_s15 + $0xe0] sm:$0xff] }
 0xc61   : > { %v1651_v51 = vmul.f32 %v3259_v47, %v1650_v50  ;;  %v1781_v40 = vpop.f32.mrf.mxu1  ;;  %v3022_v50 = vld [vmem:[%s5232_s15 + $0xd8] sm:$0xff] }
 0xc62   : > { %1842 = vmatpush.msrb.mxu2 %v1781_v40  ;;  %v3066_v40 = vld [vmem:[%s5235_s18 + $0x38] sm:$0xff] }
 0xc63   : > { %v1655_v53 = vsel %vm1654_vm9, %v3259_v47, %v1651_v51  ;;  %v3026_v47 = vld [vmem:[%s5232_s15 + $0xf8] sm:$0xff]  ;;  %v3021_v51 = vld [vmem:[%s5232_s15 + $0xd0] sm:$0xff] }
 0xc64   : > { %v1656_v54 = vmul.f32 %v1655_v53, %v4277_v17  ;;  %1843 = vmatpush.msrb.mxu2 %v1778_v43  ;;  %v3019_v53 = vld [vmem:[%s5232_s15 + $0xc0] sm:$0xff]  ;;  %v3100_v43 = vld [vmem:[%s5233_s16 + $0x178] sm:$0xff] }
 0xc66   : > { %v1661_v55 = vmul.f32 %v3232_v52, %v1656_v54  ;;  %v3020_v52 = vld [vmem:[%s5232_s15 + $0xc8] sm:$0xff]  ;;  %v3018_v54 = vld [vmem:[%s5232_s15 + $0xb8] sm:$0xff] }
 0xc68   : > { %v4366_v56 = vadd.f32 %v3233_v4, %v1661_v55  ;;  %v3017_v4 = vld [vmem:[%s5232_s15 + $0xb0] sm:$0xff]  ;;  %v3016_v55 = vld [vmem:[%s5232_s15 + $0xa8] sm:$0xff] }
 0xc6a   : > { %1701 = vmatmul.f32.vlgmr.msra.gmra.mxu3 %v4366_v56 }
 0xc6b   : > { %2139 = vmatpush.msra.mxu3 %v3100_v43  ;;  %v3104_v43 = vld [vmem:[%s5234_s17 + $0x118] sm:$0xff] }
 0xc72   : > { %1923 = vmatmul.f32.vlgmr.msrb.gmra.mxu3 %v4315_v28 }
 0xc7a   : > { %1926 = vmatmul.f32.gmra.mxu3 %v4334_v35 }
 0xced   : > { %v1702_v59 = vpop.f32.mrf.mxu3 }
 0xcee   : > { %v1705_v60 = vmul.f32 0.17677669, %v1702_v59  ;;  %v3013_v59 = vld [vmem:[%s5232_s15 + $0x90] sm:$0xff] }
 0xcf0   : > { %3009 = vmatmul.msk.f32.vlgmr.msra.gmra.mxu2 %vm940_vm4, %v1705_v60  ;;  %v3012_v60 = vld [vmem:[%s5232_s15 + $0x88] sm:$0xff] }
 0xcf1   : > { %1869 = vmatpush.msra.mxu2 %v3026_v47  ;;  %v3065_v47 = vld [vmem:[%s5235_s18 + $0x30] sm:$0xff] }
 0xcf3   : > { %1870 = vmatpush.msra.mxu2 %v3025_v48  ;;  %v3097_v48 = vld [vmem:[%s5233_s16 + $0x160] sm:$0xff] }
 0xcf5   : > { %1871 = vmatpush.msra.mxu2 %v3024_v44  ;;  %v1924_v2 = vpop.f32.mrf.mxu3  ;;  %v3064_v44 = vld [vmem:[%s5235_s18 + $0x28] sm:$0xff] }
 0xcf7   : > { %1872 = vmatpush.msra.mxu2 %v3023_v49  ;;  %v3096_v49 = vld [vmem:[%s5233_s16 + $0x158] sm:$0xff] }
 0xcf9   : > { %1873 = vmatpush.msra.mxu2 %v3022_v50  ;;  %v3063_v50 = vld [vmem:[%s5235_s18 + $0x20] sm:$0xff] }
 0xcfb   : > { %1874 = vmatpush.msra.mxu2 %v3021_v51  ;;  %v3084_v51 = vld [vmem:[%s5232_s15 + $0x178] sm:$0xff] }
 0xcfd   : > { %1875 = vmatpush.msra.mxu2 %v3020_v52  ;;  %v1927_v5 = vpop.f32.mrf.mxu3  ;;  %v3095_v52 = vld [vmem:[%s5233_s16 + $0x150] sm:$0xff] }
 0xcfe   : > { %3059 = vmatpush.xpose.msk.msrb.mxu1 %vm940_vm4, %v1927_v5 }
 0xcff   : > { %1876 = vmatpush.msra.mxu2 %v3019_v53  ;;  %v3083_v53 = vld [vmem:[%s5232_s15 + $0x170] sm:$0xff] }
 0xd01   : > { %1877 = vmatpush.msra.mxu2 %v3018_v54  ;;  %v3094_v54 = vld [vmem:[%s5233_s16 + $0x148] sm:$0xff] }
 0xd02   : > { %3060 = vmatpush.xpose.msk.msrb.mxu1 %vm940_vm4, %v1924_v2  ;;  %v3089_v2 = vld [vmem:[%s5233_s16 + $0x120] sm:$0xff] }
 0xd03   : > { %1878 = vmatpush.msra.mxu2 %v3017_v4  ;;  %v3082_v4 = vld [vmem:[%s5232_s15 + $0x168] sm:$0xff] }
 0xd05   : > { %1879 = vmatpush.msra.mxu2 %v3016_v55  ;;  %v3093_v55 = vld [vmem:[%s5233_s16 + $0x140] sm:$0xff] }
 0xd07   : > { %1880 = vmatpush.msra.mxu2 %v3015_v57  ;;  %v3081_v57 = vld [vmem:[%s5232_s15 + $0x160] sm:$0xff] }
 0xd09   : > { %1881 = vmatpush.msra.mxu2 %v3014_v58 }
 0xd0b   : > { %1882 = vmatpush.msra.mxu2 %v3013_v59  ;;  %v3092_v59 = vld [vmem:[%s5233_s16 + $0x138] sm:$0xff] }
 0xd0d   : > { %1883 = vmatpush.msra.mxu2 %v3012_v60  ;;  %v3080_v60 = vld [vmem:[%s5232_s15 + $0x158] sm:$0xff] }
 0xd0f   : > { %1884 = vmatpush.msra.mxu2 %v3011_v61  ;;  %v3091_v61 = vld [vmem:[%s5233_s16 + $0x130] sm:$0xff] }
 0xd73   : > { %v1810_v17 = vpop.f32.mrf.mxu2 }
 0xd74   : > { %v1811_v19 = vadd.f32 %v1810_v17, %v4419_v15  ;;  %v3051_v17 = vld [vmem:[%s5234_s17 + $0xc0] sm:$0xff] }
 0xd75   : > { %1954 = vmatpush.msrb.mxu0 %v3051_v17  ;;  %v3073_v17 = vld [vmem:[%s5232_s15 + $0x120] sm:$0xff] }
 0xd76   : > { %v1814_v20 = vsel %vm1813_vm11, %v1811_v19, -inf }
 0xd77   : > { %1815 = vmax.xlane.f32.xlu0 %v1814_v20  ;;  %1955 = vmatpush.msrb.mxu0 %v3050_v18  ;;  %v3048_v20 = vld [vmem:[%s5234_s17 + $0xa8] sm:$0xff]  ;;  %v3072_v18 = vld [vmem:[%s5232_s15 + $0x118] sm:$0xff] }
 0xdea   : > { %v1816_v32 = vpop.xlane.xlu0 %1815 }
 0xdeb   : > { %v1817_v33 = vsub.f32 %v1811_v19, %v1816_v32  ;;  %v3049_v19 = vld [vmem:[%s5234_s17 + $0xb0] sm:$0xff] }
 0xdec   : > { %1956 = vmatpush.msrb.mxu0 %v3049_v19  ;;  %v3071_v19 = vld [vmem:[%s5232_s15 + $0x110] sm:$0xff] }
 0xded   : > { %v1818_v37 = vmul.f32 1.442695, %v1817_v33 }
 0xdee   : > { %1957 = vmatpush.msrb.mxu0 %v3048_v20  ;;  %v3069_v20 = vld [vmem:[%s5232_s15 + $0x100] sm:$0xff] }
 0xdef   : > { %3260 = vpow2.f32 %v1818_v37 }
 0xdf0   : > { %1958 = vmatpush.msrb.mxu0 %v3047_v3 }
 0xdf2   : > { %1959 = vmatpush.msrb.mxu0 %v3046_v21 }
 0xdf4   : > { %1960 = vmatpush.msrb.mxu0 %v3045_v22 }
 0xdf5   : > { %v3261_v45 = vpop.eup %3260 }
 0xdf6   : > { %v1820_v46 = vsel %vm1813_vm11, %v3261_v45, 0.0  ;;  %1961 = vmatpush.msrb.mxu0 %v3044_v23 }
 0xdf7   : > { %1821 = vadd.xlane.f32.xlu1 %v1820_v46  ;;  %v3098_v46 = vld [vmem:[%s5233_s16 + $0x168] sm:$0xff] }
 0xdf8   : > { %1962 = vmatpush.msrb.mxu0 %v3043_v25 }
 0xdf9   : > { %1963 = vmatmul.f32.vlgmr.msrb.gmra.mxu0 %v4315_v28 }
 0xe01   : > { %1966 = vmatmul.f32.gmra.mxu0 %v4334_v35 }
 0xe6a   : > { %v1822_v62 = vpop.xlane.xlu1 %1821 }
 0xe6b   : > { %3262 = vrcp.f32 %v1822_v62  ;;  %v3079_v62 = vld [vmem:[%s5232_s15 + $0x150] sm:$0xff] }
 0xe71   : > { %v3263_v63 = vpop.eup %3262 }
 0xe72   : > { %v1824_v0 = vmul.f32 %v3263_v63, %v3261_v45  ;;  %v3099_v45 = vld [vmem:[%s5233_s16 + $0x170] sm:$0xff]  ;;  %v3090_v63 = vld [vmem:[%s5233_s16 + $0x128] sm:$0xff] }
 0xe73   : > { %2140 = vmatpush.msra.mxu3 %v3099_v45  ;;  %v3103_v45 = vld [vmem:[%s5234_s17 + $0x110] sm:$0xff] }
 0xe74   : > { %3010 = vmatmul.msk.f32.vlgmr.msrb.gmra.mxu2 %vm1813_vm11, %v1824_v0  ;;  %v3078_v0 = vld [vmem:[%s5232_s15 + $0x148] sm:$0xff] }
 0xe75   : > { %2053 = vmatpush.msrb.mxu2 %v3066_v40  ;;  %2141 = vmatpush.msra.mxu3 %v3098_v46  ;;  %v3102_v46 = vld [vmem:[%s5234_s17 + $0x108] sm:$0xff] }
 0xe76   : > { %v1964_v32 = vpop.f32.mrf.mxu0 }
 0xe77   : > { %2054 = vmatpush.msrb.mxu2 %v3065_v47  ;;  %2142 = vmatpush.msra.mxu3 %v3097_v48  ;;  %v3101_v47 = vld [vmem:[%s5234_s17 + $0x100] sm:$0xff] }
 0xe79   : > { %2055 = vmatpush.msrb.mxu2 %v3064_v44  ;;  %2143 = vmatpush.msra.mxu3 %v3096_v49 }
 0xe7b   : > { %2056 = vmatpush.msrb.mxu2 %v3063_v50  ;;  %2144 = vmatpush.msra.mxu3 %v3095_v52 }
 0xe7c   : > { %1885 = vmatmul.f32.vlgmr.msra.gmra.mxu2 %v4366_v56 }
 0xe7d   : > { %2101 = vmatpush.msra.mxu2 %v3084_v51  ;;  %2145 = vmatpush.msra.mxu3 %v3094_v54 }
 0xe7e   : > { %v1967_v37 = vpop.f32.mrf.mxu0 }
 0xe7f   : > { %2027 = vmatpush.msra.mxu1 %v1967_v37  ;;  %2102 = vmatpush.msra.mxu2 %v3083_v53  ;;  %v3108_v37 = vld [vmem:[%s5234_s17 + $0x138] sm:$0xff] }
 0xe80   : > { %2146 = vmatpush.msra.mxu3 %v3093_v55  ;;  %v3157_v55 = vld [vmem:[%s5233_s16 + $0x1f8] sm:$0xff] }
 0xe81   : > { %2028 = vmatpush.msra.mxu1 %v1964_v32  ;;  %2103 = vmatpush.msra.mxu2 %v3082_v4  ;;  %v3111_v32 = vld [vmem:[%s5234_s17 + $0x150] sm:$0xff] }
 0xe82   : > { %2147 = vmatpush.msra.mxu3 %v3092_v59  ;;  %v3154_v59 = vld [vmem:[%s5233_s16 + $0x1e0] sm:$0xff] }
 0xe83   : > { %2104 = vmatpush.msra.mxu2 %v3081_v57  ;;  %v3156_v57 = vld [vmem:[%s5233_s16 + $0x1f0] sm:$0xff] }
 0xe84   : > { %2148 = vmatpush.msra.mxu3 %v3091_v61  ;;  %v3123_v61 = vld [vmem:[%s5235_s18 + $0x50] sm:$0xff] }
 0xe85   : > { %2105 = vmatpush.msra.mxu2 %v3080_v60  ;;  %v3124_v60 = vld [vmem:[%s5235_s18 + $0x58] sm:$0xff] }
 0xe86   : > { %2149 = vmatpush.msra.mxu3 %v3090_v63  ;;  %v3122_v63 = vld [vmem:[%s5235_s18 + $0x48] sm:$0xff] }
 0xe87   : > { %2106 = vmatpush.msra.mxu2 %v3079_v62  ;;  %v3153_v62 = vld [vmem:[%s5233_s16 + $0x1d8] sm:$0xff] }
 0xe88   : > { %2150 = vmatpush.msra.mxu3 %v3089_v2  ;;  %v3121_v2 = vld [vmem:[%s5235_s18 + $0x40] sm:$0xff] }
 0xe89   : > { %2107 = vmatpush.msra.mxu2 %v3078_v0  ;;  %v3152_v0 = vld [vmem:[%s5233_s16 + $0x1d0] sm:$0xff] }
 0xe8a   : > { %2151 = vmatpush.msra.mxu3 %v3088_v9  ;;  %v3148_v9 = vld [vmem:[%s5233_s16 + $0x1b0] sm:$0xff] }
 0xe8c   : > { %2152 = vmatpush.msra.mxu3 %v3087_v11  ;;  %v3146_v11 = vld [vmem:[%s5233_s16 + $0x1a0] sm:$0xff] }
 0xe8e   : > { %2153 = vmatpush.msra.mxu3 %v3086_v13  ;;  %v3145_v13 = vld [vmem:[%s5233_s16 + $0x198] sm:$0xff] }
 0xe90   : > { %2154 = vmatpush.msra.mxu3 %v3085_v16  ;;  %v3143_v16 = vld [vmem:[%s5233_s16 + $0x188] sm:$0xff] }
 0xe91   : > { %2155 = vmatmul.f32.vlgmr.msra.gmra.mxu3 %v4315_v28 }
 0xe99   : > { %2158 = vmatmul.f32.gmra.mxu3 %v4334_v35 }
 0xef7   : > { %v4534_v6 = vpop.f32.mrf.mxu2 }
 0xeff   : > { %v1886_v7 = vpop.f32.mrf.mxu2 }
 0xf00   : > { %v1889_v8 = vmul.f32 0.17677669, %v1886_v7  ;;  %v3077_v7 = vld [vmem:[%s5232_s15 + $0x140] sm:$0xff] }
 0xf01   : > { %2108 = vmatpush.msra.mxu2 %v3077_v7  ;;  %v3150_v7 = vld [vmem:[%s5233_s16 + $0x1c0] sm:$0xff] }
 0xf02   : > { %3061 = vmatmul.msk.f32.vlgmr.msrb.gmra.mxu1 %vm940_vm4, %v1889_v8 }
 0xf03   : > { %2076 = vmatpush.msrb.mxu1 %v1851_v38  ;;  %2109 = vmatpush.msra.mxu2 %v3076_v10  ;;  %v3107_v38 = vld [vmem:[%s5234_s17 + $0x130] sm:$0xff]  ;;  %v3147_v10 = vld [vmem:[%s5233_s16 + $0x1a8] sm:$0xff] }
 0xf05   : > { %2077 = vmatpush.msrb.mxu1 %v1850_v39  ;;  %2110 = vmatpush.msra.mxu2 %v3075_v12  ;;  %v3106_v39 = vld [vmem:[%s5234_s17 + $0x128] sm:$0xff] }
 0xf07   : > { %2078 = vmatpush.msrb.mxu1 %v1849_v41  ;;  %2111 = vmatpush.msra.mxu2 %v3074_v14  ;;  %v3144_v14 = vld [vmem:[%s5233_s16 + $0x190] sm:$0xff] }
 0xf09   : > { %2079 = vmatpush.msrb.mxu1 %v1848_v42  ;;  %2112 = vmatpush.msra.mxu2 %v3073_v17  ;;  %v3105_v42 = vld [vmem:[%s5234_s17 + $0x120] sm:$0xff] }
 0xf0a   : > { %v3142_v17 = vld [vmem:[%s5233_s16 + $0x180] sm:$0xff] }
 0xf0b   : > { %2113 = vmatpush.msra.mxu2 %v3072_v18 }
 0xf0d   : > { %2114 = vmatpush.msra.mxu2 %v3071_v19 }
 0xf14   : > { %v2156_v21 = vpop.f32.mrf.mxu3 }
 0xf1c   : > { %v2159_v22 = vpop.f32.mrf.mxu3 }
 0xf7f   : > { %v1996_v24 = vpop.f32.mrf.mxu1 }
 0xf80   : > { %v1997_v26 = vadd.f32 %v1996_v24, %v4419_v15 }
 0xf82   : > { %v1999_v27 = vsel %vm1813_vm11, %v1997_v26, -inf }
 0xf83   : > { %2000 = vmax.xlane.f32.xlu2 %v1999_v27  ;;  %v3115_v27 = vld [vmem:[%s5234_s17 + $0x170] sm:$0xff] }
 0xff6   : > { %v2001_v29 = vpop.xlane.xlu2 %2000 }
 0xff7   : > { %v2002_v30 = vsub.f32 %v1997_v26, %v2001_v29  ;;  %v3116_v26 = vld [vmem:[%s5234_s17 + $0x178] sm:$0xff]  ;;  %v3114_v29 = vld [vmem:[%s5234_s17 + $0x168] sm:$0xff] }
 0xff8   : > { %2179 = vmatpush.msra.mxu0 %v3116_v26  ;;  %v3133_v26 = vld [vmem:[%s5232_s15 + $0x1b8] sm:$0xff] }
 0xff9   : > { %v2003_v31 = vmul.f32 1.442695, %v2002_v30  ;;  %v3113_v30 = vld [vmem:[%s5234_s17 + $0x160] sm:$0xff] }
 0xffa   : > { %2180 = vmatpush.msra.mxu0 %v3115_v27  ;;  %v3132_v27 = vld [vmem:[%s5232_s15 + $0x1b0] sm:$0xff] }
 0xffb   : > { %3264 = vpow2.f32 %v2003_v31  ;;  %v3112_v31 = vld [vmem:[%s5234_s17 + $0x158] sm:$0xff] }
 0xffc   : > { %2181 = vmatpush.msra.mxu0 %v3114_v29  ;;  %v3131_v29 = vld [vmem:[%s5232_s15 + $0x1a8] sm:$0xff] }
 0xffe   : > { %2182 = vmatpush.msra.mxu0 %v3113_v30  ;;  %v3130_v30 = vld [vmem:[%s5232_s15 + $0x1a0] sm:$0xff] }
0x1000   : > { %2183 = vmatpush.msra.mxu0 %v3112_v31  ;;  %v3129_v31 = vld [vmem:[%s5232_s15 + $0x198] sm:$0xff] }
0x1001   : > { %v3265_v33 = vpop.eup %3264 }
0x1002   : > { %v2005_v36 = vsel %vm1813_vm11, %v3265_v33, 0.0  ;;  %2184 = vmatpush.msra.mxu0 %v3111_v32  ;;  %v3128_v32 = vld [vmem:[%s5232_s15 + $0x190] sm:$0xff] }
0x1003   : > { %2006 = vadd.xlane.f32.xlu0 %v2005_v36  ;;  %v3109_v36 = vld [vmem:[%s5234_s17 + $0x140] sm:$0xff] }
0x1076   : > { %v2007_v58 = vpop.xlane.xlu0 %2006 }
0x1077   : > { %3266 = vrcp.f32 %v2007_v58  ;;  %v3155_v58 = vld [vmem:[%s5233_s16 + $0x1e8] sm:$0xff] }
0x107d   : > { %v3267_v5 = vpop.eup %3266 }
0x107e   : > { %v2009_v8 = vmul.f32 %v3267_v5, %v3265_v33  ;;  %v3110_v33 = vld [vmem:[%s5234_s17 + $0x148] sm:$0xff] }
0x107f   : > { %2185 = vmatpush.msra.mxu0 %v3110_v33  ;;  %v3151_v5 = vld [vmem:[%s5233_s16 + $0x1c8] sm:$0xff] }
0x1080   : > { %3062 = vmatmul.msk.f32.vlgmr.msra.gmra.mxu1 %vm1813_vm11, %v2009_v8  ;;  %v3149_v8 = vld [vmem:[%s5233_s16 + $0x1b8] sm:$0xff]  ;;  %v3127_v33 = vld [vmem:[%s5232_s15 + $0x188] sm:$0xff] }
0x1081   : > { %3117 = vmatpush.xpose.msk.msra.mxu1 %vm940_vm4, %v2159_v22  ;;  %2186 = vmatpush.msra.mxu0 %v3109_v36  ;;  %v3137_v22 = vld [vmem:[%s5232_s15 + $0x1d8] sm:$0xff]  ;;  %v3126_v36 = vld [vmem:[%s5232_s15 + $0x180] sm:$0xff] }
0x1083   : > { %2187 = vmatpush.msra.mxu0 %v3108_v37 }
0x1085   : > { %3118 = vmatpush.xpose.msk.msra.mxu1 %vm940_vm4, %v2156_v21  ;;  %2188 = vmatpush.msra.mxu0 %v3107_v38  ;;  %v3138_v21 = vld [vmem:[%s5232_s15 + $0x1e0] sm:$0xff] }
0x1087   : > { %2189 = vmatpush.msra.mxu0 %v3106_v39 }
0x1088   : > { %3068 = vmatmul.msk.f32.vlgmr.msrb.gmra.mxu1 %vm940_vm4, %v4534_v6  ;;  %v3070_v6 = vld [vmem:[%s5232_s15 + $0x108] sm:$0xff] }
0x1089   : > { %2115 = vmatpush.msra.mxu2 %v3070_v6  ;;  %2190 = vmatpush.msra.mxu0 %v3105_v42  ;;  %v3141_v6 = vld [vmem:[%s5232_s15 + $0x1f8] sm:$0xff] }
0x108b   : > { %2116 = vmatpush.msra.mxu2 %v3069_v20  ;;  %2191 = vmatpush.msra.mxu0 %v3104_v43  ;;  %v3140_v20 = vld [vmem:[%s5232_s15 + $0x1f0] sm:$0xff] }
0x108d   : > { %2192 = vmatpush.msra.mxu0 %v3103_v45 }
0x108f   : > { %2193 = vmatpush.msra.mxu0 %v3102_v46 }
0x1091   : > { %2194 = vmatpush.msra.mxu0 %v3101_v47  ;;  %v3173_v47 = vld [vmem:[%s5234_s17 + $0x1f8] sm:$0xff] }
0x1092   : > { %2195 = vmatmul.f32.vlgmr.msra.gmra.mxu0 %v4315_v28  ;;  %2389 = vmatpush.msrb.mxu3 %v3173_v47  ;;  %v2553_v47 = vld [vmem:[%s5237_s20 + $0x68] sm:$0xff] }
0x109a   : > { %2198 = vmatmul.f32.gmra.mxu0 %v4334_v35 }
0x10fd   : > { %v2030_v3 = vpop.f32.mrf.mxu1 }
0x10fe   : > { %3067 = vmatmul.msk.f32.vlgmr.msrb.gmra.mxu2 %vm940_vm4, %v2030_v3  ;;  %v3139_v3 = vld [vmem:[%s5232_s15 + $0x1e8] sm:$0xff] }
0x10ff   : > { %2349 = vmatpush.msrb.mxu2 %v3157_v55  ;;  %v3160_v55 = vld [vmem:[%s5234_s17 + $0x190] sm:$0xff] }
0x1101   : > { %2350 = vmatpush.msrb.mxu2 %v3156_v57  ;;  %v3159_v57 = vld [vmem:[%s5234_s17 + $0x188] sm:$0xff] }
0x1103   : > { %2351 = vmatpush.msrb.mxu2 %v3155_v58 }
0x1105   : > { %v4755_v41 = vpop.f32.mrf.mxu1  ;;  %2352 = vmatpush.msrb.mxu2 %v3154_v59  ;;  %v3158_v59 = vld [vmem:[%s5234_s17 + $0x180] sm:$0xff] }
0x1106   : > { %2117 = vmatmul.f32.vlgmr.msra.gmra.mxu2 %v4366_v56 }
0x1107   : > { %2353 = vmatpush.msrb.mxu2 %v3153_v62  ;;  %v3283_v62 = vld [vmem:[%s4303_s25] sm:$0xff]  ;;  %s5278_s25 = sld [smem:[#allocation20_spill]] }
0x1109   : > { %2354 = vmatpush.msrb.mxu2 %v3152_v0 }
0x110b   : > { %2355 = vmatpush.msrb.mxu2 %v3151_v5 }
0x110d   : > { %2356 = vmatpush.msrb.mxu2 %v3150_v7 }
0x110f   : > { %v2196_v52 = vpop.f32.mrf.mxu0  ;;  %2357 = vmatpush.msrb.mxu2 %v3149_v8 }
0x1111   : > { %2358 = vmatpush.msrb.mxu2 %v3148_v9 }
0x1113   : > { %2359 = vmatpush.msrb.mxu2 %v3147_v10  ;;  %v3179_v10 = vld [vmem:[%s5235_s18 + $0x68] sm:$0xff] }
0x1115   : > { %2360 = vmatpush.msrb.mxu2 %v3146_v11 }
0x1117   : > { %v2199_v4 = vpop.f32.mrf.mxu0  ;;  %2361 = vmatpush.msrb.mxu2 %v3145_v13 }
0x1118   : > { %2259 = vmatpush.msrb.mxu1 %v2199_v4  ;;  %v3161_v4 = vld [vmem:[%s5234_s17 + $0x198] sm:$0xff] }
0x1119   : > { %2362 = vmatpush.msrb.mxu2 %v3144_v14  ;;  %v3178_v14 = vld [vmem:[%s5235_s18 + $0x60] sm:$0xff] }
0x111a   : > { %2260 = vmatpush.msrb.mxu1 %v2196_v52  ;;  %v3164_v52 = vld [vmem:[%s5234_s17 + $0x1b0] sm:$0xff] }
0x111b   : > { %2363 = vmatpush.msrb.mxu2 %v3143_v16 }
0x111d   : > { %2364 = vmatpush.msrb.mxu2 %v3142_v17  ;;  %v3234_v17 = vld [vmem:[%s5236_s19] ss:$0 sm:$0xff] }
0x111e   : > { %2365 = vmatmul.f32.vlgmr.msrb.gmra.mxu2 %v4315_v28  ;;  %v3136_v28 = vld [vmem:[%s5232_s15 + $0x1d0] sm:$0xff] }
0x1126   : > { %2368 = vmatmul.f32.gmra.mxu2 %v4334_v35 }
0x1181   : > { %v4719_v23 = vpop.f32.mrf.mxu2 }
0x1182   : > { %v2082_v42 = vadd.f32 %v4755_v41, %v4719_v23  ;;  %v3171_v23 = vld [vmem:[%s5234_s17 + $0x1e8] sm:$0xff]  ;;  %v3170_v41 = vld [vmem:[%s5234_s17 + $0x1e0] sm:$0xff] }
0x1189   : > { %v2118_v24 = vpop.f32.mrf.mxu2 }
0x118a   : > { %v2121_v25 = vmul.f32 0.17677669, %v2118_v24  ;;  %v3135_v24 = vld [vmem:[%s5232_s15 + $0x1c8] sm:$0xff] }
0x118c   : > { %3119 = vmatmul.msk.f32.vlgmr.msra.gmra.mxu1 %vm940_vm4, %v2121_v25  ;;  %v3134_v25 = vld [vmem:[%s5232_s15 + $0x1c0] sm:$0xff] }
0x118d   : > { %2285 = vmatpush.msra.mxu1 %v3124_v60 }
0x118f   : > { %2286 = vmatpush.msra.mxu1 %v3123_v61 }
0x1191   : > { %2287 = vmatpush.msra.mxu1 %v3122_v63 }
0x1193   : > { %2288 = vmatpush.msra.mxu1 %v3121_v2 }
0x11a1   : > { %v2366_v38 = vpop.f32.mrf.mxu2 }
0x11a9   : > { %v2369_v39 = vpop.f32.mrf.mxu2 }
0x11aa   : > { %3174 = vmatpush.xpose.msk.msrb.mxu0 %vm940_vm4, %v2369_v39  ;;  %v2559_v39 = vld [vmem:[%s5237_s20 + $0x98] sm:$0xff] }
0x11ae   : > { %3175 = vmatpush.xpose.msk.msrb.mxu0 %vm940_vm4, %v2366_v38  ;;  %v2558_v38 = vld [vmem:[%s5237_s20 + $0x90] sm:$0xff] }
0x1209   : > { %v2228_v40 = vpop.f32.mrf.mxu1 }
0x120a   : > { %v2229_v48 = vadd.f32 %v2228_v40, %v4419_v15 }
0x120c   : > { %v2231_v44 = vsel %vm1813_vm11, %v2229_v48, -inf }
0x120d   : > { %2232 = vmax.xlane.f32.xlu1 %v2231_v44  ;;  %v3168_v44 = vld [vmem:[%s5234_s17 + $0x1d0] sm:$0xff] }
0x1280   : > { %v2233_v49 = vpop.xlane.xlu1 %2232 }
0x1281   : > { %v2234_v50 = vsub.f32 %v2229_v48, %v2233_v49  ;;  %v3169_v48 = vld [vmem:[%s5234_s17 + $0x1d8] sm:$0xff]  ;;  %v3167_v49 = vld [vmem:[%s5234_s17 + $0x1c8] sm:$0xff] }
0x1283   : > { %v2235_v51 = vmul.f32 1.442695, %v2234_v50  ;;  %v3166_v50 = vld [vmem:[%s5234_s17 + $0x1c0] sm:$0xff] }
0x1285   : > { %3268 = vpow2.f32 %v2235_v51  ;;  %v3165_v51 = vld [vmem:[%s5234_s17 + $0x1b8] sm:$0xff] }
0x128b   : > { %v3269_v53 = vpop.eup %3268 }
0x128c   : > { %v2237_v54 = vsel %vm1813_vm11, %v3269_v53, 0.0 }
0x128d   : > { %2238 = vadd.xlane.f32.xlu2 %v2237_v54  ;;  %v3162_v54 = vld [vmem:[%s5234_s17 + $0x1a0] sm:$0xff] }
0x1300   : > { %v2239_v12 = vpop.xlane.xlu2 %2238 }
0x1301   : > { %3270 = vrcp.f32 %v2239_v12 }
0x1307   : > { %v3271_v18 = vpop.eup %3270 }
0x1308   : > { %v2241_v19 = vmul.f32 %v3271_v18, %v3269_v53  ;;  %v3163_v53 = vld [vmem:[%s5234_s17 + $0x1a8] sm:$0xff] }
0x130a   : > { %3120 = vmatmul.msk.f32.vlgmr.msrb.gmra.mxu1 %vm1813_vm11, %v2241_v19 }
0x130b   : > { %2311 = vmatpush.msrb.mxu1 %v3141_v6 }
0x130d   : > { %2312 = vmatpush.msrb.mxu1 %v3140_v20 }
0x130f   : > { %2313 = vmatpush.msrb.mxu1 %v3139_v3  ;;  %v2570_v3 = vld [vmem:[%s5237_s20 + $0xf0] sm:$0xff] }
0x1311   : > { %2314 = vmatpush.msrb.mxu1 %v3138_v21  ;;  %v2571_v21 = vld [vmem:[%s5237_s20 + $0xf8] sm:$0xff] }
0x1312   : > { %2598 = vmatpush.msra.mxu2 %v2571_v21  ;;  %v2643_v21 = vld [vmem:[%s5239_s22 + $0x38] sm:$0xff] }
0x1313   : > { %2315 = vmatpush.msrb.mxu1 %v3137_v22  ;;  %v2568_v22 = vld [vmem:[%s5237_s20 + $0xe0] sm:$0xff] }
0x1315   : > { %2316 = vmatpush.msrb.mxu1 %v3136_v28 }
0x1317   : > { %2317 = vmatpush.msrb.mxu1 %v3135_v24 }
0x1319   : > { %2318 = vmatpush.msrb.mxu1 %v3134_v25 }
0x131b   : > { %2319 = vmatpush.msrb.mxu1 %v3133_v26 }
0x131d   : > { %2320 = vmatpush.msrb.mxu1 %v3132_v27  ;;  %v2566_v27 = vld [vmem:[%s5237_s20 + $0xd0] sm:$0xff] }
0x131f   : > { %2321 = vmatpush.msrb.mxu1 %v3131_v29  ;;  %v2567_v29 = vld [vmem:[%s5237_s20 + $0xd8] sm:$0xff] }
0x1321   : > { %2322 = vmatpush.msrb.mxu1 %v3130_v30  ;;  %v2564_v30 = vld [vmem:[%s5237_s20 + $0xc0] sm:$0xff] }
0x1323   : > { %2323 = vmatpush.msrb.mxu1 %v3129_v31  ;;  %v2565_v31 = vld [vmem:[%s5237_s20 + $0xc8] sm:$0xff] }
0x1325   : > { %2324 = vmatpush.msrb.mxu1 %v3128_v32  ;;  %v2562_v32 = vld [vmem:[%s5237_s20 + $0xb0] sm:$0xff] }
0x1327   : > { %2325 = vmatpush.msrb.mxu1 %v3127_v33  ;;  %v2563_v33 = vld [vmem:[%s5237_s20 + $0xb8] sm:$0xff] }
0x1329   : > { %2326 = vmatpush.msrb.mxu1 %v3126_v36  ;;  %v2560_v36 = vld [vmem:[%s5237_s20 + $0xa0] sm:$0xff] }
0x1387   : > { %v2262_v37 = vpop.f32.mrf.mxu1 }
0x1388   : > { %3125 = vmatmul.msk.f32.vlgmr.msra.gmra.mxu1 %vm940_vm4, %v2262_v37  ;;  %v2561_v37 = vld [vmem:[%s5237_s20 + $0xa8] sm:$0xff] }
0x1389   : > { %2578 = vmatpush.msra.mxu1 %v2570_v3  ;;  %v2663_v3 = vld [vmem:[%s5239_s22 + $0xd8] sm:$0xff] }
0x138b   : > { %2579 = vmatpush.msra.mxu1 %v2568_v22  ;;  %v2662_v22 = vld [vmem:[%s5239_s22 + $0xd0] sm:$0xff] }
0x138d   : > { %2580 = vmatpush.msra.mxu1 %v2566_v27  ;;  %v2659_v27 = vld [vmem:[%s5239_s22 + $0xb8] sm:$0xff] }
0x138f   : > { %2581 = vmatpush.msra.mxu1 %v2564_v30  ;;  %v2658_v30 = vld [vmem:[%s5239_s22 + $0xb0] sm:$0xff] }
0x1390   : > { %2327 = vmatmul.f32.vlgmr.msrb.gmra.mxu1 %v4366_v56  ;;  %v3172_v56 = vld [vmem:[%s5234_s17 + $0x1f0] sm:$0xff] }
0x1391   : > { %2390 = vmatpush.msrb.mxu3 %v3172_v56  ;;  %2582 = vmatpush.msra.mxu1 %v2562_v32  ;;  %v2550_v56 = vld [vmem:[%s5237_s20 + $0x50] sm:$0xff]  ;;  %v2657_v32 = vld [vmem:[%s5239_s22 + $0xa8] sm:$0xff] }
0x1393   : > { %2391 = vmatpush.msrb.mxu3 %v3171_v23  ;;  %2583 = vmatpush.msra.mxu1 %v2560_v36  ;;  %v2551_v23 = vld [vmem:[%s5237_s20 + $0x58] sm:$0xff]  ;;  %v2656_v36 = vld [vmem:[%s5239_s22 + $0xa0] sm:$0xff] }
0x1395   : > { %2392 = vmatpush.msrb.mxu3 %v3170_v41  ;;  %2584 = vmatpush.msra.mxu1 %v2558_v38  ;;  %v2548_v41 = vld [vmem:[%s5237_s20 + $0x40] sm:$0xff]  ;;  %v2655_v38 = vld [vmem:[%s5239_s22 + $0x98] sm:$0xff] }
0x1397   : > { %2393 = vmatpush.msrb.mxu3 %v3169_v48  ;;  %v2549_v48 = vld [vmem:[%s5237_s20 + $0x48] sm:$0xff] }
0x1399   : > { %2394 = vmatpush.msrb.mxu3 %v3168_v44  ;;  %v2546_v44 = vld [vmem:[%s5237_s20 + $0x30] sm:$0xff] }
0x139b   : > { %2395 = vmatpush.msrb.mxu3 %v3167_v49  ;;  %v2547_v49 = vld [vmem:[%s5237_s20 + $0x38] sm:$0xff] }
0x139d   : > { %2396 = vmatpush.msrb.mxu3 %v3166_v50  ;;  %v2544_v50 = vld [vmem:[%s5237_s20 + $0x20] sm:$0xff] }
0x139f   : > { %2397 = vmatpush.msrb.mxu3 %v3165_v51  ;;  %v2545_v51 = vld [vmem:[%s5237_s20 + $0x28] sm:$0xff] }
0x13a1   : > { %2398 = vmatpush.msrb.mxu3 %v3164_v52  ;;  %v2542_v52 = vld [vmem:[%s5237_s20 + $0x10] sm:$0xff] }
0x13a3   : > { %2399 = vmatpush.msrb.mxu3 %v3163_v53  ;;  %v2543_v53 = vld [vmem:[%s5237_s20 + $0x18] sm:$0xff] }
0x13a5   : > { %2400 = vmatpush.msrb.mxu3 %v3162_v54  ;;  %v2540_v54 = vld [vmem:[%s5237_s20] sm:$0xff] }
0x13a7   : > { %2401 = vmatpush.msrb.mxu3 %v3161_v4  ;;  %v2541_v4 = vld [vmem:[%s5237_s20 + $0x8] sm:$0xff] }
0x13a9   : > { %2402 = vmatpush.msrb.mxu3 %v3160_v55  ;;  %v2651_v55 = vld [vmem:[%s5239_s22 + $0x78] sm:$0xff] }
0x13ab   : > { %2403 = vmatpush.msrb.mxu3 %v3159_v57  ;;  %v2650_v57 = vld [vmem:[%s5239_s22 + $0x70] sm:$0xff] }
0x13ad   : > { %2404 = vmatpush.msrb.mxu3 %v3158_v59 }
0x13ae   : > { %2405 = vmatmul.f32.vlgmr.msrb.gmra.mxu3 %v3283_v62  ;;  %v2648_v62 = vld [vmem:[%s5239_s22 + $0x60] sm:$0xff] }
0x13af   : > { %2672 = vmatpush.msra.mxu3 %v2651_v55 }
0x13b1   : > { %2673 = vmatpush.msra.mxu3 %v2650_v57 }
0x13b6   : > { %2408 = vmatmul.f32.gmra.mxu3 %v4334_v35  ;;  %v3180_v35 = vld [vmem:[%s5235_s18 + $0x70] sm:$0xff] }
0x1405   : > { %v2290_v43 = vpop.f32.mrf.mxu1 }
0x1406   : > { %v4894_v45 = vadd.f32 %v2290_v43, %v2082_v42  ;;  %v2556_v42 = vld [vmem:[%s5237_s20 + $0x80] sm:$0xff]  ;;  %v2557_v43 = vld [vmem:[%s5237_s20 + $0x88] sm:$0xff] }
0x1407   : > { %2585 = vmatpush.msra.mxu1 %v2556_v42  ;;  %v2572_v42 = vld [vmem:[%s5238_s21] sm:$0x3] }
0x140d   : > { %v2328_v46 = vpop.f32.mrf.mxu1 }
0x140e   : > { %v2331_v40 = vmul.f32 0.17677669, %v2328_v46  ;;  %v2555_v46 = vld [vmem:[%s5237_s20 + $0x78] sm:$0xff] }
0x1410   : > { %3176 = vmatmul.msk.f32.vlgmr.msrb.gmra.mxu0 %vm940_vm4, %v2331_v40  ;;  %v2552_v40 = vld [vmem:[%s5237_s20 + $0x60] sm:$0xff] }
0x1431   : > { %v2406_v8 = vpop.f32.mrf.mxu3 }
0x1439   : > { %v2409_v9 = vpop.f32.mrf.mxu3 }
0x143a   : > { %2469 = vmatpush.msra.mxu0 %v2409_v9 }
0x143c   : > { %2470 = vmatpush.msra.mxu0 %v2406_v8 }
0x148d   : > { %v2438_v58 = vpop.f32.mrf.mxu0 }
0x148e   : > { %v2439_v60 = vadd.f32 %v2438_v58, %v4419_v15  ;;  %v3181_v15 = vld [vmem:[%s5235_s18 + $0x78] sm:$0xff] }
0x148f   : > { %2495 = vmatpush.msrb.mxu0 %v3181_v15  ;;  %v2667_v58 = vld [vmem:[%s5239_s22 + $0xf8] sm:$0xff] }
0x1490   : > { %v2441_v61 = vsel %vm1813_vm11, %v2439_v60, -inf }
0x1491   : > { %2442 = vmax.xlane.f32.xlu0 %v2441_v61  ;;  %2496 = vmatpush.msrb.mxu0 %v3180_v35 }
0x1493   : > { %2497 = vmatpush.msrb.mxu0 %v3179_v10  ;;  %v3236_v10 = vld [vmem:[%s5226_s9] ss:$0 sm:$0xff] }
0x1495   : > { %2498 = vmatpush.msrb.mxu0 %v3178_v14  ;;  %v2666_v14 = vld [vmem:[%s5239_s22 + $0xf0] sm:$0xff] }
0x1504   : > { %v2443_v63 = vpop.xlane.xlu0 %2442 }
0x1505   : > { %v2444_v0 = vsub.f32 %v2439_v60, %v2443_v63  ;;  %v2649_v60 = vld [vmem:[%s5239_s22 + $0x68] sm:$0xff] }
0x1506   : > { %2674 = vmatpush.msra.mxu3 %v2649_v60 }
0x1507   : > { %v2445_v2 = vmul.f32 1.442695, %v2444_v0 }
0x1508   : > { %2675 = vmatpush.msra.mxu3 %v2648_v62 }
0x1509   : > { %3272 = vpow2.f32 %v2445_v2 }
0x150f   : > { %v3273_v5 = vpop.eup %3272 }
0x1510   : > { %v2447_v7 = vsel %vm1813_vm11, %v3273_v5, 0.0 }
0x1511   : > { %2448 = vadd.xlane.f32.xlu1 %v2447_v7 }
0x1584   : > { %v2449_v11 = vpop.xlane.xlu1 %2448 }
0x1585   : > { %3274 = vrcp.f32 %v2449_v11 }
0x158b   : > { %v3275_v12 = vpop.eup %3274 }
0x158c   : > { %v2451_v13 = vmul.f32 %v3275_v12, %v3273_v5 }
0x158e   : > { %3177 = vmatmul.msk.f32.vlgmr.msra.gmra.mxu0 %vm1813_vm11, %v2451_v13  ;;  %v2647_v13 = vld [vmem:[%s5239_s22 + $0x58] sm:$0xff] }
0x158f   : > { %2692 = vmatpush.msra.mxu0 %v2667_v58  ;;  %2676 = vmatpush.msra.mxu3 %v2647_v13 }
0x1591   : > { %2693 = vmatpush.msra.mxu0 %v2666_v14 }
0x160b   : > { %v2472_v16 = vpop.f32.mrf.mxu0 }
0x160c   : > { %3182 = vmatmul.msk.f32.vlgmr.msrb.gmra.mxu0 %vm940_vm4, %v2472_v16  ;;  %v2646_v16 = vld [vmem:[%s5239_s22 + $0x50] sm:$0xff] }
0x160d   : > { %2677 = vmatpush.msra.mxu3 %v2646_v16 }
0x1689   : > { %v2500_v18 = vpop.f32.mrf.mxu0 }
0x168a   : > { %v2503_v19 = vadd.f32 %v2500_v18, %v4894_v45  ;;  %v2554_v45 = vld [vmem:[%s5237_s20 + $0x70] sm:$0xff]  ;;  %v2645_v18 = vld [vmem:[%s5239_s22 + $0x48] sm:$0xff] }
0x168b   : > { %2586 = vmatpush.msra.mxu1 %v2554_v45  ;;  %2678 = vmatpush.msra.mxu3 %v2645_v18  ;;  %v2652_v45 = vld [vmem:[%s5239_s22 + $0x80] sm:$0xff] }
0x168c   : > { %v2508_v6 = vadd.f32 %v3234_v17, %v2503_v19  ;;  %v2665_v17 = vld [vmem:[%s5239_s22 + $0xe8] sm:$0xff]  ;;  %v2664_v19 = vld [vmem:[%s5239_s22 + $0xe0] sm:$0xff] }
0x168d   : > { %2587 = vmatpush.msra.mxu1 %v2552_v40  ;;  %2694 = vmatpush.msra.mxu0 %v2665_v17 }
0x168e   : > { %v4969_v20 = vadd.f32 %v2508_v6, %v4239_v1  ;;  %v2569_v1 = vld [vmem:[%s5237_s20 + $0xe8] sm:$0xff]  ;;  %v2644_v6 = vld [vmem:[%s5239_s22 + $0x40] sm:$0xff] }
0x168f   : > { %2599 = vmatpush.msra.mxu2 %v2569_v1  ;;  %2588 = vmatpush.msra.mxu1 %v2550_v56  ;;  %v2642_v1 = vld [vmem:[%s5239_s22 + $0x30] sm:$0xff] }
0x1690   : > { %2510 = vadd.xlane.f32.xlu2 %v4969_v20  ;;  %2695 = vmatpush.msra.mxu0 %v2664_v19 }
0x1691   : > { %2600 = vmatpush.msra.mxu2 %v2567_v29  ;;  %2589 = vmatpush.msra.mxu1 %v2548_v41  ;;  %v2639_v29 = vld [vmem:[%s5239_s22 + $0x18] sm:$0xff] }
0x1692   : > { %2679 = vmatpush.msra.mxu3 %v2644_v6  ;;  %2696 = vmatpush.msra.mxu0 %v2663_v3 }
0x1693   : > { %2601 = vmatpush.msra.mxu2 %v2565_v31  ;;  %2590 = vmatpush.msra.mxu1 %v2546_v44  ;;  %v2638_v31 = vld [vmem:[%s5239_s22 + $0x10] sm:$0xff] }
0x1694   : > { %2680 = vmatpush.msra.mxu3 %v2643_v21  ;;  %2697 = vmatpush.msra.mxu0 %v2662_v22 }
0x1695   : > { %2602 = vmatpush.msra.mxu2 %v2563_v33  ;;  %2591 = vmatpush.msra.mxu1 %v2544_v50  ;;  %v2637_v33 = vld [vmem:[%s5239_s22 + $0x8] sm:$0xff] }
0x1696   : > { %2681 = vmatpush.msra.mxu3 %v2642_v1 }
0x1697   : > { %2603 = vmatpush.msra.mxu2 %v2561_v37  ;;  %2592 = vmatpush.msra.mxu1 %v2542_v52  ;;  %v2636_v37 = vld [vmem:[%s5239_s22] sm:$0xff] }
0x1699   : > { %2604 = vmatpush.msra.mxu2 %v2559_v39  ;;  %2593 = vmatpush.msra.mxu1 %v2540_v54  ;;  %v2654_v39 = vld [vmem:[%s5239_s22 + $0x90] sm:$0xff] }
0x169b   : > { %2605 = vmatpush.msra.mxu2 %v2557_v43  ;;  %v2653_v43 = vld [vmem:[%s5239_s22 + $0x88] sm:$0xff] }
0x169d   : > { %2606 = vmatpush.msra.mxu2 %v2555_v46  ;;  %v2574_v46 = vperm.slane %v2572_v42, 0 }
0x169f   : > { %2607 = vmatpush.msra.mxu2 %v2553_v47 }
0x16a1   : > { %2608 = vmatpush.msra.mxu2 %v2551_v23  ;;  %v2575_v23 = vperm.slane %v2572_v42, 1 }
0x16a3   : > { %2609 = vmatpush.msra.mxu2 %v2549_v48 }
0x16a5   : > { %2610 = vmatpush.msra.mxu2 %v2547_v49 }
0x16a7   : > { %2611 = vmatpush.msra.mxu2 %v2545_v51 }
0x16a9   : > { %2612 = vmatpush.msra.mxu2 %v2543_v53 }
0x16ab   : > { %2613 = vmatpush.msra.mxu2 %v2541_v4 }
0x1703   : > { %v2511_v28 = vpop.xlane.xlu2 %2510 }
0x1704   : > { %v2512_v24 = vmul.f32 %v2511_v28, %v3621_v34  ;;  %v2661_v28 = vld [vmem:[%s5239_s22 + $0xc8] sm:$0xff] }
0x1705   : > { %2698 = vmatpush.msra.mxu0 %v2661_v28 }
0x1706   : > { %v4986_v25 = vsub.f32 %v4969_v20, %v2512_v24  ;;  %v2641_v24 = vld [vmem:[%s5239_s22 + $0x28] sm:$0xff] }
0x1707   : > { %2682 = vmatpush.msra.mxu3 %v2641_v24 }
0x1708   : > { %v2514_v26 = vmul.f32 %v4986_v25, %v4986_v25 }
0x170a   : > { %2515 = vadd.xlane.f32.xlu0 %v2514_v26  ;;  %v2640_v26 = vld [vmem:[%s5239_s22 + $0x20] sm:$0xff] }
0x170b   : > { %2683 = vmatpush.msra.mxu3 %v2640_v26 }
0x170d   : > { %2684 = vmatpush.msra.mxu3 %v2639_v29 }
0x170f   : > { %2685 = vmatpush.msra.mxu3 %v2638_v31 }
0x1711   : > { %2686 = vmatpush.msra.mxu3 %v2637_v33 }
0x1713   : > { %2687 = vmatpush.msra.mxu3 %v2636_v37 }
0x177d   : > { %v2516_v59 = vpop.xlane.xlu0 %2515 }
0x177e   : > { %v2517_v61 = vmul.f32 %v2516_v59, %v3621_v34  ;;  %v3235_v34 = vld [vmem:[%s5278_s25] ss:$0 sm:$0xff]  ;;  %s2729_s25 = sshll.u32 %s2725_s27, 4  ;;  %s2730_s25 = int_to_ptr.hbm [resolvable:$true] %s2729_s25 }
0x177f   : > { %s3298_s8 = sshra.s32 %s2730_s25, 4  ;;  %s3299_s8 = int_to_ptr.hbm [resolvable:$true] %s3298_s8 }
0x1780   : > { %v2518_v63 = vadd.f32 1e-05, %v2517_v61  ;;  %s3300_s1 = scalar_lea.hbm %s3299_s8, 8  ;;  %p3305_p0 = scmp.lt.s32.totalorder %s3299_s8, %s5241_s24 }
0x1781   : > { %p3301_p11 = scmp.ne.s32.totalorder %s3299_s8, %s3300_s1  ;;  %p3306_p1 = scmp.lt.s32.totalorder %s3304_s2, %s3300_s1 }
0x1782   : > { %3276 = vrsqrt.f32 %v2518_v63  ;;  %vm2525_vm13 = vweird.f32 %v2518_v63 }
0x1783   : > { %p3302_p12 = pnand %p3301_p11, %p3513_p5  ;;  %p3307_p2 = por %p3306_p1, %p3305_p0 }
0x1785   : > { %p3303_p13 = pneg %p3302_p12 }
0x1787   : > { %p3308_p3 = pnand %p3307_p2, %p3303_p13 }
0x1788   : > { %v3277_v0 = vpop.eup %3276 }
0x1789   : > { %v2520_v2 = vmul.f32 %v3277_v0, %v2518_v63  ;;  %vm2526_vm12 = vweird.f32 %v3277_v0 }
0x178a   : > { %vm2527_vm14 = vmor %vm2525_vm13, %vm2526_vm12 }
0x178b   : > { %v2521_v5 = vmul.f32 %v3277_v0, %v2520_v2  ;;  %v3237_v2 = vld [vmem:[%s5240_s23] ss:$0 sm:$0xff] }
0x178d   : > { %v2522_v7 = vmul.f32 0.5, %v2521_v5 }
0x178f   : > { %v2523_v8 = vsub.f32 1.5, %v2522_v7 }
0x1791   : > { %v2524_v9 = vmul.f32 %v3277_v0, %v2523_v8 }
0x1793   : > { %v2528_v15 = vsel %vm2527_vm14, %v3277_v0, %v2524_v9 }
0x1794   : > { %v2529_v35 = vmul.f32 %v2528_v15, %v4986_v25  ;;  %v2660_v25 = vld [vmem:[%s5239_s22 + $0xc0] sm:$0xff] }
0x1795   : > { %2699 = vmatpush.msra.mxu0 %v2660_v25 }
0x1796   : > { %v2534_v11 = vmul.f32 %v3235_v34, %v2529_v35 }
0x1797   : > { %2700 = vmatpush.msra.mxu0 %v2659_v27 }
0x1798   : > { %v2539_v12 = vadd.f32 %v3236_v10, %v2534_v11 }
0x1799   : > { %2701 = vmatpush.msra.mxu0 %v2658_v30 }
0x179a   : > { %2594 = vmatmul.f32.vlgmr.msra.gmra.mxu1 %v2539_v12  ;;  %2614 = vmatmul.f32.vlgmr.msra.gmra.mxu2 %v2539_v12 }
0x179b   : > { %2702 = vmatpush.msra.mxu0 %v2657_v32 }
0x179d   : > { %2703 = vmatpush.msra.mxu0 %v2656_v36 }
0x179f   : > { %2704 = vmatpush.msra.mxu0 %v2655_v38 }
0x17a1   : > { %2705 = vmatpush.msra.mxu0 %v2654_v39 }
0x17a3   : > { %2706 = vmatpush.msra.mxu0 %v2653_v43 }
0x17a5   : > { %2707 = vmatpush.msra.mxu0 %v2652_v45 }
0x1817   : > { %v2595_v40 = vpop.f32.mrf.mxu1 }
0x1818   : > { %v2596_v47 = vadd.f32 %v2595_v40, %v2574_v46 }
0x181a   : > { %v2620_v56 = vmul.f32 0.044715, %v2596_v47  ;;  %v2618_v58 = vmul.f32 0.5, %v2596_v47 }
0x181c   : > { %v2622_v41 = vmul.f32 %v2620_v56, %v2596_v47 }
0x181d   : > { %v2615_v48 = vpop.f32.mrf.mxu2 }
0x181e   : > { %v2624_v44 = vmul.f32 %v2622_v41, %v2596_v47  ;;  %v2616_v49 = vadd.f32 %v2615_v48, %v2575_v23 }
0x1820   : > { %v2621_v50 = vmul.f32 0.044715, %v2616_v49  ;;  %v2626_v51 = vadd.f32 %v2624_v44, %v2596_v47  ;;  %v2619_v62 = vmul.f32 0.5, %v2616_v49 }
0x1822   : > { %v2623_v52 = vmul.f32 %v2621_v50, %v2616_v49  ;;  %v2628_v53 = vmul.f32 0.7978846, %v2626_v51 }
0x1824   : > { %v2625_v54 = vmul.f32 %v2623_v52, %v2616_v49  ;;  %3278 = vtanh.f32 %v2628_v53 }
0x1826   : > { %v2627_v4 = vadd.f32 %v2625_v54, %v2616_v49 }
0x1828   : > { %v2629_v55 = vmul.f32 0.7978846, %v2627_v4 }
0x182a   : > { %v3279_v57 = vpop.eup %3278  ;;  %3280 = vtanh.f32 %v2629_v55 }
0x182b   : > { %v2632_v59 = vadd.f32 1.0, %v3279_v57 }
0x182d   : > { %v2634_v60 = vmul.f32 %v2632_v59, %v2618_v58 }
0x182f   : > { %2688 = vmatmul.f32.vlgmr.msra.gmra.mxu3 %v2634_v60 }
0x1830   : > { %v3281_v61 = vpop.eup %3280 }
0x1831   : > { %v2633_v63 = vadd.f32 1.0, %v3281_v61 }
0x1833   : > { %v2635_v0 = vmul.f32 %v2633_v63, %v2619_v62 }
0x1835   : > { %2708 = vmatmul.f32.vlgmr.msra.gmra.mxu0 %v2635_v0 }
0x18b2   : > { %v2689_v5 = vpop.f32.mrf.mxu3  ;;  %v2709_v8 = vpop.f32.mrf.mxu0 }
0x18b3   : > { %v2690_v7 = vadd.f32 %v3237_v2, %v2689_v5 }
0x18b5   : > { %v2710_v9 = vadd.f32 %v2709_v8, %v2690_v7 }
0x18b7   : > { %v2712_v34 = vadd.f32 %v2710_v9, %v4969_v20 }
0x18b9   : > { %2713 = vst [vmem:[%s769_s30] sm:$0xff] %v2712_v34 }
0x18ba   : > { %3311 = shalt.err (!%p3308_p3)
}
0x18bb   : > { %3188 = dma.vmem_to_hbm [thread:$0]  (%p3513_p5), %s2728_s29, 128, %s2730_s25, %s2715_s6  }
0x18bc PF: > { %s5280_s7 = sld [smem:[#allocation7_spill]] }
0x18bd   : > { %s5281_s3 = sld [smem:[#allocation5_spill]] }
0x18c2   : > { %p3194_p4 = scmp.ge.s32.totalorder %s5280_s7, 2 }
0x18c3   : > { %s2741_s30 = sand.u32 1, %s5281_s3  }
0x18c4   : > { %p3191_p7 = pnand %p3194_p4, %p3517_p6  ;;  %s2742_s0 = scalar_lea.sflag [#allocation3], %s2741_s30 }
0x18c6   : > { %p3192_p8 = pneg %p3191_p7 }
0x18c8   : > { %3329 = dma.done.wait (%p3192_p8), %s2742_s0, 128  }
0x18c9   : > { %3331 = vsyncadd (%p3192_p8), %s2742_s0, 4294967168  ;;  %s5283_s28 = sld [smem:[#allocation8_spill]]  ;;  %s5286_s5 = smov %s3338_s26 }
0x18ca   : > { %s5284_s8 = sld [smem:[#allocation6_spill]] }
0x18cb   : > { %s5285_s27 = sld [smem:[#allocation9_spill]] }
0x18cf   : > { %p34_p9 = scmp.ge.s32.totalorder %s5283_s28, 4  }
0x18d0   : > { %s5287_s26 = smov %s5284_s8 }
0x18d1   :  { %36 = sbr.rel (!%p34_p9) target bundleno = 14 (0xe), region = 184 }
0x18d6   :  { %2748 = vsyncpa [#allocation3], 1 }
0x18d7   :  { %2750 = vsyncpa [#allocation3 + $0x1], 1 }

</bundles_post_ra>
